<compile_context>
chip_gen: v7x
topology: tpu7x:2x2x1
jax: 0.10.0
libtpu: 0.0.40
codegen_flags: <defaults>
</compile_context>

<pallas_src>
import functools

import jax
import jax.numpy as jnp
from jax.experimental import pallas as pl
from jax.experimental.pallas import tpu as pltpu


def lstm_kernel(x_ref, wih_ref, whh_ref, b_ref, wfc_ref, bfc_ref, out_ref,
                *, hidden_pad, seq_len):
    """Single-core LSTM forward, whole sequence in one invocation.

    x_ref   : (T, B, 1)  f32   input sequence (input_size == 1)
    wih_ref : (1, 4*Hp)  f32   input->gates weight (transposed, gate-padded,
                               i/f/o columns pre-scaled by 0.5)
    whh_ref : (Hp, 4*Hp) bf16  hidden->gates weight (transposed, gate-padded,
                               i/f/o columns pre-scaled by 0.5)
    b_ref   : (1, 4*Hp)  f32   b_ih + b_hh combined (gate-padded, prescaled)
    wfc_ref : (1, Hp)    f32   final linear weight row (zero-padded past H)
    bfc_ref : (1, 1)     f32   final linear bias
    out_ref : (B, 1)     f32   fc(h_T)
    """
    Hp = hidden_pad
    T = seq_len
    B = out_ref.shape[0]

    # Small loop-invariant values (4 vregs each) — cheap to keep live.
    wih = wih_ref[...]                                     # (1, 4Hp)
    b = b_ref[...]                                         # (1, 4Hp)

    h = jnp.zeros((B, Hp), jnp.float32)
    c = jnp.zeros((B, Hp), jnp.float32)

    # Fully unrolled time loop (T is static and small): h/c stay in vregs for
    # the whole recurrence — no per-step VMEM round-trips of the state, and the
    # LLO scheduler can interleave MXU/EUP/VPU work of adjacent steps.
    for t in range(T):
        # Input projection inline (input_size == 1 -> broadcast mul-add on the
        # VPU, hidden under the MXU latency of the recurrent dot). bf16
        # operands -> single-pass MXU matmul; f32 accumulation.
        pre = (x_ref[t] * wih + b
               + jnp.dot(h.astype(jnp.bfloat16), whh_ref[...],
                         preferred_element_type=jnp.float32))   # (B, 4Hp) f32

        # ONE EUP push for all four gates.  i/f/o columns were pre-scaled by
        # 0.5 in the wrapper, so sigmoid(z) = 0.5*tanh(0.5*z) + 0.5 reduces to
        # a 0.5*t + 0.5 post-affine on the tanh result; the g gate uses tanh
        # directly.  Gate slices are 128-lane aligned (each gate padded to Hp
        # lanes) -> free vreg selections.  Padded lanes stay inert:
        # tanh(0)=0 -> g_pad=0, i/f/o_pad=0.5, so c_pad, h_pad stay exactly 0.
        t_all = jnp.tanh(pre)                               # (B, 4Hp)
        i_g = 0.5 * t_all[:, 0 * Hp:1 * Hp] + 0.5
        f_g = 0.5 * t_all[:, 1 * Hp:2 * Hp] + 0.5
        g_g = t_all[:, 2 * Hp:3 * Hp]
        o_g = 0.5 * t_all[:, 3 * Hp:4 * Hp] + 0.5
        c = f_g * c + i_g * g_g
        h = o_g * jnp.tanh(c)

    # Final Linear (num_classes == 1): broadcast-mul + lane reduction on the
    # VPU/XLU — skips an (B, Hp) @ (Hp, 1) MXU pass and its FIFO drain.
    out_ref[...] = (jnp.sum(h * wfc_ref[...], axis=-1, keepdims=True)
                    + bfc_ref[...])


def prepare_params(params):
    """One-time weight padding / transposition / gate prescaling (host side).

    Returns ((wih_p, whh_p, b_p, wfc_p, bfc), Hp).
    """
    w_ih, w_hh, b_ih, b_hh, w_fc, b_fc = params
    H = w_hh.shape[1]
    I = w_ih.shape[1]
    C = w_fc.shape[0]
    assert I == 1, "kernel specialized to input_size == 1 (as in the module)"
    assert w_ih.shape == (4 * H, I) and w_hh.shape == (4 * H, H)
    # TODO(synk): num_classes > 1 would use an (Hp, C) MXU dot for the head;
    # the currency-prediction module uses num_classes == 1.
    assert C == 1, "kernel specialized to num_classes == 1"

    # Each gate padded to a full 128-lane tile so in-kernel gate slices are
    # lane-aligned. Padded rows/cols are zero so they stay numerically inert.
    Hp = ((H + 127) // 128) * 128
    # i, f, o gates pre-scaled by 0.5 (sigmoid via single tanh); g unscaled.
    gate_scale = (0.5, 0.5, 1.0, 0.5)

    def pad_gate_cols(w):
        """(rows, 4H) -> (rows, 4Hp): zero-pad each gate block, apply prescale."""
        out = jnp.zeros((w.shape[0], 4 * Hp), jnp.float32)
        for k, s in enumerate(gate_scale):
            out = out.at[:, k * Hp:k * Hp + H].set(s * w[:, k * H:(k + 1) * H])
        return out

    wih_p = pad_gate_cols(w_ih.T.astype(jnp.float32))                      # (1, 4Hp) f32
    b_p = pad_gate_cols((b_ih + b_hh).reshape(1, 4 * H).astype(jnp.float32))  # (1, 4Hp) f32
    whh_p = jnp.zeros((Hp, 4 * Hp), jnp.float32).at[:H, :].set(
        pad_gate_cols(w_hh.T.astype(jnp.float32))).astype(jnp.bfloat16)    # (Hp, 4Hp) bf16
    wfc_p = jnp.zeros((1, Hp), jnp.float32).at[:, :H].set(
        w_fc.astype(jnp.float32))                                          # (1, Hp)  f32
    bfc = b_fc.reshape(1, C).astype(jnp.float32)                           # (1, 1)   f32
    return (wih_p, whh_p, b_p, wfc_p, bfc), Hp


@functools.partial(jax.jit, static_argnames=("hidden_pad",))
def lstm_forward_prepared(x, padded_params, hidden_pad):
    """x: (B, T, 1) float32, padded_params from prepare_params()."""
    wih_p, whh_p, b_p, wfc_p, bfc = padded_params
    B, T, _ = x.shape
    x_tbi = jnp.transpose(x, (1, 0, 2)).astype(jnp.float32)                # (T, B, 1)

    kernel = functools.partial(lstm_kernel, hidden_pad=hidden_pad, seq_len=T)
    # Everything fits comfortably in VMEM (<1 MiB total); no grid / tiling
    # needed — a grid would only add per-step overhead to a latency-bound
    # recurrence.
    return pl.pallas_call(
        kernel,
        out_shape=jax.ShapeDtypeStruct((B, 1), jnp.float32),
        in_specs=[pl.BlockSpec(memory_space=pltpu.MemorySpace.VMEM)] * 6,
        out_specs=pl.BlockSpec(memory_space=pltpu.MemorySpace.VMEM),
    )(x_tbi, wih_p, whh_p, b_p, wfc_p, bfc)


def lstm_forward(x, params):
    """Convenience wrapper: pad weights (one-time cost) + run the kernel."""
    padded, Hp = prepare_params(params)
    return lstm_forward_prepared(x, padded, Hp)


def lstm_ref(x, params):
    """Pure-JAX f32 reference with identical semantics (for sanity check)."""
    w_ih, w_hh, b_ih, b_hh, w_fc, b_fc = params
    B, T, _ = x.shape
    H = w_hh.shape[1]
    h = jnp.zeros((B, H), jnp.float32)
    c = jnp.zeros((B, H), jnp.float32)
    for t in range(T):
        g = x[:, t, :] @ w_ih.T + h @ w_hh.T + b_ih + b_hh
        i = jax.nn.sigmoid(g[:, 0 * H:1 * H])
        f = jax.nn.sigmoid(g[:, 1 * H:2 * H])
        gg = jnp.tanh(g[:, 2 * H:3 * H])
        o = jax.nn.sigmoid(g[:, 3 * H:4 * H])
        c = f * c + i * gg
        h = o * jnp.tanh(c)
    return h @ w_fc.T + b_fc


if __name__ == "__main__":
    # Shapes from the module: input_size=1, hidden_size=60, seq_length=30,
    # num_layers=1, num_classes=1.  Batch = 8 fills the 8-row sublane tile
    # (review recommendation) at zero extra per-step latency.
    B, T, I, H, C = 8, 30, 1, 60, 1

    key = jax.random.PRNGKey(0)
    kx, k1, k2, k3, k4, k5, k6 = jax.random.split(key, 7)

    x = jax.random.normal(kx, (B, T, I), dtype=jnp.float32)

    # Deterministic parameter init, mimicking PyTorch's U(-1/sqrt(H), 1/sqrt(H)).
    bound = 1.0 / jnp.sqrt(jnp.float32(H))
    w_ih = jax.random.uniform(k1, (4 * H, I), jnp.float32, -bound, bound)
    w_hh = jax.random.uniform(k2, (4 * H, H), jnp.float32, -bound, bound)
    b_ih = jax.random.uniform(k3, (4 * H,), jnp.float32, -bound, bound)
    b_hh = jax.random.uniform(k4, (4 * H,), jnp.float32, -bound, bound)
    w_fc = jax.random.uniform(k5, (C, H), jnp.float32, -bound, bound)
    b_fc = jax.random.uniform(k6, (C,), jnp.float32, -bound, bound)
    params = (w_ih, w_hh, b_ih, b_hh, w_fc, b_fc)

    # One-time weight preparation (hoisted out of the hot path).
    padded_params, Hp = prepare_params(params)

    out = jax.block_until_ready(lstm_forward_prepared(x, padded_params, Hp))
    ref = jax.block_until_ready(lstm_ref(x, params))

    assert out.shape == (B, C), out.shape
    # Tolerance loosened vs. the pure-f32 version to absorb bf16 W_hh operand
    # quantization over the 30-step recurrence (state/accumulation stay f32).
    assert jnp.allclose(out, ref, rtol=2e-2, atol=2e-2), (out, ref)
    print("KERNEL_OK")
</pallas_src>

<mosaic_0001>
module attributes {stable_mosaic.version = 11 : i64} {
  func.func @lstm_kernel(%arg0: memref<30x8x1xf32, #tpu.memory_space<vmem>>, %arg1: memref<1x512xf32, #tpu.memory_space<vmem>>, %arg2: memref<128x512xbf16, #tpu.memory_space<vmem>>, %arg3: memref<1x512xf32, #tpu.memory_space<vmem>>, %arg4: memref<1x128xf32, #tpu.memory_space<vmem>>, %arg5: memref<1x1xf32, #tpu.memory_space<vmem>>, %arg6: memref<8x1xf32, #tpu.memory_space<vmem>>) attributes {dimension_semantics = [], scalar_prefetch = 0 : i64, scratch_operands = 0 : i64, tpu.core_type = #tpu.core_type<tc>} {
    %c0 = arith.constant 0 : index
    %c0_0 = arith.constant 0 : index
    %0 = vector.load %arg1[%c0, %c0_0] : memref<1x512xf32, #tpu.memory_space<vmem>>, vector<1x512xf32>
    %c0_1 = arith.constant 0 : index
    %c0_2 = arith.constant 0 : index
    %1 = vector.load %arg3[%c0_1, %c0_2] : memref<1x512xf32, #tpu.memory_space<vmem>>, vector<1x512xf32>
    %cst = arith.constant 0.000000e+00 : f32
    %2 = vector.broadcast %cst : f32 to vector<8x128xf32>
    %cst_3 = arith.constant 0.000000e+00 : f32
    %3 = vector.broadcast %cst_3 : f32 to vector<8x128xf32>
    %c0_4 = arith.constant 0 : index
    %c0_5 = arith.constant 0 : index
    %c0_6 = arith.constant 0 : index
    %4 = vector.load %arg0[%c0_4, %c0_5, %c0_6] : memref<30x8x1xf32, #tpu.memory_space<vmem>>, vector<1x8x1xf32>
    %5 = vector.shape_cast %4 : vector<1x8x1xf32> to vector<8x1xf32>
    %6 = vector.broadcast %5 : vector<8x1xf32> to vector<8x512xf32>
    %7 = vector.broadcast %0 : vector<1x512xf32> to vector<8x512xf32>
    %8 = arith.mulf %6, %7 : vector<8x512xf32>
    %9 = vector.broadcast %1 : vector<1x512xf32> to vector<8x512xf32>
    %10 = arith.addf %8, %9 : vector<8x512xf32>
    %11 = arith.truncf %2 : vector<8x128xf32> to vector<8x128xbf16>
    %c0_7 = arith.constant 0 : index
    %c0_8 = arith.constant 0 : index
    %12 = vector.load %arg2[%c0_7, %c0_8] : memref<128x512xbf16, #tpu.memory_space<vmem>>, vector<128x512xbf16>
    %cst_9 = arith.constant dense<0.000000e+00> : vector<8x512xf32>
    %13 = tpu.matmul %11, %12, %cst_9 {dimension_numbers = #tpu.dot_dimension_numbers<[1], [0], [0], [1], [0, 0, 1, 1], [], []>} : vector<8x128xbf16>, vector<128x512xbf16>, vector<8x512xf32> -> vector<8x512xf32>
    %14 = arith.addf %10, %13 : vector<8x512xf32>
    %15 = math.tanh %14 : vector<8x512xf32>
    %16 = vector.extract_strided_slice %15 {offsets = [0, 0], sizes = [8, 128], strides = [1, 1]} : vector<8x512xf32> to vector<8x128xf32>
    %cst_10 = arith.constant 5.000000e-01 : f32
    %17 = vector.broadcast %cst_10 : f32 to vector<8x128xf32>
    %18 = arith.mulf %17, %16 : vector<8x128xf32>
    %cst_11 = arith.constant 5.000000e-01 : f32
    %19 = vector.broadcast %cst_11 : f32 to vector<8x128xf32>
    %20 = arith.addf %18, %19 : vector<8x128xf32>
    %21 = vector.extract_strided_slice %15 {offsets = [0, 128], sizes = [8, 128], strides = [1, 1]} : vector<8x512xf32> to vector<8x128xf32>
    %cst_12 = arith.constant 5.000000e-01 : f32
    %22 = vector.broadcast %cst_12 : f32 to vector<8x128xf32>
    %23 = arith.mulf %22, %21 : vector<8x128xf32>
    %cst_13 = arith.constant 5.000000e-01 : f32
    %24 = vector.broadcast %cst_13 : f32 to vector<8x128xf32>
    %25 = arith.addf %23, %24 : vector<8x128xf32>
    %26 = vector.extract_strided_slice %15 {offsets = [0, 256], sizes = [8, 128], strides = [1, 1]} : vector<8x512xf32> to vector<8x128xf32>
    %27 = vector.extract_strided_slice %15 {offsets = [0, 384], sizes = [8, 128], strides = [1, 1]} : vector<8x512xf32> to vector<8x128xf32>
    %cst_14 = arith.constant 5.000000e-01 : f32
    %28 = vector.broadcast %cst_14 : f32 to vector<8x128xf32>
    %29 = arith.mulf %28, %27 : vector<8x128xf32>
    %cst_15 = arith.constant 5.000000e-01 : f32
    %30 = vector.broadcast %cst_15 : f32 to vector<8x128xf32>
    %31 = arith.addf %29, %30 : vector<8x128xf32>
    %32 = arith.mulf %25, %3 : vector<8x128xf32>
    %33 = arith.mulf %20, %26 : vector<8x128xf32>
    %34 = arith.addf %32, %33 : vector<8x128xf32>
    %35 = math.tanh %34 : vector<8x128xf32>
    %36 = arith.mulf %31, %35 : vector<8x128xf32>
    %c1 = arith.constant 1 : index
    %c0_16 = arith.constant 0 : index
    %c0_17 = arith.constant 0 : index
    %37 = vector.load %arg0[%c1, %c0_16, %c0_17] : memref<30x8x1xf32, #tpu.memory_space<vmem>>, vector<1x8x1xf32>
    %38 = vector.shape_cast %37 : vector<1x8x1xf32> to vector<8x1xf32>
    %39 = vector.broadcast %38 : vector<8x1xf32> to vector<8x512xf32>
    %40 = vector.broadcast %0 : vector<1x512xf32> to vector<8x512xf32>
    %41 = arith.mulf %39, %40 : vector<8x512xf32>
    %42 = vector.broadcast %1 : vector<1x512xf32> to vector<8x512xf32>
    %43 = arith.addf %41, %42 : vector<8x512xf32>
    %44 = arith.truncf %36 : vector<8x128xf32> to vector<8x128xbf16>
    %c0_18 = arith.constant 0 : index
    %c0_19 = arith.constant 0 : index
    %45 = vector.load %arg2[%c0_18, %c0_19] : memref<128x512xbf16, #tpu.memory_space<vmem>>, vector<128x512xbf16>
    %cst_20 = arith.constant dense<0.000000e+00> : vector<8x512xf32>
    %46 = tpu.matmul %44, %45, %cst_20 {dimension_numbers = #tpu.dot_dimension_numbers<[1], [0], [0], [1], [0, 0, 1, 1], [], []>} : vector<8x128xbf16>, vector<128x512xbf16>, vector<8x512xf32> -> vector<8x512xf32>
    %47 = arith.addf %43, %46 : vector<8x512xf32>
    %48 = math.tanh %47 : vector<8x512xf32>
    %49 = vector.extract_strided_slice %48 {offsets = [0, 0], sizes = [8, 128], strides = [1, 1]} : vector<8x512xf32> to vector<8x128xf32>
    %cst_21 = arith.constant 5.000000e-01 : f32
    %50 = vector.broadcast %cst_21 : f32 to vector<8x128xf32>
    %51 = arith.mulf %50, %49 : vector<8x128xf32>
    %cst_22 = arith.constant 5.000000e-01 : f32
    %52 = vector.broadcast %cst_22 : f32 to vector<8x128xf32>
    %53 = arith.addf %51, %52 : vector<8x128xf32>
    %54 = vector.extract_strided_slice %48 {offsets = [0, 128], sizes = [8, 128], strides = [1, 1]} : vector<8x512xf32> to vector<8x128xf32>
    %cst_23 = arith.constant 5.000000e-01 : f32
    %55 = vector.broadcast %cst_23 : f32 to vector<8x128xf32>
    %56 = arith.mulf %55, %54 : vector<8x128xf32>
    %cst_24 = arith.constant 5.000000e-01 : f32
    %57 = vector.broadcast %cst_24 : f32 to vector<8x128xf32>
    %58 = arith.addf %56, %57 : vector<8x128xf32>
    %59 = vector.extract_strided_slice %48 {offsets = [0, 256], sizes = [8, 128], strides = [1, 1]} : vector<8x512xf32> to vector<8x128xf32>
    %60 = vector.extract_strided_slice %48 {offsets = [0, 384], sizes = [8, 128], strides = [1, 1]} : vector<8x512xf32> to vector<8x128xf32>
    %cst_25 = arith.constant 5.000000e-01 : f32
    %61 = vector.broadcast %cst_25 : f32 to vector<8x128xf32>
    %62 = arith.mulf %61, %60 : vector<8x128xf32>
    %cst_26 = arith.constant 5.000000e-01 : f32
    %63 = vector.broadcast %cst_26 : f32 to vector<8x128xf32>
    %64 = arith.addf %62, %63 : vector<8x128xf32>
    %65 = arith.mulf %58, %34 : vector<8x128xf32>
    %66 = arith.mulf %53, %59 : vector<8x128xf32>
    %67 = arith.addf %65, %66 : vector<8x128xf32>
    %68 = math.tanh %67 : vector<8x128xf32>
    %69 = arith.mulf %64, %68 : vector<8x128xf32>
    %c2 = arith.constant 2 : index
    %c0_27 = arith.constant 0 : index
    %c0_28 = arith.constant 0 : index
    %70 = vector.load %arg0[%c2, %c0_27, %c0_28] : memref<30x8x1xf32, #tpu.memory_space<vmem>>, vector<1x8x1xf32>
    %71 = vector.shape_cast %70 : vector<1x8x1xf32> to vector<8x1xf32>
    %72 = vector.broadcast %71 : vector<8x1xf32> to vector<8x512xf32>
    %73 = vector.broadcast %0 : vector<1x512xf32> to vector<8x512xf32>
    %74 = arith.mulf %72, %73 : vector<8x512xf32>
    %75 = vector.broadcast %1 : vector<1x512xf32> to vector<8x512xf32>
    %76 = arith.addf %74, %75 : vector<8x512xf32>
    %77 = arith.truncf %69 : vector<8x128xf32> to vector<8x128xbf16>
    %c0_29 = arith.constant 0 : index
    %c0_30 = arith.constant 0 : index
    %78 = vector.load %arg2[%c0_29, %c0_30] : memref<128x512xbf16, #tpu.memory_space<vmem>>, vector<128x512xbf16>
    %cst_31 = arith.constant dense<0.000000e+00> : vector<8x512xf32>
    %79 = tpu.matmul %77, %78, %cst_31 {dimension_numbers = #tpu.dot_dimension_numbers<[1], [0], [0], [1], [0, 0, 1, 1], [], []>} : vector<8x128xbf16>, vector<128x512xbf16>, vector<8x512xf32> -> vector<8x512xf32>
    %80 = arith.addf %76, %79 : vector<8x512xf32>
    %81 = math.tanh %80 : vector<8x512xf32>
    %82 = vector.extract_strided_slice %81 {offsets = [0, 0], sizes = [8, 128], strides = [1, 1]} : vector<8x512xf32> to vector<8x128xf32>
    %cst_32 = arith.constant 5.000000e-01 : f32
    %83 = vector.broadcast %cst_32 : f32 to vector<8x128xf32>
    %84 = arith.mulf %83, %82 : vector<8x128xf32>
    %cst_33 = arith.constant 5.000000e-01 : f32
    %85 = vector.broadcast %cst_33 : f32 to vector<8x128xf32>
    %86 = arith.addf %84, %85 : vector<8x128xf32>
    %87 = vector.extract_strided_slice %81 {offsets = [0, 128], sizes = [8, 128], strides = [1, 1]} : vector<8x512xf32> to vector<8x128xf32>
    %cst_34 = arith.constant 5.000000e-01 : f32
    %88 = vector.broadcast %cst_34 : f32 to vector<8x128xf32>
    %89 = arith.mulf %88, %87 : vector<8x128xf32>
    %cst_35 = arith.constant 5.000000e-01 : f32
    %90 = vector.broadcast %cst_35 : f32 to vector<8x128xf32>
    %91 = arith.addf %89, %90 : vector<8x128xf32>
    %92 = vector.extract_strided_slice %81 {offsets = [0, 256], sizes = [8, 128], strides = [1, 1]} : vector<8x512xf32> to vector<8x128xf32>
    %93 = vector.extract_strided_slice %81 {offsets = [0, 384], sizes = [8, 128], strides = [1, 1]} : vector<8x512xf32> to vector<8x128xf32>
    %cst_36 = arith.constant 5.000000e-01 : f32
    %94 = vector.broadcast %cst_36 : f32 to vector<8x128xf32>
    %95 = arith.mulf %94, %93 : vector<8x128xf32>
    %cst_37 = arith.constant 5.000000e-01 : f32
    %96 = vector.broadcast %cst_37 : f32 to vector<8x128xf32>
    %97 = arith.addf %95, %96 : vector<8x128xf32>
    %98 = arith.mulf %91, %67 : vector<8x128xf32>
    %99 = arith.mulf %86, %92 : vector<8x128xf32>
    %100 = arith.addf %98, %99 : vector<8x128xf32>
    %101 = math.tanh %100 : vector<8x128xf32>
    %102 = arith.mulf %97, %101 : vector<8x128xf32>
    %c3 = arith.constant 3 : index
    %c0_38 = arith.constant 0 : index
    %c0_39 = arith.constant 0 : index
    %103 = vector.load %arg0[%c3, %c0_38, %c0_39] : memref<30x8x1xf32, #tpu.memory_space<vmem>>, vector<1x8x1xf32>
    %104 = vector.shape_cast %103 : vector<1x8x1xf32> to vector<8x1xf32>
    %105 = vector.broadcast %104 : vector<8x1xf32> to vector<8x512xf32>
    %106 = vector.broadcast %0 : vector<1x512xf32> to vector<8x512xf32>
    %107 = arith.mulf %105, %106 : vector<8x512xf32>
    %108 = vector.broadcast %1 : vector<1x512xf32> to vector<8x512xf32>
    %109 = arith.addf %107, %108 : vector<8x512xf32>
    %110 = arith.truncf %102 : vector<8x128xf32> to vector<8x128xbf16>
    %c0_40 = arith.constant 0 : index
    %c0_41 = arith.constant 0 : index
    %111 = vector.load %arg2[%c0_40, %c0_41] : memref<128x512xbf16, #tpu.memory_space<vmem>>, vector<128x512xbf16>
    %cst_42 = arith.constant dense<0.000000e+00> : vector<8x512xf32>
    %112 = tpu.matmul %110, %111, %cst_42 {dimension_numbers = #tpu.dot_dimension_numbers<[1], [0], [0], [1], [0, 0, 1, 1], [], []>} : vector<8x128xbf16>, vector<128x512xbf16>, vector<8x512xf32> -> vector<8x512xf32>
    %113 = arith.addf %109, %112 : vector<8x512xf32>
    %114 = math.tanh %113 : vector<8x512xf32>
    %115 = vector.extract_strided_slice %114 {offsets = [0, 0], sizes = [8, 128], strides = [1, 1]} : vector<8x512xf32> to vector<8x128xf32>
    %cst_43 = arith.constant 5.000000e-01 : f32
    %116 = vector.broadcast %cst_43 : f32 to vector<8x128xf32>
    %117 = arith.mulf %116, %115 : vector<8x128xf32>
    %cst_44 = arith.constant 5.000000e-01 : f32
    %118 = vector.broadcast %cst_44 : f32 to vector<8x128xf32>
    %119 = arith.addf %117, %118 : vector<8x128xf32>
    %120 = vector.extract_strided_slice %114 {offsets = [0, 128], sizes = [8, 128], strides = [1, 1]} : vector<8x512xf32> to vector<8x128xf32>
    %cst_45 = arith.constant 5.000000e-01 : f32
    %121 = vector.broadcast %cst_45 : f32 to vector<8x128xf32>
    %122 = arith.mulf %121, %120 : vector<8x128xf32>
    %cst_46 = arith.constant 5.000000e-01 : f32
    %123 = vector.broadcast %cst_46 : f32 to vector<8x128xf32>
    %124 = arith.addf %122, %123 : vector<8x128xf32>
    %125 = vector.extract_strided_slice %114 {offsets = [0, 256], sizes = [8, 128], strides = [1, 1]} : vector<8x512xf32> to vector<8x128xf32>
    %126 = vector.extract_strided_slice %114 {offsets = [0, 384], sizes = [8, 128], strides = [1, 1]} : vector<8x512xf32> to vector<8x128xf32>
    %cst_47 = arith.constant 5.000000e-01 : f32
    %127 = vector.broadcast %cst_47 : f32 to vector<8x128xf32>
    %128 = arith.mulf %127, %126 : vector<8x128xf32>
    %cst_48 = arith.constant 5.000000e-01 : f32
    %129 = vector.broadcast %cst_48 : f32 to vector<8x128xf32>
    %130 = arith.addf %128, %129 : vector<8x128xf32>
    %131 = arith.mulf %124, %100 : vector<8x128xf32>
    %132 = arith.mulf %119, %125 : vector<8x128xf32>
    %133 = arith.addf %131, %132 : vector<8x128xf32>
    %134 = math.tanh %133 : vector<8x128xf32>
    %135 = arith.mulf %130, %134 : vector<8x128xf32>
    %c4 = arith.constant 4 : index
    %c0_49 = arith.constant 0 : index
    %c0_50 = arith.constant 0 : index
    %136 = vector.load %arg0[%c4, %c0_49, %c0_50] : memref<30x8x1xf32, #tpu.memory_space<vmem>>, vector<1x8x1xf32>
    %137 = vector.shape_cast %136 : vector<1x8x1xf32> to vector<8x1xf32>
    %138 = vector.broadcast %137 : vector<8x1xf32> to vector<8x512xf32>
    %139 = vector.broadcast %0 : vector<1x512xf32> to vector<8x512xf32>
    %140 = arith.mulf %138, %139 : vector<8x512xf32>
    %141 = vector.broadcast %1 : vector<1x512xf32> to vector<8x512xf32>
    %142 = arith.addf %140, %141 : vector<8x512xf32>
    %143 = arith.truncf %135 : vector<8x128xf32> to vector<8x128xbf16>
    %c0_51 = arith.constant 0 : index
    %c0_52 = arith.constant 0 : index
    %144 = vector.load %arg2[%c0_51, %c0_52] : memref<128x512xbf16, #tpu.memory_space<vmem>>, vector<128x512xbf16>
    %cst_53 = arith.constant dense<0.000000e+00> : vector<8x512xf32>
    %145 = tpu.matmul %143, %144, %cst_53 {dimension_numbers = #tpu.dot_dimension_numbers<[1], [0], [0], [1], [0, 0, 1, 1], [], []>} : vector<8x128xbf16>, vector<128x512xbf16>, vector<8x512xf32> -> vector<8x512xf32>
    %146 = arith.addf %142, %145 : vector<8x512xf32>
    %147 = math.tanh %146 : vector<8x512xf32>
    %148 = vector.extract_strided_slice %147 {offsets = [0, 0], sizes = [8, 128], strides = [1, 1]} : vector<8x512xf32> to vector<8x128xf32>
    %cst_54 = arith.constant 5.000000e-01 : f32
    %149 = vector.broadcast %cst_54 : f32 to vector<8x128xf32>
    %150 = arith.mulf %149, %148 : vector<8x128xf32>
    %cst_55 = arith.constant 5.000000e-01 : f32
    %151 = vector.broadcast %cst_55 : f32 to vector<8x128xf32>
    %152 = arith.addf %150, %151 : vector<8x128xf32>
    %153 = vector.extract_strided_slice %147 {offsets = [0, 128], sizes = [8, 128], strides = [1, 1]} : vector<8x512xf32> to vector<8x128xf32>
    %cst_56 = arith.constant 5.000000e-01 : f32
    %154 = vector.broadcast %cst_56 : f32 to vector<8x128xf32>
    %155 = arith.mulf %154, %153 : vector<8x128xf32>
    %cst_57 = arith.constant 5.000000e-01 : f32
    %156 = vector.broadcast %cst_57 : f32 to vector<8x128xf32>
    %157 = arith.addf %155, %156 : vector<8x128xf32>
    %158 = vector.extract_strided_slice %147 {offsets = [0, 256], sizes = [8, 128], strides = [1, 1]} : vector<8x512xf32> to vector<8x128xf32>
    %159 = vector.extract_strided_slice %147 {offsets = [0, 384], sizes = [8, 128], strides = [1, 1]} : vector<8x512xf32> to vector<8x128xf32>
    %cst_58 = arith.constant 5.000000e-01 : f32
    %160 = vector.broadcast %cst_58 : f32 to vector<8x128xf32>
    %161 = arith.mulf %160, %159 : vector<8x128xf32>
    %cst_59 = arith.constant 5.000000e-01 : f32
    %162 = vector.broadcast %cst_59 : f32 to vector<8x128xf32>
    %163 = arith.addf %161, %162 : vector<8x128xf32>
    %164 = arith.mulf %157, %133 : vector<8x128xf32>
    %165 = arith.mulf %152, %158 : vector<8x128xf32>
    %166 = arith.addf %164, %165 : vector<8x128xf32>
    %167 = math.tanh %166 : vector<8x128xf32>
    %168 = arith.mulf %163, %167 : vector<8x128xf32>
    %c5 = arith.constant 5 : index
    %c0_60 = arith.constant 0 : index
    %c0_61 = arith.constant 0 : index
    %169 = vector.load %arg0[%c5, %c0_60, %c0_61] : memref<30x8x1xf32, #tpu.memory_space<vmem>>, vector<1x8x1xf32>
    %170 = vector.shape_cast %169 : vector<1x8x1xf32> to vector<8x1xf32>
    %171 = vector.broadcast %170 : vector<8x1xf32> to vector<8x512xf32>
    %172 = vector.broadcast %0 : vector<1x512xf32> to vector<8x512xf32>
    %173 = arith.mulf %171, %172 : vector<8x512xf32>
    %174 = vector.broadcast %1 : vector<1x512xf32> to vector<8x512xf32>
    %175 = arith.addf %173, %174 : vector<8x512xf32>
    %176 = arith.truncf %168 : vector<8x128xf32> to vector<8x128xbf16>
    %c0_62 = arith.constant 0 : index
    %c0_63 = arith.constant 0 : index
    %177 = vector.load %arg2[%c0_62, %c0_63] : memref<128x512xbf16, #tpu.memory_space<vmem>>, vector<128x512xbf16>
    %cst_64 = arith.constant dense<0.000000e+00> : vector<8x512xf32>
    %178 = tpu.matmul %176, %177, %cst_64 {dimension_numbers = #tpu.dot_dimension_numbers<[1], [0], [0], [1], [0, 0, 1, 1], [], []>} : vector<8x128xbf16>, vector<128x512xbf16>, vector<8x512xf32> -> vector<8x512xf32>
    %179 = arith.addf %175, %178 : vector<8x512xf32>
    %180 = math.tanh %179 : vector<8x512xf32>
    %181 = vector.extract_strided_slice %180 {offsets = [0, 0], sizes = [8, 128], strides = [1, 1]} : vector<8x512xf32> to vector<8x128xf32>
    %cst_65 = arith.constant 5.000000e-01 : f32
    %182 = vector.broadcast %cst_65 : f32 to vector<8x128xf32>
    %183 = arith.mulf %182, %181 : vector<8x128xf32>
    %cst_66 = arith.constant 5.000000e-01 : f32
    %184 = vector.broadcast %cst_66 : f32 to vector<8x128xf32>
    %185 = arith.addf %183, %184 : vector<8x128xf32>
    %186 = vector.extract_strided_slice %180 {offsets = [0, 128], sizes = [8, 128], strides = [1, 1]} : vector<8x512xf32> to vector<8x128xf32>
    %cst_67 = arith.constant 5.000000e-01 : f32
    %187 = vector.broadcast %cst_67 : f32 to vector<8x128xf32>
    %188 = arith.mulf %187, %186 : vector<8x128xf32>
    %cst_68 = arith.constant 5.000000e-01 : f32
    %189 = vector.broadcast %cst_68 : f32 to vector<8x128xf32>
    %190 = arith.addf %188, %189 : vector<8x128xf32>
    %191 = vector.extract_strided_slice %180 {offsets = [0, 256], sizes = [8, 128], strides = [1, 1]} : vector<8x512xf32> to vector<8x128xf32>
    %192 = vector.extract_strided_slice %180 {offsets = [0, 384], sizes = [8, 128], strides = [1, 1]} : vector<8x512xf32> to vector<8x128xf32>
    %cst_69 = arith.constant 5.000000e-01 : f32
    %193 = vector.broadcast %cst_69 : f32 to vector<8x128xf32>
    %194 = arith.mulf %193, %192 : vector<8x128xf32>
    %cst_70 = arith.constant 5.000000e-01 : f32
    %195 = vector.broadcast %cst_70 : f32 to vector<8x128xf32>
    %196 = arith.addf %194, %195 : vector<8x128xf32>
    %197 = arith.mulf %190, %166 : vector<8x128xf32>
    %198 = arith.mulf %185, %191 : vector<8x128xf32>
    %199 = arith.addf %197, %198 : vector<8x128xf32>
    %200 = math.tanh %199 : vector<8x128xf32>
    %201 = arith.mulf %196, %200 : vector<8x128xf32>
    %c6 = arith.constant 6 : index
    %c0_71 = arith.constant 0 : index
    %c0_72 = arith.constant 0 : index
    %202 = vector.load %arg0[%c6, %c0_71, %c0_72] : memref<30x8x1xf32, #tpu.memory_space<vmem>>, vector<1x8x1xf32>
    %203 = vector.shape_cast %202 : vector<1x8x1xf32> to vector<8x1xf32>
    %204 = vector.broadcast %203 : vector<8x1xf32> to vector<8x512xf32>
    %205 = vector.broadcast %0 : vector<1x512xf32> to vector<8x512xf32>
    %206 = arith.mulf %204, %205 : vector<8x512xf32>
    %207 = vector.broadcast %1 : vector<1x512xf32> to vector<8x512xf32>
    %208 = arith.addf %206, %207 : vector<8x512xf32>
    %209 = arith.truncf %201 : vector<8x128xf32> to vector<8x128xbf16>
    %c0_73 = arith.constant 0 : index
    %c0_74 = arith.constant 0 : index
    %210 = vector.load %arg2[%c0_73, %c0_74] : memref<128x512xbf16, #tpu.memory_space<vmem>>, vector<128x512xbf16>
    %cst_75 = arith.constant dense<0.000000e+00> : vector<8x512xf32>
    %211 = tpu.matmul %209, %210, %cst_75 {dimension_numbers = #tpu.dot_dimension_numbers<[1], [0], [0], [1], [0, 0, 1, 1], [], []>} : vector<8x128xbf16>, vector<128x512xbf16>, vector<8x512xf32> -> vector<8x512xf32>
    %212 = arith.addf %208, %211 : vector<8x512xf32>
    %213 = math.tanh %212 : vector<8x512xf32>
    %214 = vector.extract_strided_slice %213 {offsets = [0, 0], sizes = [8, 128], strides = [1, 1]} : vector<8x512xf32> to vector<8x128xf32>
    %cst_76 = arith.constant 5.000000e-01 : f32
    %215 = vector.broadcast %cst_76 : f32 to vector<8x128xf32>
    %216 = arith.mulf %215, %214 : vector<8x128xf32>
    %cst_77 = arith.constant 5.000000e-01 : f32
    %217 = vector.broadcast %cst_77 : f32 to vector<8x128xf32>
    %218 = arith.addf %216, %217 : vector<8x128xf32>
    %219 = vector.extract_strided_slice %213 {offsets = [0, 128], sizes = [8, 128], strides = [1, 1]} : vector<8x512xf32> to vector<8x128xf32>
    %cst_78 = arith.constant 5.000000e-01 : f32
    %220 = vector.broadcast %cst_78 : f32 to vector<8x128xf32>
    %221 = arith.mulf %220, %219 : vector<8x128xf32>
    %cst_79 = arith.constant 5.000000e-01 : f32
    %222 = vector.broadcast %cst_79 : f32 to vector<8x128xf32>
    %223 = arith.addf %221, %222 : vector<8x128xf32>
    %224 = vector.extract_strided_slice %213 {offsets = [0, 256], sizes = [8, 128], strides = [1, 1]} : vector<8x512xf32> to vector<8x128xf32>
    %225 = vector.extract_strided_slice %213 {offsets = [0, 384], sizes = [8, 128], strides = [1, 1]} : vector<8x512xf32> to vector<8x128xf32>
    %cst_80 = arith.constant 5.000000e-01 : f32
    %226 = vector.broadcast %cst_80 : f32 to vector<8x128xf32>
    %227 = arith.mulf %226, %225 : vector<8x128xf32>
    %cst_81 = arith.constant 5.000000e-01 : f32
    %228 = vector.broadcast %cst_81 : f32 to vector<8x128xf32>
    %229 = arith.addf %227, %228 : vector<8x128xf32>
    %230 = arith.mulf %223, %199 : vector<8x128xf32>
    %231 = arith.mulf %218, %224 : vector<8x128xf32>
    %232 = arith.addf %230, %231 : vector<8x128xf32>
    %233 = math.tanh %232 : vector<8x128xf32>
    %234 = arith.mulf %229, %233 : vector<8x128xf32>
    %c7 = arith.constant 7 : index
    %c0_82 = arith.constant 0 : index
    %c0_83 = arith.constant 0 : index
    %235 = vector.load %arg0[%c7, %c0_82, %c0_83] : memref<30x8x1xf32, #tpu.memory_space<vmem>>, vector<1x8x1xf32>
    %236 = vector.shape_cast %235 : vector<1x8x1xf32> to vector<8x1xf32>
    %237 = vector.broadcast %236 : vector<8x1xf32> to vector<8x512xf32>
    %238 = vector.broadcast %0 : vector<1x512xf32> to vector<8x512xf32>
    %239 = arith.mulf %237, %238 : vector<8x512xf32>
    %240 = vector.broadcast %1 : vector<1x512xf32> to vector<8x512xf32>
    %241 = arith.addf %239, %240 : vector<8x512xf32>
    %242 = arith.truncf %234 : vector<8x128xf32> to vector<8x128xbf16>
    %c0_84 = arith.constant 0 : index
    %c0_85 = arith.constant 0 : index
    %243 = vector.load %arg2[%c0_84, %c0_85] : memref<128x512xbf16, #tpu.memory_space<vmem>>, vector<128x512xbf16>
    %cst_86 = arith.constant dense<0.000000e+00> : vector<8x512xf32>
    %244 = tpu.matmul %242, %243, %cst_86 {dimension_numbers = #tpu.dot_dimension_numbers<[1], [0], [0], [1], [0, 0, 1, 1], [], []>} : vector<8x128xbf16>, vector<128x512xbf16>, vector<8x512xf32> -> vector<8x512xf32>
    %245 = arith.addf %241, %244 : vector<8x512xf32>
    %246 = math.tanh %245 : vector<8x512xf32>
    %247 = vector.extract_strided_slice %246 {offsets = [0, 0], sizes = [8, 128], strides = [1, 1]} : vector<8x512xf32> to vector<8x128xf32>
    %cst_87 = arith.constant 5.000000e-01 : f32
    %248 = vector.broadcast %cst_87 : f32 to vector<8x128xf32>
    %249 = arith.mulf %248, %247 : vector<8x128xf32>
    %cst_88 = arith.constant 5.000000e-01 : f32
    %250 = vector.broadcast %cst_88 : f32 to vector<8x128xf32>
    %251 = arith.addf %249, %250 : vector<8x128xf32>
    %252 = vector.extract_strided_slice %246 {offsets = [0, 128], sizes = [8, 128], strides = [1, 1]} : vector<8x512xf32> to vector<8x128xf32>
    %cst_89 = arith.constant 5.000000e-01 : f32
    %253 = vector.broadcast %cst_89 : f32 to vector<8x128xf32>
    %254 = arith.mulf %253, %252 : vector<8x128xf32>
    %cst_90 = arith.constant 5.000000e-01 : f32
    %255 = vector.broadcast %cst_90 : f32 to vector<8x128xf32>
    %256 = arith.addf %254, %255 : vector<8x128xf32>
    %257 = vector.extract_strided_slice %246 {offsets = [0, 256], sizes = [8, 128], strides = [1, 1]} : vector<8x512xf32> to vector<8x128xf32>
    %258 = vector.extract_strided_slice %246 {offsets = [0, 384], sizes = [8, 128], strides = [1, 1]} : vector<8x512xf32> to vector<8x128xf32>
    %cst_91 = arith.constant 5.000000e-01 : f32
    %259 = vector.broadcast %cst_91 : f32 to vector<8x128xf32>
    %260 = arith.mulf %259, %258 : vector<8x128xf32>
    %cst_92 = arith.constant 5.000000e-01 : f32
    %261 = vector.broadcast %cst_92 : f32 to vector<8x128xf32>
    %262 = arith.addf %260, %261 : vector<8x128xf32>
    %263 = arith.mulf %256, %232 : vector<8x128xf32>
    %264 = arith.mulf %251, %257 : vector<8x128xf32>
    %265 = arith.addf %263, %264 : vector<8x128xf32>
    %266 = math.tanh %265 : vector<8x128xf32>
    %267 = arith.mulf %262, %266 : vector<8x128xf32>
    %c8 = arith.constant 8 : index
    %c0_93 = arith.constant 0 : index
    %c0_94 = arith.constant 0 : index
    %268 = vector.load %arg0[%c8, %c0_93, %c0_94] : memref<30x8x1xf32, #tpu.memory_space<vmem>>, vector<1x8x1xf32>
    %269 = vector.shape_cast %268 : vector<1x8x1xf32> to vector<8x1xf32>
    %270 = vector.broadcast %269 : vector<8x1xf32> to vector<8x512xf32>
    %271 = vector.broadcast %0 : vector<1x512xf32> to vector<8x512xf32>
    %272 = arith.mulf %270, %271 : vector<8x512xf32>
    %273 = vector.broadcast %1 : vector<1x512xf32> to vector<8x512xf32>
    %274 = arith.addf %272, %273 : vector<8x512xf32>
    %275 = arith.truncf %267 : vector<8x128xf32> to vector<8x128xbf16>
    %c0_95 = arith.constant 0 : index
    %c0_96 = arith.constant 0 : index
    %276 = vector.load %arg2[%c0_95, %c0_96] : memref<128x512xbf16, #tpu.memory_space<vmem>>, vector<128x512xbf16>
    %cst_97 = arith.constant dense<0.000000e+00> : vector<8x512xf32>
    %277 = tpu.matmul %275, %276, %cst_97 {dimension_numbers = #tpu.dot_dimension_numbers<[1], [0], [0], [1], [0, 0, 1, 1], [], []>} : vector<8x128xbf16>, vector<128x512xbf16>, vector<8x512xf32> -> vector<8x512xf32>
    %278 = arith.addf %274, %277 : vector<8x512xf32>
    %279 = math.tanh %278 : vector<8x512xf32>
    %280 = vector.extract_strided_slice %279 {offsets = [0, 0], sizes = [8, 128], strides = [1, 1]} : vector<8x512xf32> to vector<8x128xf32>
    %cst_98 = arith.constant 5.000000e-01 : f32
    %281 = vector.broadcast %cst_98 : f32 to vector<8x128xf32>
    %282 = arith.mulf %281, %280 : vector<8x128xf32>
    %cst_99 = arith.constant 5.000000e-01 : f32
    %283 = vector.broadcast %cst_99 : f32 to vector<8x128xf32>
    %284 = arith.addf %282, %283 : vector<8x128xf32>
    %285 = vector.extract_strided_slice %279 {offsets = [0, 128], sizes = [8, 128], strides = [1, 1]} : vector<8x512xf32> to vector<8x128xf32>
    %cst_100 = arith.constant 5.000000e-01 : f32
    %286 = vector.broadcast %cst_100 : f32 to vector<8x128xf32>
    %287 = arith.mulf %286, %285 : vector<8x128xf32>
    %cst_101 = arith.constant 5.000000e-01 : f32
    %288 = vector.broadcast %cst_101 : f32 to vector<8x128xf32>
    %289 = arith.addf %287, %288 : vector<8x128xf32>
    %290 = vector.extract_strided_slice %279 {offsets = [0, 256], sizes = [8, 128], strides = [1, 1]} : vector<8x512xf32> to vector<8x128xf32>
    %291 = vector.extract_strided_slice %279 {offsets = [0, 384], sizes = [8, 128], strides = [1, 1]} : vector<8x512xf32> to vector<8x128xf32>
    %cst_102 = arith.constant 5.000000e-01 : f32
    %292 = vector.broadcast %cst_102 : f32 to vector<8x128xf32>
    %293 = arith.mulf %292, %291 : vector<8x128xf32>
    %cst_103 = arith.constant 5.000000e-01 : f32
    %294 = vector.broadcast %cst_103 : f32 to vector<8x128xf32>
    %295 = arith.addf %293, %294 : vector<8x128xf32>
    %296 = arith.mulf %289, %265 : vector<8x128xf32>
    %297 = arith.mulf %284, %290 : vector<8x128xf32>
    %298 = arith.addf %296, %297 : vector<8x128xf32>
    %299 = math.tanh %298 : vector<8x128xf32>
    %300 = arith.mulf %295, %299 : vector<8x128xf32>
    %c9 = arith.constant 9 : index
    %c0_104 = arith.constant 0 : index
    %c0_105 = arith.constant 0 : index
    %301 = vector.load %arg0[%c9, %c0_104, %c0_105] : memref<30x8x1xf32, #tpu.memory_space<vmem>>, vector<1x8x1xf32>
    %302 = vector.shape_cast %301 : vector<1x8x1xf32> to vector<8x1xf32>
    %303 = vector.broadcast %302 : vector<8x1xf32> to vector<8x512xf32>
    %304 = vector.broadcast %0 : vector<1x512xf32> to vector<8x512xf32>
    %305 = arith.mulf %303, %304 : vector<8x512xf32>
    %306 = vector.broadcast %1 : vector<1x512xf32> to vector<8x512xf32>
    %307 = arith.addf %305, %306 : vector<8x512xf32>
    %308 = arith.truncf %300 : vector<8x128xf32> to vector<8x128xbf16>
    %c0_106 = arith.constant 0 : index
    %c0_107 = arith.constant 0 : index
    %309 = vector.load %arg2[%c0_106, %c0_107] : memref<128x512xbf16, #tpu.memory_space<vmem>>, vector<128x512xbf16>
    %cst_108 = arith.constant dense<0.000000e+00> : vector<8x512xf32>
    %310 = tpu.matmul %308, %309, %cst_108 {dimension_numbers = #tpu.dot_dimension_numbers<[1], [0], [0], [1], [0, 0, 1, 1], [], []>} : vector<8x128xbf16>, vector<128x512xbf16>, vector<8x512xf32> -> vector<8x512xf32>
    %311 = arith.addf %307, %310 : vector<8x512xf32>
    %312 = math.tanh %311 : vector<8x512xf32>
    %313 = vector.extract_strided_slice %312 {offsets = [0, 0], sizes = [8, 128], strides = [1, 1]} : vector<8x512xf32> to vector<8x128xf32>
    %cst_109 = arith.constant 5.000000e-01 : f32
    %314 = vector.broadcast %cst_109 : f32 to vector<8x128xf32>
    %315 = arith.mulf %314, %313 : vector<8x128xf32>
    %cst_110 = arith.constant 5.000000e-01 : f32
    %316 = vector.broadcast %cst_110 : f32 to vector<8x128xf32>
    %317 = arith.addf %315, %316 : vector<8x128xf32>
    %318 = vector.extract_strided_slice %312 {offsets = [0, 128], sizes = [8, 128], strides = [1, 1]} : vector<8x512xf32> to vector<8x128xf32>
    %cst_111 = arith.constant 5.000000e-01 : f32
    %319 = vector.broadcast %cst_111 : f32 to vector<8x128xf32>
    %320 = arith.mulf %319, %318 : vector<8x128xf32>
    %cst_112 = arith.constant 5.000000e-01 : f32
    %321 = vector.broadcast %cst_112 : f32 to vector<8x128xf32>
    %322 = arith.addf %320, %321 : vector<8x128xf32>
    %323 = vector.extract_strided_slice %312 {offsets = [0, 256], sizes = [8, 128], strides = [1, 1]} : vector<8x512xf32> to vector<8x128xf32>
    %324 = vector.extract_strided_slice %312 {offsets = [0, 384], sizes = [8, 128], strides = [1, 1]} : vector<8x512xf32> to vector<8x128xf32>
    %cst_113 = arith.constant 5.000000e-01 : f32
    %325 = vector.broadcast %cst_113 : f32 to vector<8x128xf32>
    %326 = arith.mulf %325, %324 : vector<8x128xf32>
    %cst_114 = arith.constant 5.000000e-01 : f32
    %327 = vector.broadcast %cst_114 : f32 to vector<8x128xf32>
    %328 = arith.addf %326, %327 : vector<8x128xf32>
    %329 = arith.mulf %322, %298 : vector<8x128xf32>
    %330 = arith.mulf %317, %323 : vector<8x128xf32>
    %331 = arith.addf %329, %330 : vector<8x128xf32>
    %332 = math.tanh %331 : vector<8x128xf32>
    %333 = arith.mulf %328, %332 : vector<8x128xf32>
    %c10 = arith.constant 10 : index
    %c0_115 = arith.constant 0 : index
    %c0_116 = arith.constant 0 : index
    %334 = vector.load %arg0[%c10, %c0_115, %c0_116] : memref<30x8x1xf32, #tpu.memory_space<vmem>>, vector<1x8x1xf32>
    %335 = vector.shape_cast %334 : vector<1x8x1xf32> to vector<8x1xf32>
    %336 = vector.broadcast %335 : vector<8x1xf32> to vector<8x512xf32>
    %337 = vector.broadcast %0 : vector<1x512xf32> to vector<8x512xf32>
    %338 = arith.mulf %336, %337 : vector<8x512xf32>
    %339 = vector.broadcast %1 : vector<1x512xf32> to vector<8x512xf32>
    %340 = arith.addf %338, %339 : vector<8x512xf32>
    %341 = arith.truncf %333 : vector<8x128xf32> to vector<8x128xbf16>
    %c0_117 = arith.constant 0 : index
    %c0_118 = arith.constant 0 : index
    %342 = vector.load %arg2[%c0_117, %c0_118] : memref<128x512xbf16, #tpu.memory_space<vmem>>, vector<128x512xbf16>
    %cst_119 = arith.constant dense<0.000000e+00> : vector<8x512xf32>
    %343 = tpu.matmul %341, %342, %cst_119 {dimension_numbers = #tpu.dot_dimension_numbers<[1], [0], [0], [1], [0, 0, 1, 1], [], []>} : vector<8x128xbf16>, vector<128x512xbf16>, vector<8x512xf32> -> vector<8x512xf32>
    %344 = arith.addf %340, %343 : vector<8x512xf32>
    %345 = math.tanh %344 : vector<8x512xf32>
    %346 = vector.extract_strided_slice %345 {offsets = [0, 0], sizes = [8, 128], strides = [1, 1]} : vector<8x512xf32> to vector<8x128xf32>
    %cst_120 = arith.constant 5.000000e-01 : f32
    %347 = vector.broadcast %cst_120 : f32 to vector<8x128xf32>
    %348 = arith.mulf %347, %346 : vector<8x128xf32>
    %cst_121 = arith.constant 5.000000e-01 : f32
    %349 = vector.broadcast %cst_121 : f32 to vector<8x128xf32>
    %350 = arith.addf %348, %349 : vector<8x128xf32>
    %351 = vector.extract_strided_slice %345 {offsets = [0, 128], sizes = [8, 128], strides = [1, 1]} : vector<8x512xf32> to vector<8x128xf32>
    %cst_122 = arith.constant 5.000000e-01 : f32
    %352 = vector.broadcast %cst_122 : f32 to vector<8x128xf32>
    %353 = arith.mulf %352, %351 : vector<8x128xf32>
    %cst_123 = arith.constant 5.000000e-01 : f32
    %354 = vector.broadcast %cst_123 : f32 to vector<8x128xf32>
    %355 = arith.addf %353, %354 : vector<8x128xf32>
    %356 = vector.extract_strided_slice %345 {offsets = [0, 256], sizes = [8, 128], strides = [1, 1]} : vector<8x512xf32> to vector<8x128xf32>
    %357 = vector.extract_strided_slice %345 {offsets = [0, 384], sizes = [8, 128], strides = [1, 1]} : vector<8x512xf32> to vector<8x128xf32>
    %cst_124 = arith.constant 5.000000e-01 : f32
    %358 = vector.broadcast %cst_124 : f32 to vector<8x128xf32>
    %359 = arith.mulf %358, %357 : vector<8x128xf32>
    %cst_125 = arith.constant 5.000000e-01 : f32
    %360 = vector.broadcast %cst_125 : f32 to vector<8x128xf32>
    %361 = arith.addf %359, %360 : vector<8x128xf32>
    %362 = arith.mulf %355, %331 : vector<8x128xf32>
    %363 = arith.mulf %350, %356 : vector<8x128xf32>
    %364 = arith.addf %362, %363 : vector<8x128xf32>
    %365 = math.tanh %364 : vector<8x128xf32>
    %366 = arith.mulf %361, %365 : vector<8x128xf32>
    %c11 = arith.constant 11 : index
    %c0_126 = arith.constant 0 : index
    %c0_127 = arith.constant 0 : index
    %367 = vector.load %arg0[%c11, %c0_126, %c0_127] : memref<30x8x1xf32, #tpu.memory_space<vmem>>, vector<1x8x1xf32>
    %368 = vector.shape_cast %367 : vector<1x8x1xf32> to vector<8x1xf32>
    %369 = vector.broadcast %368 : vector<8x1xf32> to vector<8x512xf32>
    %370 = vector.broadcast %0 : vector<1x512xf32> to vector<8x512xf32>
    %371 = arith.mulf %369, %370 : vector<8x512xf32>
    %372 = vector.broadcast %1 : vector<1x512xf32> to vector<8x512xf32>
    %373 = arith.addf %371, %372 : vector<8x512xf32>
    %374 = arith.truncf %366 : vector<8x128xf32> to vector<8x128xbf16>
    %c0_128 = arith.constant 0 : index
    %c0_129 = arith.constant 0 : index
    %375 = vector.load %arg2[%c0_128, %c0_129] : memref<128x512xbf16, #tpu.memory_space<vmem>>, vector<128x512xbf16>
    %cst_130 = arith.constant dense<0.000000e+00> : vector<8x512xf32>
    %376 = tpu.matmul %374, %375, %cst_130 {dimension_numbers = #tpu.dot_dimension_numbers<[1], [0], [0], [1], [0, 0, 1, 1], [], []>} : vector<8x128xbf16>, vector<128x512xbf16>, vector<8x512xf32> -> vector<8x512xf32>
    %377 = arith.addf %373, %376 : vector<8x512xf32>
    %378 = math.tanh %377 : vector<8x512xf32>
    %379 = vector.extract_strided_slice %378 {offsets = [0, 0], sizes = [8, 128], strides = [1, 1]} : vector<8x512xf32> to vector<8x128xf32>
    %cst_131 = arith.constant 5.000000e-01 : f32
    %380 = vector.broadcast %cst_131 : f32 to vector<8x128xf32>
    %381 = arith.mulf %380, %379 : vector<8x128xf32>
    %cst_132 = arith.constant 5.000000e-01 : f32
    %382 = vector.broadcast %cst_132 : f32 to vector<8x128xf32>
    %383 = arith.addf %381, %382 : vector<8x128xf32>
    %384 = vector.extract_strided_slice %378 {offsets = [0, 128], sizes = [8, 128], strides = [1, 1]} : vector<8x512xf32> to vector<8x128xf32>
    %cst_133 = arith.constant 5.000000e-01 : f32
    %385 = vector.broadcast %cst_133 : f32 to vector<8x128xf32>
    %386 = arith.mulf %385, %384 : vector<8x128xf32>
    %cst_134 = arith.constant 5.000000e-01 : f32
    %387 = vector.broadcast %cst_134 : f32 to vector<8x128xf32>
    %388 = arith.addf %386, %387 : vector<8x128xf32>
    %389 = vector.extract_strided_slice %378 {offsets = [0, 256], sizes = [8, 128], strides = [1, 1]} : vector<8x512xf32> to vector<8x128xf32>
    %390 = vector.extract_strided_slice %378 {offsets = [0, 384], sizes = [8, 128], strides = [1, 1]} : vector<8x512xf32> to vector<8x128xf32>
    %cst_135 = arith.constant 5.000000e-01 : f32
    %391 = vector.broadcast %cst_135 : f32 to vector<8x128xf32>
    %392 = arith.mulf %391, %390 : vector<8x128xf32>
    %cst_136 = arith.constant 5.000000e-01 : f32
    %393 = vector.broadcast %cst_136 : f32 to vector<8x128xf32>
    %394 = arith.addf %392, %393 : vector<8x128xf32>
    %395 = arith.mulf %388, %364 : vector<8x128xf32>
    %396 = arith.mulf %383, %389 : vector<8x128xf32>
    %397 = arith.addf %395, %396 : vector<8x128xf32>
    %398 = math.tanh %397 : vector<8x128xf32>
    %399 = arith.mulf %394, %398 : vector<8x128xf32>
    %c12 = arith.constant 12 : index
    %c0_137 = arith.constant 0 : index
    %c0_138 = arith.constant 0 : index
    %400 = vector.load %arg0[%c12, %c0_137, %c0_138] : memref<30x8x1xf32, #tpu.memory_space<vmem>>, vector<1x8x1xf32>
    %401 = vector.shape_cast %400 : vector<1x8x1xf32> to vector<8x1xf32>
    %402 = vector.broadcast %401 : vector<8x1xf32> to vector<8x512xf32>
    %403 = vector.broadcast %0 : vector<1x512xf32> to vector<8x512xf32>
    %404 = arith.mulf %402, %403 : vector<8x512xf32>
    %405 = vector.broadcast %1 : vector<1x512xf32> to vector<8x512xf32>
    %406 = arith.addf %404, %405 : vector<8x512xf32>
    %407 = arith.truncf %399 : vector<8x128xf32> to vector<8x128xbf16>
    %c0_139 = arith.constant 0 : index
    %c0_140 = arith.constant 0 : index
    %408 = vector.load %arg2[%c0_139, %c0_140] : memref<128x512xbf16, #tpu.memory_space<vmem>>, vector<128x512xbf16>
    %cst_141 = arith.constant dense<0.000000e+00> : vector<8x512xf32>
    %409 = tpu.matmul %407, %408, %cst_141 {dimension_numbers = #tpu.dot_dimension_numbers<[1], [0], [0], [1], [0, 0, 1, 1], [], []>} : vector<8x128xbf16>, vector<128x512xbf16>, vector<8x512xf32> -> vector<8x512xf32>
    %410 = arith.addf %406, %409 : vector<8x512xf32>
    %411 = math.tanh %410 : vector<8x512xf32>
    %412 = vector.extract_strided_slice %411 {offsets = [0, 0], sizes = [8, 128], strides = [1, 1]} : vector<8x512xf32> to vector<8x128xf32>
    %cst_142 = arith.constant 5.000000e-01 : f32
    %413 = vector.broadcast %cst_142 : f32 to vector<8x128xf32>
    %414 = arith.mulf %413, %412 : vector<8x128xf32>
    %cst_143 = arith.constant 5.000000e-01 : f32
    %415 = vector.broadcast %cst_143 : f32 to vector<8x128xf32>
    %416 = arith.addf %414, %415 : vector<8x128xf32>
    %417 = vector.extract_strided_slice %411 {offsets = [0, 128], sizes = [8, 128], strides = [1, 1]} : vector<8x512xf32> to vector<8x128xf32>
    %cst_144 = arith.constant 5.000000e-01 : f32
    %418 = vector.broadcast %cst_144 : f32 to vector<8x128xf32>
    %419 = arith.mulf %418, %417 : vector<8x128xf32>
    %cst_145 = arith.constant 5.000000e-01 : f32
    %420 = vector.broadcast %cst_145 : f32 to vector<8x128xf32>
    %421 = arith.addf %419, %420 : vector<8x128xf32>
    %422 = vector.extract_strided_slice %411 {offsets = [0, 256], sizes = [8, 128], strides = [1, 1]} : vector<8x512xf32> to vector<8x128xf32>
    %423 = vector.extract_strided_slice %411 {offsets = [0, 384], sizes = [8, 128], strides = [1, 1]} : vector<8x512xf32> to vector<8x128xf32>
    %cst_146 = arith.constant 5.000000e-01 : f32
    %424 = vector.broadcast %cst_146 : f32 to vector<8x128xf32>
    %425 = arith.mulf %424, %423 : vector<8x128xf32>
    %cst_147 = arith.constant 5.000000e-01 : f32
    %426 = vector.broadcast %cst_147 : f32 to vector<8x128xf32>
    %427 = arith.addf %425, %426 : vector<8x128xf32>
    %428 = arith.mulf %421, %397 : vector<8x128xf32>
    %429 = arith.mulf %416, %422 : vector<8x128xf32>
    %430 = arith.addf %428, %429 : vector<8x128xf32>
    %431 = math.tanh %430 : vector<8x128xf32>
    %432 = arith.mulf %427, %431 : vector<8x128xf32>
    %c13 = arith.constant 13 : index
    %c0_148 = arith.constant 0 : index
    %c0_149 = arith.constant 0 : index
    %433 = vector.load %arg0[%c13, %c0_148, %c0_149] : memref<30x8x1xf32, #tpu.memory_space<vmem>>, vector<1x8x1xf32>
    %434 = vector.shape_cast %433 : vector<1x8x1xf32> to vector<8x1xf32>
    %435 = vector.broadcast %434 : vector<8x1xf32> to vector<8x512xf32>
    %436 = vector.broadcast %0 : vector<1x512xf32> to vector<8x512xf32>
    %437 = arith.mulf %435, %436 : vector<8x512xf32>
    %438 = vector.broadcast %1 : vector<1x512xf32> to vector<8x512xf32>
    %439 = arith.addf %437, %438 : vector<8x512xf32>
    %440 = arith.truncf %432 : vector<8x128xf32> to vector<8x128xbf16>
    %c0_150 = arith.constant 0 : index
    %c0_151 = arith.constant 0 : index
    %441 = vector.load %arg2[%c0_150, %c0_151] : memref<128x512xbf16, #tpu.memory_space<vmem>>, vector<128x512xbf16>
    %cst_152 = arith.constant dense<0.000000e+00> : vector<8x512xf32>
    %442 = tpu.matmul %440, %441, %cst_152 {dimension_numbers = #tpu.dot_dimension_numbers<[1], [0], [0], [1], [0, 0, 1, 1], [], []>} : vector<8x128xbf16>, vector<128x512xbf16>, vector<8x512xf32> -> vector<8x512xf32>
    %443 = arith.addf %439, %442 : vector<8x512xf32>
    %444 = math.tanh %443 : vector<8x512xf32>
    %445 = vector.extract_strided_slice %444 {offsets = [0, 0], sizes = [8, 128], strides = [1, 1]} : vector<8x512xf32> to vector<8x128xf32>
    %cst_153 = arith.constant 5.000000e-01 : f32
    %446 = vector.broadcast %cst_153 : f32 to vector<8x128xf32>
    %447 = arith.mulf %446, %445 : vector<8x128xf32>
    %cst_154 = arith.constant 5.000000e-01 : f32
    %448 = vector.broadcast %cst_154 : f32 to vector<8x128xf32>
    %449 = arith.addf %447, %448 : vector<8x128xf32>
    %450 = vector.extract_strided_slice %444 {offsets = [0, 128], sizes = [8, 128], strides = [1, 1]} : vector<8x512xf32> to vector<8x128xf32>
    %cst_155 = arith.constant 5.000000e-01 : f32
    %451 = vector.broadcast %cst_155 : f32 to vector<8x128xf32>
    %452 = arith.mulf %451, %450 : vector<8x128xf32>
    %cst_156 = arith.constant 5.000000e-01 : f32
    %453 = vector.broadcast %cst_156 : f32 to vector<8x128xf32>
    %454 = arith.addf %452, %453 : vector<8x128xf32>
    %455 = vector.extract_strided_slice %444 {offsets = [0, 256], sizes = [8, 128], strides = [1, 1]} : vector<8x512xf32> to vector<8x128xf32>
    %456 = vector.extract_strided_slice %444 {offsets = [0, 384], sizes = [8, 128], strides = [1, 1]} : vector<8x512xf32> to vector<8x128xf32>
    %cst_157 = arith.constant 5.000000e-01 : f32
    %457 = vector.broadcast %cst_157 : f32 to vector<8x128xf32>
    %458 = arith.mulf %457, %456 : vector<8x128xf32>
    %cst_158 = arith.constant 5.000000e-01 : f32
    %459 = vector.broadcast %cst_158 : f32 to vector<8x128xf32>
    %460 = arith.addf %458, %459 : vector<8x128xf32>
    %461 = arith.mulf %454, %430 : vector<8x128xf32>
    %462 = arith.mulf %449, %455 : vector<8x128xf32>
    %463 = arith.addf %461, %462 : vector<8x128xf32>
    %464 = math.tanh %463 : vector<8x128xf32>
    %465 = arith.mulf %460, %464 : vector<8x128xf32>
    %c14 = arith.constant 14 : index
    %c0_159 = arith.constant 0 : index
    %c0_160 = arith.constant 0 : index
    %466 = vector.load %arg0[%c14, %c0_159, %c0_160] : memref<30x8x1xf32, #tpu.memory_space<vmem>>, vector<1x8x1xf32>
    %467 = vector.shape_cast %466 : vector<1x8x1xf32> to vector<8x1xf32>
    %468 = vector.broadcast %467 : vector<8x1xf32> to vector<8x512xf32>
    %469 = vector.broadcast %0 : vector<1x512xf32> to vector<8x512xf32>
    %470 = arith.mulf %468, %469 : vector<8x512xf32>
    %471 = vector.broadcast %1 : vector<1x512xf32> to vector<8x512xf32>
    %472 = arith.addf %470, %471 : vector<8x512xf32>
    %473 = arith.truncf %465 : vector<8x128xf32> to vector<8x128xbf16>
    %c0_161 = arith.constant 0 : index
    %c0_162 = arith.constant 0 : index
    %474 = vector.load %arg2[%c0_161, %c0_162] : memref<128x512xbf16, #tpu.memory_space<vmem>>, vector<128x512xbf16>
    %cst_163 = arith.constant dense<0.000000e+00> : vector<8x512xf32>
    %475 = tpu.matmul %473, %474, %cst_163 {dimension_numbers = #tpu.dot_dimension_numbers<[1], [0], [0], [1], [0, 0, 1, 1], [], []>} : vector<8x128xbf16>, vector<128x512xbf16>, vector<8x512xf32> -> vector<8x512xf32>
    %476 = arith.addf %472, %475 : vector<8x512xf32>
    %477 = math.tanh %476 : vector<8x512xf32>
    %478 = vector.extract_strided_slice %477 {offsets = [0, 0], sizes = [8, 128], strides = [1, 1]} : vector<8x512xf32> to vector<8x128xf32>
    %cst_164 = arith.constant 5.000000e-01 : f32
    %479 = vector.broadcast %cst_164 : f32 to vector<8x128xf32>
    %480 = arith.mulf %479, %478 : vector<8x128xf32>
    %cst_165 = arith.constant 5.000000e-01 : f32
    %481 = vector.broadcast %cst_165 : f32 to vector<8x128xf32>
    %482 = arith.addf %480, %481 : vector<8x128xf32>
    %483 = vector.extract_strided_slice %477 {offsets = [0, 128], sizes = [8, 128], strides = [1, 1]} : vector<8x512xf32> to vector<8x128xf32>
    %cst_166 = arith.constant 5.000000e-01 : f32
    %484 = vector.broadcast %cst_166 : f32 to vector<8x128xf32>
    %485 = arith.mulf %484, %483 : vector<8x128xf32>
    %cst_167 = arith.constant 5.000000e-01 : f32
    %486 = vector.broadcast %cst_167 : f32 to vector<8x128xf32>
    %487 = arith.addf %485, %486 : vector<8x128xf32>
    %488 = vector.extract_strided_slice %477 {offsets = [0, 256], sizes = [8, 128], strides = [1, 1]} : vector<8x512xf32> to vector<8x128xf32>
    %489 = vector.extract_strided_slice %477 {offsets = [0, 384], sizes = [8, 128], strides = [1, 1]} : vector<8x512xf32> to vector<8x128xf32>
    %cst_168 = arith.constant 5.000000e-01 : f32
    %490 = vector.broadcast %cst_168 : f32 to vector<8x128xf32>
    %491 = arith.mulf %490, %489 : vector<8x128xf32>
    %cst_169 = arith.constant 5.000000e-01 : f32
    %492 = vector.broadcast %cst_169 : f32 to vector<8x128xf32>
    %493 = arith.addf %491, %492 : vector<8x128xf32>
    %494 = arith.mulf %487, %463 : vector<8x128xf32>
    %495 = arith.mulf %482, %488 : vector<8x128xf32>
    %496 = arith.addf %494, %495 : vector<8x128xf32>
    %497 = math.tanh %496 : vector<8x128xf32>
    %498 = arith.mulf %493, %497 : vector<8x128xf32>
    %c15 = arith.constant 15 : index
    %c0_170 = arith.constant 0 : index
    %c0_171 = arith.constant 0 : index
    %499 = vector.load %arg0[%c15, %c0_170, %c0_171] : memref<30x8x1xf32, #tpu.memory_space<vmem>>, vector<1x8x1xf32>
    %500 = vector.shape_cast %499 : vector<1x8x1xf32> to vector<8x1xf32>
    %501 = vector.broadcast %500 : vector<8x1xf32> to vector<8x512xf32>
    %502 = vector.broadcast %0 : vector<1x512xf32> to vector<8x512xf32>
    %503 = arith.mulf %501, %502 : vector<8x512xf32>
    %504 = vector.broadcast %1 : vector<1x512xf32> to vector<8x512xf32>
    %505 = arith.addf %503, %504 : vector<8x512xf32>
    %506 = arith.truncf %498 : vector<8x128xf32> to vector<8x128xbf16>
    %c0_172 = arith.constant 0 : index
    %c0_173 = arith.constant 0 : index
    %507 = vector.load %arg2[%c0_172, %c0_173] : memref<128x512xbf16, #tpu.memory_space<vmem>>, vector<128x512xbf16>
    %cst_174 = arith.constant dense<0.000000e+00> : vector<8x512xf32>
    %508 = tpu.matmul %506, %507, %cst_174 {dimension_numbers = #tpu.dot_dimension_numbers<[1], [0], [0], [1], [0, 0, 1, 1], [], []>} : vector<8x128xbf16>, vector<128x512xbf16>, vector<8x512xf32> -> vector<8x512xf32>
    %509 = arith.addf %505, %508 : vector<8x512xf32>
    %510 = math.tanh %509 : vector<8x512xf32>
    %511 = vector.extract_strided_slice %510 {offsets = [0, 0], sizes = [8, 128], strides = [1, 1]} : vector<8x512xf32> to vector<8x128xf32>
    %cst_175 = arith.constant 5.000000e-01 : f32
    %512 = vector.broadcast %cst_175 : f32 to vector<8x128xf32>
    %513 = arith.mulf %512, %511 : vector<8x128xf32>
    %cst_176 = arith.constant 5.000000e-01 : f32
    %514 = vector.broadcast %cst_176 : f32 to vector<8x128xf32>
    %515 = arith.addf %513, %514 : vector<8x128xf32>
    %516 = vector.extract_strided_slice %510 {offsets = [0, 128], sizes = [8, 128], strides = [1, 1]} : vector<8x512xf32> to vector<8x128xf32>
    %cst_177 = arith.constant 5.000000e-01 : f32
    %517 = vector.broadcast %cst_177 : f32 to vector<8x128xf32>
    %518 = arith.mulf %517, %516 : vector<8x128xf32>
    %cst_178 = arith.constant 5.000000e-01 : f32
    %519 = vector.broadcast %cst_178 : f32 to vector<8x128xf32>
    %520 = arith.addf %518, %519 : vector<8x128xf32>
    %521 = vector.extract_strided_slice %510 {offsets = [0, 256], sizes = [8, 128], strides = [1, 1]} : vector<8x512xf32> to vector<8x128xf32>
    %522 = vector.extract_strided_slice %510 {offsets = [0, 384], sizes = [8, 128], strides = [1, 1]} : vector<8x512xf32> to vector<8x128xf32>
    %cst_179 = arith.constant 5.000000e-01 : f32
    %523 = vector.broadcast %cst_179 : f32 to vector<8x128xf32>
    %524 = arith.mulf %523, %522 : vector<8x128xf32>
    %cst_180 = arith.constant 5.000000e-01 : f32
    %525 = vector.broadcast %cst_180 : f32 to vector<8x128xf32>
    %526 = arith.addf %524, %525 : vector<8x128xf32>
    %527 = arith.mulf %520, %496 : vector<8x128xf32>
    %528 = arith.mulf %515, %521 : vector<8x128xf32>
    %529 = arith.addf %527, %528 : vector<8x128xf32>
    %530 = math.tanh %529 : vector<8x128xf32>
    %531 = arith.mulf %526, %530 : vector<8x128xf32>
    %c16 = arith.constant 16 : index
    %c0_181 = arith.constant 0 : index
    %c0_182 = arith.constant 0 : index
    %532 = vector.load %arg0[%c16, %c0_181, %c0_182] : memref<30x8x1xf32, #tpu.memory_space<vmem>>, vector<1x8x1xf32>
    %533 = vector.shape_cast %532 : vector<1x8x1xf32> to vector<8x1xf32>
    %534 = vector.broadcast %533 : vector<8x1xf32> to vector<8x512xf32>
    %535 = vector.broadcast %0 : vector<1x512xf32> to vector<8x512xf32>
    %536 = arith.mulf %534, %535 : vector<8x512xf32>
    %537 = vector.broadcast %1 : vector<1x512xf32> to vector<8x512xf32>
    %538 = arith.addf %536, %537 : vector<8x512xf32>
    %539 = arith.truncf %531 : vector<8x128xf32> to vector<8x128xbf16>
    %c0_183 = arith.constant 0 : index
    %c0_184 = arith.constant 0 : index
    %540 = vector.load %arg2[%c0_183, %c0_184] : memref<128x512xbf16, #tpu.memory_space<vmem>>, vector<128x512xbf16>
    %cst_185 = arith.constant dense<0.000000e+00> : vector<8x512xf32>
    %541 = tpu.matmul %539, %540, %cst_185 {dimension_numbers = #tpu.dot_dimension_numbers<[1], [0], [0], [1], [0, 0, 1, 1], [], []>} : vector<8x128xbf16>, vector<128x512xbf16>, vector<8x512xf32> -> vector<8x512xf32>
    %542 = arith.addf %538, %541 : vector<8x512xf32>
    %543 = math.tanh %542 : vector<8x512xf32>
    %544 = vector.extract_strided_slice %543 {offsets = [0, 0], sizes = [8, 128], strides = [1, 1]} : vector<8x512xf32> to vector<8x128xf32>
    %cst_186 = arith.constant 5.000000e-01 : f32
    %545 = vector.broadcast %cst_186 : f32 to vector<8x128xf32>
    %546 = arith.mulf %545, %544 : vector<8x128xf32>
    %cst_187 = arith.constant 5.000000e-01 : f32
    %547 = vector.broadcast %cst_187 : f32 to vector<8x128xf32>
    %548 = arith.addf %546, %547 : vector<8x128xf32>
    %549 = vector.extract_strided_slice %543 {offsets = [0, 128], sizes = [8, 128], strides = [1, 1]} : vector<8x512xf32> to vector<8x128xf32>
    %cst_188 = arith.constant 5.000000e-01 : f32
    %550 = vector.broadcast %cst_188 : f32 to vector<8x128xf32>
    %551 = arith.mulf %550, %549 : vector<8x128xf32>
    %cst_189 = arith.constant 5.000000e-01 : f32
    %552 = vector.broadcast %cst_189 : f32 to vector<8x128xf32>
    %553 = arith.addf %551, %552 : vector<8x128xf32>
    %554 = vector.extract_strided_slice %543 {offsets = [0, 256], sizes = [8, 128], strides = [1, 1]} : vector<8x512xf32> to vector<8x128xf32>
    %555 = vector.extract_strided_slice %543 {offsets = [0, 384], sizes = [8, 128], strides = [1, 1]} : vector<8x512xf32> to vector<8x128xf32>
    %cst_190 = arith.constant 5.000000e-01 : f32
    %556 = vector.broadcast %cst_190 : f32 to vector<8x128xf32>
    %557 = arith.mulf %556, %555 : vector<8x128xf32>
    %cst_191 = arith.constant 5.000000e-01 : f32
    %558 = vector.broadcast %cst_191 : f32 to vector<8x128xf32>
    %559 = arith.addf %557, %558 : vector<8x128xf32>
    %560 = arith.mulf %553, %529 : vector<8x128xf32>
    %561 = arith.mulf %548, %554 : vector<8x128xf32>
    %562 = arith.addf %560, %561 : vector<8x128xf32>
    %563 = math.tanh %562 : vector<8x128xf32>
    %564 = arith.mulf %559, %563 : vector<8x128xf32>
    %c17 = arith.constant 17 : index
    %c0_192 = arith.constant 0 : index
    %c0_193 = arith.constant 0 : index
    %565 = vector.load %arg0[%c17, %c0_192, %c0_193] : memref<30x8x1xf32, #tpu.memory_space<vmem>>, vector<1x8x1xf32>
    %566 = vector.shape_cast %565 : vector<1x8x1xf32> to vector<8x1xf32>
    %567 = vector.broadcast %566 : vector<8x1xf32> to vector<8x512xf32>
    %568 = vector.broadcast %0 : vector<1x512xf32> to vector<8x512xf32>
    %569 = arith.mulf %567, %568 : vector<8x512xf32>
    %570 = vector.broadcast %1 : vector<1x512xf32> to vector<8x512xf32>
    %571 = arith.addf %569, %570 : vector<8x512xf32>
    %572 = arith.truncf %564 : vector<8x128xf32> to vector<8x128xbf16>
    %c0_194 = arith.constant 0 : index
    %c0_195 = arith.constant 0 : index
    %573 = vector.load %arg2[%c0_194, %c0_195] : memref<128x512xbf16, #tpu.memory_space<vmem>>, vector<128x512xbf16>
    %cst_196 = arith.constant dense<0.000000e+00> : vector<8x512xf32>
    %574 = tpu.matmul %572, %573, %cst_196 {dimension_numbers = #tpu.dot_dimension_numbers<[1], [0], [0], [1], [0, 0, 1, 1], [], []>} : vector<8x128xbf16>, vector<128x512xbf16>, vector<8x512xf32> -> vector<8x512xf32>
    %575 = arith.addf %571, %574 : vector<8x512xf32>
    %576 = math.tanh %575 : vector<8x512xf32>
    %577 = vector.extract_strided_slice %576 {offsets = [0, 0], sizes = [8, 128], strides = [1, 1]} : vector<8x512xf32> to vector<8x128xf32>
    %cst_197 = arith.constant 5.000000e-01 : f32
    %578 = vector.broadcast %cst_197 : f32 to vector<8x128xf32>
    %579 = arith.mulf %578, %577 : vector<8x128xf32>
    %cst_198 = arith.constant 5.000000e-01 : f32
    %580 = vector.broadcast %cst_198 : f32 to vector<8x128xf32>
    %581 = arith.addf %579, %580 : vector<8x128xf32>
    %582 = vector.extract_strided_slice %576 {offsets = [0, 128], sizes = [8, 128], strides = [1, 1]} : vector<8x512xf32> to vector<8x128xf32>
    %cst_199 = arith.constant 5.000000e-01 : f32
    %583 = vector.broadcast %cst_199 : f32 to vector<8x128xf32>
    %584 = arith.mulf %583, %582 : vector<8x128xf32>
    %cst_200 = arith.constant 5.000000e-01 : f32
    %585 = vector.broadcast %cst_200 : f32 to vector<8x128xf32>
    %586 = arith.addf %584, %585 : vector<8x128xf32>
    %587 = vector.extract_strided_slice %576 {offsets = [0, 256], sizes = [8, 128], strides = [1, 1]} : vector<8x512xf32> to vector<8x128xf32>
    %588 = vector.extract_strided_slice %576 {offsets = [0, 384], sizes = [8, 128], strides = [1, 1]} : vector<8x512xf32> to vector<8x128xf32>
    %cst_201 = arith.constant 5.000000e-01 : f32
    %589 = vector.broadcast %cst_201 : f32 to vector<8x128xf32>
    %590 = arith.mulf %589, %588 : vector<8x128xf32>
    %cst_202 = arith.constant 5.000000e-01 : f32
    %591 = vector.broadcast %cst_202 : f32 to vector<8x128xf32>
    %592 = arith.addf %590, %591 : vector<8x128xf32>
    %593 = arith.mulf %586, %562 : vector<8x128xf32>
    %594 = arith.mulf %581, %587 : vector<8x128xf32>
    %595 = arith.addf %593, %594 : vector<8x128xf32>
    %596 = math.tanh %595 : vector<8x128xf32>
    %597 = arith.mulf %592, %596 : vector<8x128xf32>
    %c18 = arith.constant 18 : index
    %c0_203 = arith.constant 0 : index
    %c0_204 = arith.constant 0 : index
    %598 = vector.load %arg0[%c18, %c0_203, %c0_204] : memref<30x8x1xf32, #tpu.memory_space<vmem>>, vector<1x8x1xf32>
    %599 = vector.shape_cast %598 : vector<1x8x1xf32> to vector<8x1xf32>
    %600 = vector.broadcast %599 : vector<8x1xf32> to vector<8x512xf32>
    %601 = vector.broadcast %0 : vector<1x512xf32> to vector<8x512xf32>
    %602 = arith.mulf %600, %601 : vector<8x512xf32>
    %603 = vector.broadcast %1 : vector<1x512xf32> to vector<8x512xf32>
    %604 = arith.addf %602, %603 : vector<8x512xf32>
    %605 = arith.truncf %597 : vector<8x128xf32> to vector<8x128xbf16>
    %c0_205 = arith.constant 0 : index
    %c0_206 = arith.constant 0 : index
    %606 = vector.load %arg2[%c0_205, %c0_206] : memref<128x512xbf16, #tpu.memory_space<vmem>>, vector<128x512xbf16>
    %cst_207 = arith.constant dense<0.000000e+00> : vector<8x512xf32>
    %607 = tpu.matmul %605, %606, %cst_207 {dimension_numbers = #tpu.dot_dimension_numbers<[1], [0], [0], [1], [0, 0, 1, 1], [], []>} : vector<8x128xbf16>, vector<128x512xbf16>, vector<8x512xf32> -> vector<8x512xf32>
    %608 = arith.addf %604, %607 : vector<8x512xf32>
    %609 = math.tanh %608 : vector<8x512xf32>
    %610 = vector.extract_strided_slice %609 {offsets = [0, 0], sizes = [8, 128], strides = [1, 1]} : vector<8x512xf32> to vector<8x128xf32>
    %cst_208 = arith.constant 5.000000e-01 : f32
    %611 = vector.broadcast %cst_208 : f32 to vector<8x128xf32>
    %612 = arith.mulf %611, %610 : vector<8x128xf32>
    %cst_209 = arith.constant 5.000000e-01 : f32
    %613 = vector.broadcast %cst_209 : f32 to vector<8x128xf32>
    %614 = arith.addf %612, %613 : vector<8x128xf32>
    %615 = vector.extract_strided_slice %609 {offsets = [0, 128], sizes = [8, 128], strides = [1, 1]} : vector<8x512xf32> to vector<8x128xf32>
    %cst_210 = arith.constant 5.000000e-01 : f32
    %616 = vector.broadcast %cst_210 : f32 to vector<8x128xf32>
    %617 = arith.mulf %616, %615 : vector<8x128xf32>
    %cst_211 = arith.constant 5.000000e-01 : f32
    %618 = vector.broadcast %cst_211 : f32 to vector<8x128xf32>
    %619 = arith.addf %617, %618 : vector<8x128xf32>
    %620 = vector.extract_strided_slice %609 {offsets = [0, 256], sizes = [8, 128], strides = [1, 1]} : vector<8x512xf32> to vector<8x128xf32>
    %621 = vector.extract_strided_slice %609 {offsets = [0, 384], sizes = [8, 128], strides = [1, 1]} : vector<8x512xf32> to vector<8x128xf32>
    %cst_212 = arith.constant 5.000000e-01 : f32
    %622 = vector.broadcast %cst_212 : f32 to vector<8x128xf32>
    %623 = arith.mulf %622, %621 : vector<8x128xf32>
    %cst_213 = arith.constant 5.000000e-01 : f32
    %624 = vector.broadcast %cst_213 : f32 to vector<8x128xf32>
    %625 = arith.addf %623, %624 : vector<8x128xf32>
    %626 = arith.mulf %619, %595 : vector<8x128xf32>
    %627 = arith.mulf %614, %620 : vector<8x128xf32>
    %628 = arith.addf %626, %627 : vector<8x128xf32>
    %629 = math.tanh %628 : vector<8x128xf32>
    %630 = arith.mulf %625, %629 : vector<8x128xf32>
    %c19 = arith.constant 19 : index
    %c0_214 = arith.constant 0 : index
    %c0_215 = arith.constant 0 : index
    %631 = vector.load %arg0[%c19, %c0_214, %c0_215] : memref<30x8x1xf32, #tpu.memory_space<vmem>>, vector<1x8x1xf32>
    %632 = vector.shape_cast %631 : vector<1x8x1xf32> to vector<8x1xf32>
    %633 = vector.broadcast %632 : vector<8x1xf32> to vector<8x512xf32>
    %634 = vector.broadcast %0 : vector<1x512xf32> to vector<8x512xf32>
    %635 = arith.mulf %633, %634 : vector<8x512xf32>
    %636 = vector.broadcast %1 : vector<1x512xf32> to vector<8x512xf32>
    %637 = arith.addf %635, %636 : vector<8x512xf32>
    %638 = arith.truncf %630 : vector<8x128xf32> to vector<8x128xbf16>
    %c0_216 = arith.constant 0 : index
    %c0_217 = arith.constant 0 : index
    %639 = vector.load %arg2[%c0_216, %c0_217] : memref<128x512xbf16, #tpu.memory_space<vmem>>, vector<128x512xbf16>
    %cst_218 = arith.constant dense<0.000000e+00> : vector<8x512xf32>
    %640 = tpu.matmul %638, %639, %cst_218 {dimension_numbers = #tpu.dot_dimension_numbers<[1], [0], [0], [1], [0, 0, 1, 1], [], []>} : vector<8x128xbf16>, vector<128x512xbf16>, vector<8x512xf32> -> vector<8x512xf32>
    %641 = arith.addf %637, %640 : vector<8x512xf32>
    %642 = math.tanh %641 : vector<8x512xf32>
    %643 = vector.extract_strided_slice %642 {offsets = [0, 0], sizes = [8, 128], strides = [1, 1]} : vector<8x512xf32> to vector<8x128xf32>
    %cst_219 = arith.constant 5.000000e-01 : f32
    %644 = vector.broadcast %cst_219 : f32 to vector<8x128xf32>
    %645 = arith.mulf %644, %643 : vector<8x128xf32>
    %cst_220 = arith.constant 5.000000e-01 : f32
    %646 = vector.broadcast %cst_220 : f32 to vector<8x128xf32>
    %647 = arith.addf %645, %646 : vector<8x128xf32>
    %648 = vector.extract_strided_slice %642 {offsets = [0, 128], sizes = [8, 128], strides = [1, 1]} : vector<8x512xf32> to vector<8x128xf32>
    %cst_221 = arith.constant 5.000000e-01 : f32
    %649 = vector.broadcast %cst_221 : f32 to vector<8x128xf32>
    %650 = arith.mulf %649, %648 : vector<8x128xf32>
    %cst_222 = arith.constant 5.000000e-01 : f32
    %651 = vector.broadcast %cst_222 : f32 to vector<8x128xf32>
    %652 = arith.addf %650, %651 : vector<8x128xf32>
    %653 = vector.extract_strided_slice %642 {offsets = [0, 256], sizes = [8, 128], strides = [1, 1]} : vector<8x512xf32> to vector<8x128xf32>
    %654 = vector.extract_strided_slice %642 {offsets = [0, 384], sizes = [8, 128], strides = [1, 1]} : vector<8x512xf32> to vector<8x128xf32>
    %cst_223 = arith.constant 5.000000e-01 : f32
    %655 = vector.broadcast %cst_223 : f32 to vector<8x128xf32>
    %656 = arith.mulf %655, %654 : vector<8x128xf32>
    %cst_224 = arith.constant 5.000000e-01 : f32
    %657 = vector.broadcast %cst_224 : f32 to vector<8x128xf32>
    %658 = arith.addf %656, %657 : vector<8x128xf32>
    %659 = arith.mulf %652, %628 : vector<8x128xf32>
    %660 = arith.mulf %647, %653 : vector<8x128xf32>
    %661 = arith.addf %659, %660 : vector<8x128xf32>
    %662 = math.tanh %661 : vector<8x128xf32>
    %663 = arith.mulf %658, %662 : vector<8x128xf32>
    %c20 = arith.constant 20 : index
    %c0_225 = arith.constant 0 : index
    %c0_226 = arith.constant 0 : index
    %664 = vector.load %arg0[%c20, %c0_225, %c0_226] : memref<30x8x1xf32, #tpu.memory_space<vmem>>, vector<1x8x1xf32>
    %665 = vector.shape_cast %664 : vector<1x8x1xf32> to vector<8x1xf32>
    %666 = vector.broadcast %665 : vector<8x1xf32> to vector<8x512xf32>
    %667 = vector.broadcast %0 : vector<1x512xf32> to vector<8x512xf32>
    %668 = arith.mulf %666, %667 : vector<8x512xf32>
    %669 = vector.broadcast %1 : vector<1x512xf32> to vector<8x512xf32>
    %670 = arith.addf %668, %669 : vector<8x512xf32>
    %671 = arith.truncf %663 : vector<8x128xf32> to vector<8x128xbf16>
    %c0_227 = arith.constant 0 : index
    %c0_228 = arith.constant 0 : index
    %672 = vector.load %arg2[%c0_227, %c0_228] : memref<128x512xbf16, #tpu.memory_space<vmem>>, vector<128x512xbf16>
    %cst_229 = arith.constant dense<0.000000e+00> : vector<8x512xf32>
    %673 = tpu.matmul %671, %672, %cst_229 {dimension_numbers = #tpu.dot_dimension_numbers<[1], [0], [0], [1], [0, 0, 1, 1], [], []>} : vector<8x128xbf16>, vector<128x512xbf16>, vector<8x512xf32> -> vector<8x512xf32>
    %674 = arith.addf %670, %673 : vector<8x512xf32>
    %675 = math.tanh %674 : vector<8x512xf32>
    %676 = vector.extract_strided_slice %675 {offsets = [0, 0], sizes = [8, 128], strides = [1, 1]} : vector<8x512xf32> to vector<8x128xf32>
    %cst_230 = arith.constant 5.000000e-01 : f32
    %677 = vector.broadcast %cst_230 : f32 to vector<8x128xf32>
    %678 = arith.mulf %677, %676 : vector<8x128xf32>
    %cst_231 = arith.constant 5.000000e-01 : f32
    %679 = vector.broadcast %cst_231 : f32 to vector<8x128xf32>
    %680 = arith.addf %678, %679 : vector<8x128xf32>
    %681 = vector.extract_strided_slice %675 {offsets = [0, 128], sizes = [8, 128], strides = [1, 1]} : vector<8x512xf32> to vector<8x128xf32>
    %cst_232 = arith.constant 5.000000e-01 : f32
    %682 = vector.broadcast %cst_232 : f32 to vector<8x128xf32>
    %683 = arith.mulf %682, %681 : vector<8x128xf32>
    %cst_233 = arith.constant 5.000000e-01 : f32
    %684 = vector.broadcast %cst_233 : f32 to vector<8x128xf32>
    %685 = arith.addf %683, %684 : vector<8x128xf32>
    %686 = vector.extract_strided_slice %675 {offsets = [0, 256], sizes = [8, 128], strides = [1, 1]} : vector<8x512xf32> to vector<8x128xf32>
    %687 = vector.extract_strided_slice %675 {offsets = [0, 384], sizes = [8, 128], strides = [1, 1]} : vector<8x512xf32> to vector<8x128xf32>
    %cst_234 = arith.constant 5.000000e-01 : f32
    %688 = vector.broadcast %cst_234 : f32 to vector<8x128xf32>
    %689 = arith.mulf %688, %687 : vector<8x128xf32>
    %cst_235 = arith.constant 5.000000e-01 : f32
    %690 = vector.broadcast %cst_235 : f32 to vector<8x128xf32>
    %691 = arith.addf %689, %690 : vector<8x128xf32>
    %692 = arith.mulf %685, %661 : vector<8x128xf32>
    %693 = arith.mulf %680, %686 : vector<8x128xf32>
    %694 = arith.addf %692, %693 : vector<8x128xf32>
    %695 = math.tanh %694 : vector<8x128xf32>
    %696 = arith.mulf %691, %695 : vector<8x128xf32>
    %c21 = arith.constant 21 : index
    %c0_236 = arith.constant 0 : index
    %c0_237 = arith.constant 0 : index
    %697 = vector.load %arg0[%c21, %c0_236, %c0_237] : memref<30x8x1xf32, #tpu.memory_space<vmem>>, vector<1x8x1xf32>
    %698 = vector.shape_cast %697 : vector<1x8x1xf32> to vector<8x1xf32>
    %699 = vector.broadcast %698 : vector<8x1xf32> to vector<8x512xf32>
    %700 = vector.broadcast %0 : vector<1x512xf32> to vector<8x512xf32>
    %701 = arith.mulf %699, %700 : vector<8x512xf32>
    %702 = vector.broadcast %1 : vector<1x512xf32> to vector<8x512xf32>
    %703 = arith.addf %701, %702 : vector<8x512xf32>
    %704 = arith.truncf %696 : vector<8x128xf32> to vector<8x128xbf16>
    %c0_238 = arith.constant 0 : index
    %c0_239 = arith.constant 0 : index
    %705 = vector.load %arg2[%c0_238, %c0_239] : memref<128x512xbf16, #tpu.memory_space<vmem>>, vector<128x512xbf16>
    %cst_240 = arith.constant dense<0.000000e+00> : vector<8x512xf32>
    %706 = tpu.matmul %704, %705, %cst_240 {dimension_numbers = #tpu.dot_dimension_numbers<[1], [0], [0], [1], [0, 0, 1, 1], [], []>} : vector<8x128xbf16>, vector<128x512xbf16>, vector<8x512xf32> -> vector<8x512xf32>
    %707 = arith.addf %703, %706 : vector<8x512xf32>
    %708 = math.tanh %707 : vector<8x512xf32>
    %709 = vector.extract_strided_slice %708 {offsets = [0, 0], sizes = [8, 128], strides = [1, 1]} : vector<8x512xf32> to vector<8x128xf32>
    %cst_241 = arith.constant 5.000000e-01 : f32
    %710 = vector.broadcast %cst_241 : f32 to vector<8x128xf32>
    %711 = arith.mulf %710, %709 : vector<8x128xf32>
    %cst_242 = arith.constant 5.000000e-01 : f32
    %712 = vector.broadcast %cst_242 : f32 to vector<8x128xf32>
    %713 = arith.addf %711, %712 : vector<8x128xf32>
    %714 = vector.extract_strided_slice %708 {offsets = [0, 128], sizes = [8, 128], strides = [1, 1]} : vector<8x512xf32> to vector<8x128xf32>
    %cst_243 = arith.constant 5.000000e-01 : f32
    %715 = vector.broadcast %cst_243 : f32 to vector<8x128xf32>
    %716 = arith.mulf %715, %714 : vector<8x128xf32>
    %cst_244 = arith.constant 5.000000e-01 : f32
    %717 = vector.broadcast %cst_244 : f32 to vector<8x128xf32>
    %718 = arith.addf %716, %717 : vector<8x128xf32>
    %719 = vector.extract_strided_slice %708 {offsets = [0, 256], sizes = [8, 128], strides = [1, 1]} : vector<8x512xf32> to vector<8x128xf32>
    %720 = vector.extract_strided_slice %708 {offsets = [0, 384], sizes = [8, 128], strides = [1, 1]} : vector<8x512xf32> to vector<8x128xf32>
    %cst_245 = arith.constant 5.000000e-01 : f32
    %721 = vector.broadcast %cst_245 : f32 to vector<8x128xf32>
    %722 = arith.mulf %721, %720 : vector<8x128xf32>
    %cst_246 = arith.constant 5.000000e-01 : f32
    %723 = vector.broadcast %cst_246 : f32 to vector<8x128xf32>
    %724 = arith.addf %722, %723 : vector<8x128xf32>
    %725 = arith.mulf %718, %694 : vector<8x128xf32>
    %726 = arith.mulf %713, %719 : vector<8x128xf32>
    %727 = arith.addf %725, %726 : vector<8x128xf32>
    %728 = math.tanh %727 : vector<8x128xf32>
    %729 = arith.mulf %724, %728 : vector<8x128xf32>
    %c22 = arith.constant 22 : index
    %c0_247 = arith.constant 0 : index
    %c0_248 = arith.constant 0 : index
    %730 = vector.load %arg0[%c22, %c0_247, %c0_248] : memref<30x8x1xf32, #tpu.memory_space<vmem>>, vector<1x8x1xf32>
    %731 = vector.shape_cast %730 : vector<1x8x1xf32> to vector<8x1xf32>
    %732 = vector.broadcast %731 : vector<8x1xf32> to vector<8x512xf32>
    %733 = vector.broadcast %0 : vector<1x512xf32> to vector<8x512xf32>
    %734 = arith.mulf %732, %733 : vector<8x512xf32>
    %735 = vector.broadcast %1 : vector<1x512xf32> to vector<8x512xf32>
    %736 = arith.addf %734, %735 : vector<8x512xf32>
    %737 = arith.truncf %729 : vector<8x128xf32> to vector<8x128xbf16>
    %c0_249 = arith.constant 0 : index
    %c0_250 = arith.constant 0 : index
    %738 = vector.load %arg2[%c0_249, %c0_250] : memref<128x512xbf16, #tpu.memory_space<vmem>>, vector<128x512xbf16>
    %cst_251 = arith.constant dense<0.000000e+00> : vector<8x512xf32>
    %739 = tpu.matmul %737, %738, %cst_251 {dimension_numbers = #tpu.dot_dimension_numbers<[1], [0], [0], [1], [0, 0, 1, 1], [], []>} : vector<8x128xbf16>, vector<128x512xbf16>, vector<8x512xf32> -> vector<8x512xf32>
    %740 = arith.addf %736, %739 : vector<8x512xf32>
    %741 = math.tanh %740 : vector<8x512xf32>
    %742 = vector.extract_strided_slice %741 {offsets = [0, 0], sizes = [8, 128], strides = [1, 1]} : vector<8x512xf32> to vector<8x128xf32>
    %cst_252 = arith.constant 5.000000e-01 : f32
    %743 = vector.broadcast %cst_252 : f32 to vector<8x128xf32>
    %744 = arith.mulf %743, %742 : vector<8x128xf32>
    %cst_253 = arith.constant 5.000000e-01 : f32
    %745 = vector.broadcast %cst_253 : f32 to vector<8x128xf32>
    %746 = arith.addf %744, %745 : vector<8x128xf32>
    %747 = vector.extract_strided_slice %741 {offsets = [0, 128], sizes = [8, 128], strides = [1, 1]} : vector<8x512xf32> to vector<8x128xf32>
    %cst_254 = arith.constant 5.000000e-01 : f32
    %748 = vector.broadcast %cst_254 : f32 to vector<8x128xf32>
    %749 = arith.mulf %748, %747 : vector<8x128xf32>
    %cst_255 = arith.constant 5.000000e-01 : f32
    %750 = vector.broadcast %cst_255 : f32 to vector<8x128xf32>
    %751 = arith.addf %749, %750 : vector<8x128xf32>
    %752 = vector.extract_strided_slice %741 {offsets = [0, 256], sizes = [8, 128], strides = [1, 1]} : vector<8x512xf32> to vector<8x128xf32>
    %753 = vector.extract_strided_slice %741 {offsets = [0, 384], sizes = [8, 128], strides = [1, 1]} : vector<8x512xf32> to vector<8x128xf32>
    %cst_256 = arith.constant 5.000000e-01 : f32
    %754 = vector.broadcast %cst_256 : f32 to vector<8x128xf32>
    %755 = arith.mulf %754, %753 : vector<8x128xf32>
    %cst_257 = arith.constant 5.000000e-01 : f32
    %756 = vector.broadcast %cst_257 : f32 to vector<8x128xf32>
    %757 = arith.addf %755, %756 : vector<8x128xf32>
    %758 = arith.mulf %751, %727 : vector<8x128xf32>
    %759 = arith.mulf %746, %752 : vector<8x128xf32>
    %760 = arith.addf %758, %759 : vector<8x128xf32>
    %761 = math.tanh %760 : vector<8x128xf32>
    %762 = arith.mulf %757, %761 : vector<8x128xf32>
    %c23 = arith.constant 23 : index
    %c0_258 = arith.constant 0 : index
    %c0_259 = arith.constant 0 : index
    %763 = vector.load %arg0[%c23, %c0_258, %c0_259] : memref<30x8x1xf32, #tpu.memory_space<vmem>>, vector<1x8x1xf32>
    %764 = vector.shape_cast %763 : vector<1x8x1xf32> to vector<8x1xf32>
    %765 = vector.broadcast %764 : vector<8x1xf32> to vector<8x512xf32>
    %766 = vector.broadcast %0 : vector<1x512xf32> to vector<8x512xf32>
    %767 = arith.mulf %765, %766 : vector<8x512xf32>
    %768 = vector.broadcast %1 : vector<1x512xf32> to vector<8x512xf32>
    %769 = arith.addf %767, %768 : vector<8x512xf32>
    %770 = arith.truncf %762 : vector<8x128xf32> to vector<8x128xbf16>
    %c0_260 = arith.constant 0 : index
    %c0_261 = arith.constant 0 : index
    %771 = vector.load %arg2[%c0_260, %c0_261] : memref<128x512xbf16, #tpu.memory_space<vmem>>, vector<128x512xbf16>
    %cst_262 = arith.constant dense<0.000000e+00> : vector<8x512xf32>
    %772 = tpu.matmul %770, %771, %cst_262 {dimension_numbers = #tpu.dot_dimension_numbers<[1], [0], [0], [1], [0, 0, 1, 1], [], []>} : vector<8x128xbf16>, vector<128x512xbf16>, vector<8x512xf32> -> vector<8x512xf32>
    %773 = arith.addf %769, %772 : vector<8x512xf32>
    %774 = math.tanh %773 : vector<8x512xf32>
    %775 = vector.extract_strided_slice %774 {offsets = [0, 0], sizes = [8, 128], strides = [1, 1]} : vector<8x512xf32> to vector<8x128xf32>
    %cst_263 = arith.constant 5.000000e-01 : f32
    %776 = vector.broadcast %cst_263 : f32 to vector<8x128xf32>
    %777 = arith.mulf %776, %775 : vector<8x128xf32>
    %cst_264 = arith.constant 5.000000e-01 : f32
    %778 = vector.broadcast %cst_264 : f32 to vector<8x128xf32>
    %779 = arith.addf %777, %778 : vector<8x128xf32>
    %780 = vector.extract_strided_slice %774 {offsets = [0, 128], sizes = [8, 128], strides = [1, 1]} : vector<8x512xf32> to vector<8x128xf32>
    %cst_265 = arith.constant 5.000000e-01 : f32
    %781 = vector.broadcast %cst_265 : f32 to vector<8x128xf32>
    %782 = arith.mulf %781, %780 : vector<8x128xf32>
    %cst_266 = arith.constant 5.000000e-01 : f32
    %783 = vector.broadcast %cst_266 : f32 to vector<8x128xf32>
    %784 = arith.addf %782, %783 : vector<8x128xf32>
    %785 = vector.extract_strided_slice %774 {offsets = [0, 256], sizes = [8, 128], strides = [1, 1]} : vector<8x512xf32> to vector<8x128xf32>
    %786 = vector.extract_strided_slice %774 {offsets = [0, 384], sizes = [8, 128], strides = [1, 1]} : vector<8x512xf32> to vector<8x128xf32>
    %cst_267 = arith.constant 5.000000e-01 : f32
    %787 = vector.broadcast %cst_267 : f32 to vector<8x128xf32>
    %788 = arith.mulf %787, %786 : vector<8x128xf32>
    %cst_268 = arith.constant 5.000000e-01 : f32
    %789 = vector.broadcast %cst_268 : f32 to vector<8x128xf32>
    %790 = arith.addf %788, %789 : vector<8x128xf32>
    %791 = arith.mulf %784, %760 : vector<8x128xf32>
    %792 = arith.mulf %779, %785 : vector<8x128xf32>
    %793 = arith.addf %791, %792 : vector<8x128xf32>
    %794 = math.tanh %793 : vector<8x128xf32>
    %795 = arith.mulf %790, %794 : vector<8x128xf32>
    %c24 = arith.constant 24 : index
    %c0_269 = arith.constant 0 : index
    %c0_270 = arith.constant 0 : index
    %796 = vector.load %arg0[%c24, %c0_269, %c0_270] : memref<30x8x1xf32, #tpu.memory_space<vmem>>, vector<1x8x1xf32>
    %797 = vector.shape_cast %796 : vector<1x8x1xf32> to vector<8x1xf32>
    %798 = vector.broadcast %797 : vector<8x1xf32> to vector<8x512xf32>
    %799 = vector.broadcast %0 : vector<1x512xf32> to vector<8x512xf32>
    %800 = arith.mulf %798, %799 : vector<8x512xf32>
    %801 = vector.broadcast %1 : vector<1x512xf32> to vector<8x512xf32>
    %802 = arith.addf %800, %801 : vector<8x512xf32>
    %803 = arith.truncf %795 : vector<8x128xf32> to vector<8x128xbf16>
    %c0_271 = arith.constant 0 : index
    %c0_272 = arith.constant 0 : index
    %804 = vector.load %arg2[%c0_271, %c0_272] : memref<128x512xbf16, #tpu.memory_space<vmem>>, vector<128x512xbf16>
    %cst_273 = arith.constant dense<0.000000e+00> : vector<8x512xf32>
    %805 = tpu.matmul %803, %804, %cst_273 {dimension_numbers = #tpu.dot_dimension_numbers<[1], [0], [0], [1], [0, 0, 1, 1], [], []>} : vector<8x128xbf16>, vector<128x512xbf16>, vector<8x512xf32> -> vector<8x512xf32>
    %806 = arith.addf %802, %805 : vector<8x512xf32>
    %807 = math.tanh %806 : vector<8x512xf32>
    %808 = vector.extract_strided_slice %807 {offsets = [0, 0], sizes = [8, 128], strides = [1, 1]} : vector<8x512xf32> to vector<8x128xf32>
    %cst_274 = arith.constant 5.000000e-01 : f32
    %809 = vector.broadcast %cst_274 : f32 to vector<8x128xf32>
    %810 = arith.mulf %809, %808 : vector<8x128xf32>
    %cst_275 = arith.constant 5.000000e-01 : f32
    %811 = vector.broadcast %cst_275 : f32 to vector<8x128xf32>
    %812 = arith.addf %810, %811 : vector<8x128xf32>
    %813 = vector.extract_strided_slice %807 {offsets = [0, 128], sizes = [8, 128], strides = [1, 1]} : vector<8x512xf32> to vector<8x128xf32>
    %cst_276 = arith.constant 5.000000e-01 : f32
    %814 = vector.broadcast %cst_276 : f32 to vector<8x128xf32>
    %815 = arith.mulf %814, %813 : vector<8x128xf32>
    %cst_277 = arith.constant 5.000000e-01 : f32
    %816 = vector.broadcast %cst_277 : f32 to vector<8x128xf32>
    %817 = arith.addf %815, %816 : vector<8x128xf32>
    %818 = vector.extract_strided_slice %807 {offsets = [0, 256], sizes = [8, 128], strides = [1, 1]} : vector<8x512xf32> to vector<8x128xf32>
    %819 = vector.extract_strided_slice %807 {offsets = [0, 384], sizes = [8, 128], strides = [1, 1]} : vector<8x512xf32> to vector<8x128xf32>
    %cst_278 = arith.constant 5.000000e-01 : f32
    %820 = vector.broadcast %cst_278 : f32 to vector<8x128xf32>
    %821 = arith.mulf %820, %819 : vector<8x128xf32>
    %cst_279 = arith.constant 5.000000e-01 : f32
    %822 = vector.broadcast %cst_279 : f32 to vector<8x128xf32>
    %823 = arith.addf %821, %822 : vector<8x128xf32>
    %824 = arith.mulf %817, %793 : vector<8x128xf32>
    %825 = arith.mulf %812, %818 : vector<8x128xf32>
    %826 = arith.addf %824, %825 : vector<8x128xf32>
    %827 = math.tanh %826 : vector<8x128xf32>
    %828 = arith.mulf %823, %827 : vector<8x128xf32>
    %c25 = arith.constant 25 : index
    %c0_280 = arith.constant 0 : index
    %c0_281 = arith.constant 0 : index
    %829 = vector.load %arg0[%c25, %c0_280, %c0_281] : memref<30x8x1xf32, #tpu.memory_space<vmem>>, vector<1x8x1xf32>
    %830 = vector.shape_cast %829 : vector<1x8x1xf32> to vector<8x1xf32>
    %831 = vector.broadcast %830 : vector<8x1xf32> to vector<8x512xf32>
    %832 = vector.broadcast %0 : vector<1x512xf32> to vector<8x512xf32>
    %833 = arith.mulf %831, %832 : vector<8x512xf32>
    %834 = vector.broadcast %1 : vector<1x512xf32> to vector<8x512xf32>
    %835 = arith.addf %833, %834 : vector<8x512xf32>
    %836 = arith.truncf %828 : vector<8x128xf32> to vector<8x128xbf16>
    %c0_282 = arith.constant 0 : index
    %c0_283 = arith.constant 0 : index
    %837 = vector.load %arg2[%c0_282, %c0_283] : memref<128x512xbf16, #tpu.memory_space<vmem>>, vector<128x512xbf16>
    %cst_284 = arith.constant dense<0.000000e+00> : vector<8x512xf32>
    %838 = tpu.matmul %836, %837, %cst_284 {dimension_numbers = #tpu.dot_dimension_numbers<[1], [0], [0], [1], [0, 0, 1, 1], [], []>} : vector<8x128xbf16>, vector<128x512xbf16>, vector<8x512xf32> -> vector<8x512xf32>
    %839 = arith.addf %835, %838 : vector<8x512xf32>
    %840 = math.tanh %839 : vector<8x512xf32>
    %841 = vector.extract_strided_slice %840 {offsets = [0, 0], sizes = [8, 128], strides = [1, 1]} : vector<8x512xf32> to vector<8x128xf32>
    %cst_285 = arith.constant 5.000000e-01 : f32
    %842 = vector.broadcast %cst_285 : f32 to vector<8x128xf32>
    %843 = arith.mulf %842, %841 : vector<8x128xf32>
    %cst_286 = arith.constant 5.000000e-01 : f32
    %844 = vector.broadcast %cst_286 : f32 to vector<8x128xf32>
    %845 = arith.addf %843, %844 : vector<8x128xf32>
    %846 = vector.extract_strided_slice %840 {offsets = [0, 128], sizes = [8, 128], strides = [1, 1]} : vector<8x512xf32> to vector<8x128xf32>
    %cst_287 = arith.constant 5.000000e-01 : f32
    %847 = vector.broadcast %cst_287 : f32 to vector<8x128xf32>
    %848 = arith.mulf %847, %846 : vector<8x128xf32>
    %cst_288 = arith.constant 5.000000e-01 : f32
    %849 = vector.broadcast %cst_288 : f32 to vector<8x128xf32>
    %850 = arith.addf %848, %849 : vector<8x128xf32>
    %851 = vector.extract_strided_slice %840 {offsets = [0, 256], sizes = [8, 128], strides = [1, 1]} : vector<8x512xf32> to vector<8x128xf32>
    %852 = vector.extract_strided_slice %840 {offsets = [0, 384], sizes = [8, 128], strides = [1, 1]} : vector<8x512xf32> to vector<8x128xf32>
    %cst_289 = arith.constant 5.000000e-01 : f32
    %853 = vector.broadcast %cst_289 : f32 to vector<8x128xf32>
    %854 = arith.mulf %853, %852 : vector<8x128xf32>
    %cst_290 = arith.constant 5.000000e-01 : f32
    %855 = vector.broadcast %cst_290 : f32 to vector<8x128xf32>
    %856 = arith.addf %854, %855 : vector<8x128xf32>
    %857 = arith.mulf %850, %826 : vector<8x128xf32>
    %858 = arith.mulf %845, %851 : vector<8x128xf32>
    %859 = arith.addf %857, %858 : vector<8x128xf32>
    %860 = math.tanh %859 : vector<8x128xf32>
    %861 = arith.mulf %856, %860 : vector<8x128xf32>
    %c26 = arith.constant 26 : index
    %c0_291 = arith.constant 0 : index
    %c0_292 = arith.constant 0 : index
    %862 = vector.load %arg0[%c26, %c0_291, %c0_292] : memref<30x8x1xf32, #tpu.memory_space<vmem>>, vector<1x8x1xf32>
    %863 = vector.shape_cast %862 : vector<1x8x1xf32> to vector<8x1xf32>
    %864 = vector.broadcast %863 : vector<8x1xf32> to vector<8x512xf32>
    %865 = vector.broadcast %0 : vector<1x512xf32> to vector<8x512xf32>
    %866 = arith.mulf %864, %865 : vector<8x512xf32>
    %867 = vector.broadcast %1 : vector<1x512xf32> to vector<8x512xf32>
    %868 = arith.addf %866, %867 : vector<8x512xf32>
    %869 = arith.truncf %861 : vector<8x128xf32> to vector<8x128xbf16>
    %c0_293 = arith.constant 0 : index
    %c0_294 = arith.constant 0 : index
    %870 = vector.load %arg2[%c0_293, %c0_294] : memref<128x512xbf16, #tpu.memory_space<vmem>>, vector<128x512xbf16>
    %cst_295 = arith.constant dense<0.000000e+00> : vector<8x512xf32>
    %871 = tpu.matmul %869, %870, %cst_295 {dimension_numbers = #tpu.dot_dimension_numbers<[1], [0], [0], [1], [0, 0, 1, 1], [], []>} : vector<8x128xbf16>, vector<128x512xbf16>, vector<8x512xf32> -> vector<8x512xf32>
    %872 = arith.addf %868, %871 : vector<8x512xf32>
    %873 = math.tanh %872 : vector<8x512xf32>
    %874 = vector.extract_strided_slice %873 {offsets = [0, 0], sizes = [8, 128], strides = [1, 1]} : vector<8x512xf32> to vector<8x128xf32>
    %cst_296 = arith.constant 5.000000e-01 : f32
    %875 = vector.broadcast %cst_296 : f32 to vector<8x128xf32>
    %876 = arith.mulf %875, %874 : vector<8x128xf32>
    %cst_297 = arith.constant 5.000000e-01 : f32
    %877 = vector.broadcast %cst_297 : f32 to vector<8x128xf32>
    %878 = arith.addf %876, %877 : vector<8x128xf32>
    %879 = vector.extract_strided_slice %873 {offsets = [0, 128], sizes = [8, 128], strides = [1, 1]} : vector<8x512xf32> to vector<8x128xf32>
    %cst_298 = arith.constant 5.000000e-01 : f32
    %880 = vector.broadcast %cst_298 : f32 to vector<8x128xf32>
    %881 = arith.mulf %880, %879 : vector<8x128xf32>
    %cst_299 = arith.constant 5.000000e-01 : f32
    %882 = vector.broadcast %cst_299 : f32 to vector<8x128xf32>
    %883 = arith.addf %881, %882 : vector<8x128xf32>
    %884 = vector.extract_strided_slice %873 {offsets = [0, 256], sizes = [8, 128], strides = [1, 1]} : vector<8x512xf32> to vector<8x128xf32>
    %885 = vector.extract_strided_slice %873 {offsets = [0, 384], sizes = [8, 128], strides = [1, 1]} : vector<8x512xf32> to vector<8x128xf32>
    %cst_300 = arith.constant 5.000000e-01 : f32
    %886 = vector.broadcast %cst_300 : f32 to vector<8x128xf32>
    %887 = arith.mulf %886, %885 : vector<8x128xf32>
    %cst_301 = arith.constant 5.000000e-01 : f32
    %888 = vector.broadcast %cst_301 : f32 to vector<8x128xf32>
    %889 = arith.addf %887, %888 : vector<8x128xf32>
    %890 = arith.mulf %883, %859 : vector<8x128xf32>
    %891 = arith.mulf %878, %884 : vector<8x128xf32>
    %892 = arith.addf %890, %891 : vector<8x128xf32>
    %893 = math.tanh %892 : vector<8x128xf32>
    %894 = arith.mulf %889, %893 : vector<8x128xf32>
    %c27 = arith.constant 27 : index
    %c0_302 = arith.constant 0 : index
    %c0_303 = arith.constant 0 : index
    %895 = vector.load %arg0[%c27, %c0_302, %c0_303] : memref<30x8x1xf32, #tpu.memory_space<vmem>>, vector<1x8x1xf32>
    %896 = vector.shape_cast %895 : vector<1x8x1xf32> to vector<8x1xf32>
    %897 = vector.broadcast %896 : vector<8x1xf32> to vector<8x512xf32>
    %898 = vector.broadcast %0 : vector<1x512xf32> to vector<8x512xf32>
    %899 = arith.mulf %897, %898 : vector<8x512xf32>
    %900 = vector.broadcast %1 : vector<1x512xf32> to vector<8x512xf32>
    %901 = arith.addf %899, %900 : vector<8x512xf32>
    %902 = arith.truncf %894 : vector<8x128xf32> to vector<8x128xbf16>
    %c0_304 = arith.constant 0 : index
    %c0_305 = arith.constant 0 : index
    %903 = vector.load %arg2[%c0_304, %c0_305] : memref<128x512xbf16, #tpu.memory_space<vmem>>, vector<128x512xbf16>
    %cst_306 = arith.constant dense<0.000000e+00> : vector<8x512xf32>
    %904 = tpu.matmul %902, %903, %cst_306 {dimension_numbers = #tpu.dot_dimension_numbers<[1], [0], [0], [1], [0, 0, 1, 1], [], []>} : vector<8x128xbf16>, vector<128x512xbf16>, vector<8x512xf32> -> vector<8x512xf32>
    %905 = arith.addf %901, %904 : vector<8x512xf32>
    %906 = math.tanh %905 : vector<8x512xf32>
    %907 = vector.extract_strided_slice %906 {offsets = [0, 0], sizes = [8, 128], strides = [1, 1]} : vector<8x512xf32> to vector<8x128xf32>
    %cst_307 = arith.constant 5.000000e-01 : f32
    %908 = vector.broadcast %cst_307 : f32 to vector<8x128xf32>
    %909 = arith.mulf %908, %907 : vector<8x128xf32>
    %cst_308 = arith.constant 5.000000e-01 : f32
    %910 = vector.broadcast %cst_308 : f32 to vector<8x128xf32>
    %911 = arith.addf %909, %910 : vector<8x128xf32>
    %912 = vector.extract_strided_slice %906 {offsets = [0, 128], sizes = [8, 128], strides = [1, 1]} : vector<8x512xf32> to vector<8x128xf32>
    %cst_309 = arith.constant 5.000000e-01 : f32
    %913 = vector.broadcast %cst_309 : f32 to vector<8x128xf32>
    %914 = arith.mulf %913, %912 : vector<8x128xf32>
    %cst_310 = arith.constant 5.000000e-01 : f32
    %915 = vector.broadcast %cst_310 : f32 to vector<8x128xf32>
    %916 = arith.addf %914, %915 : vector<8x128xf32>
    %917 = vector.extract_strided_slice %906 {offsets = [0, 256], sizes = [8, 128], strides = [1, 1]} : vector<8x512xf32> to vector<8x128xf32>
    %918 = vector.extract_strided_slice %906 {offsets = [0, 384], sizes = [8, 128], strides = [1, 1]} : vector<8x512xf32> to vector<8x128xf32>
    %cst_311 = arith.constant 5.000000e-01 : f32
    %919 = vector.broadcast %cst_311 : f32 to vector<8x128xf32>
    %920 = arith.mulf %919, %918 : vector<8x128xf32>
    %cst_312 = arith.constant 5.000000e-01 : f32
    %921 = vector.broadcast %cst_312 : f32 to vector<8x128xf32>
    %922 = arith.addf %920, %921 : vector<8x128xf32>
    %923 = arith.mulf %916, %892 : vector<8x128xf32>
    %924 = arith.mulf %911, %917 : vector<8x128xf32>
    %925 = arith.addf %923, %924 : vector<8x128xf32>
    %926 = math.tanh %925 : vector<8x128xf32>
    %927 = arith.mulf %922, %926 : vector<8x128xf32>
    %c28 = arith.constant 28 : index
    %c0_313 = arith.constant 0 : index
    %c0_314 = arith.constant 0 : index
    %928 = vector.load %arg0[%c28, %c0_313, %c0_314] : memref<30x8x1xf32, #tpu.memory_space<vmem>>, vector<1x8x1xf32>
    %929 = vector.shape_cast %928 : vector<1x8x1xf32> to vector<8x1xf32>
    %930 = vector.broadcast %929 : vector<8x1xf32> to vector<8x512xf32>
    %931 = vector.broadcast %0 : vector<1x512xf32> to vector<8x512xf32>
    %932 = arith.mulf %930, %931 : vector<8x512xf32>
    %933 = vector.broadcast %1 : vector<1x512xf32> to vector<8x512xf32>
    %934 = arith.addf %932, %933 : vector<8x512xf32>
    %935 = arith.truncf %927 : vector<8x128xf32> to vector<8x128xbf16>
    %c0_315 = arith.constant 0 : index
    %c0_316 = arith.constant 0 : index
    %936 = vector.load %arg2[%c0_315, %c0_316] : memref<128x512xbf16, #tpu.memory_space<vmem>>, vector<128x512xbf16>
    %cst_317 = arith.constant dense<0.000000e+00> : vector<8x512xf32>
    %937 = tpu.matmul %935, %936, %cst_317 {dimension_numbers = #tpu.dot_dimension_numbers<[1], [0], [0], [1], [0, 0, 1, 1], [], []>} : vector<8x128xbf16>, vector<128x512xbf16>, vector<8x512xf32> -> vector<8x512xf32>
    %938 = arith.addf %934, %937 : vector<8x512xf32>
    %939 = math.tanh %938 : vector<8x512xf32>
    %940 = vector.extract_strided_slice %939 {offsets = [0, 0], sizes = [8, 128], strides = [1, 1]} : vector<8x512xf32> to vector<8x128xf32>
    %cst_318 = arith.constant 5.000000e-01 : f32
    %941 = vector.broadcast %cst_318 : f32 to vector<8x128xf32>
    %942 = arith.mulf %941, %940 : vector<8x128xf32>
    %cst_319 = arith.constant 5.000000e-01 : f32
    %943 = vector.broadcast %cst_319 : f32 to vector<8x128xf32>
    %944 = arith.addf %942, %943 : vector<8x128xf32>
    %945 = vector.extract_strided_slice %939 {offsets = [0, 128], sizes = [8, 128], strides = [1, 1]} : vector<8x512xf32> to vector<8x128xf32>
    %cst_320 = arith.constant 5.000000e-01 : f32
    %946 = vector.broadcast %cst_320 : f32 to vector<8x128xf32>
    %947 = arith.mulf %946, %945 : vector<8x128xf32>
    %cst_321 = arith.constant 5.000000e-01 : f32
    %948 = vector.broadcast %cst_321 : f32 to vector<8x128xf32>
    %949 = arith.addf %947, %948 : vector<8x128xf32>
    %950 = vector.extract_strided_slice %939 {offsets = [0, 256], sizes = [8, 128], strides = [1, 1]} : vector<8x512xf32> to vector<8x128xf32>
    %951 = vector.extract_strided_slice %939 {offsets = [0, 384], sizes = [8, 128], strides = [1, 1]} : vector<8x512xf32> to vector<8x128xf32>
    %cst_322 = arith.constant 5.000000e-01 : f32
    %952 = vector.broadcast %cst_322 : f32 to vector<8x128xf32>
    %953 = arith.mulf %952, %951 : vector<8x128xf32>
    %cst_323 = arith.constant 5.000000e-01 : f32
    %954 = vector.broadcast %cst_323 : f32 to vector<8x128xf32>
    %955 = arith.addf %953, %954 : vector<8x128xf32>
    %956 = arith.mulf %949, %925 : vector<8x128xf32>
    %957 = arith.mulf %944, %950 : vector<8x128xf32>
    %958 = arith.addf %956, %957 : vector<8x128xf32>
    %959 = math.tanh %958 : vector<8x128xf32>
    %960 = arith.mulf %955, %959 : vector<8x128xf32>
    %c29 = arith.constant 29 : index
    %c0_324 = arith.constant 0 : index
    %c0_325 = arith.constant 0 : index
    %961 = vector.load %arg0[%c29, %c0_324, %c0_325] : memref<30x8x1xf32, #tpu.memory_space<vmem>>, vector<1x8x1xf32>
    %962 = vector.shape_cast %961 : vector<1x8x1xf32> to vector<8x1xf32>
    %963 = vector.broadcast %962 : vector<8x1xf32> to vector<8x512xf32>
    %964 = vector.broadcast %0 : vector<1x512xf32> to vector<8x512xf32>
    %965 = arith.mulf %963, %964 : vector<8x512xf32>
    %966 = vector.broadcast %1 : vector<1x512xf32> to vector<8x512xf32>
    %967 = arith.addf %965, %966 : vector<8x512xf32>
    %968 = arith.truncf %960 : vector<8x128xf32> to vector<8x128xbf16>
    %c0_326 = arith.constant 0 : index
    %c0_327 = arith.constant 0 : index
    %969 = vector.load %arg2[%c0_326, %c0_327] : memref<128x512xbf16, #tpu.memory_space<vmem>>, vector<128x512xbf16>
    %cst_328 = arith.constant dense<0.000000e+00> : vector<8x512xf32>
    %970 = tpu.matmul %968, %969, %cst_328 {dimension_numbers = #tpu.dot_dimension_numbers<[1], [0], [0], [1], [0, 0, 1, 1], [], []>} : vector<8x128xbf16>, vector<128x512xbf16>, vector<8x512xf32> -> vector<8x512xf32>
    %971 = arith.addf %967, %970 : vector<8x512xf32>
    %972 = math.tanh %971 : vector<8x512xf32>
    %973 = vector.extract_strided_slice %972 {offsets = [0, 0], sizes = [8, 128], strides = [1, 1]} : vector<8x512xf32> to vector<8x128xf32>
    %cst_329 = arith.constant 5.000000e-01 : f32
    %974 = vector.broadcast %cst_329 : f32 to vector<8x128xf32>
    %975 = arith.mulf %974, %973 : vector<8x128xf32>
    %cst_330 = arith.constant 5.000000e-01 : f32
    %976 = vector.broadcast %cst_330 : f32 to vector<8x128xf32>
    %977 = arith.addf %975, %976 : vector<8x128xf32>
    %978 = vector.extract_strided_slice %972 {offsets = [0, 128], sizes = [8, 128], strides = [1, 1]} : vector<8x512xf32> to vector<8x128xf32>
    %cst_331 = arith.constant 5.000000e-01 : f32
    %979 = vector.broadcast %cst_331 : f32 to vector<8x128xf32>
    %980 = arith.mulf %979, %978 : vector<8x128xf32>
    %cst_332 = arith.constant 5.000000e-01 : f32
    %981 = vector.broadcast %cst_332 : f32 to vector<8x128xf32>
    %982 = arith.addf %980, %981 : vector<8x128xf32>
    %983 = vector.extract_strided_slice %972 {offsets = [0, 256], sizes = [8, 128], strides = [1, 1]} : vector<8x512xf32> to vector<8x128xf32>
    %984 = vector.extract_strided_slice %972 {offsets = [0, 384], sizes = [8, 128], strides = [1, 1]} : vector<8x512xf32> to vector<8x128xf32>
    %cst_333 = arith.constant 5.000000e-01 : f32
    %985 = vector.broadcast %cst_333 : f32 to vector<8x128xf32>
    %986 = arith.mulf %985, %984 : vector<8x128xf32>
    %cst_334 = arith.constant 5.000000e-01 : f32
    %987 = vector.broadcast %cst_334 : f32 to vector<8x128xf32>
    %988 = arith.addf %986, %987 : vector<8x128xf32>
    %989 = arith.mulf %982, %958 : vector<8x128xf32>
    %990 = arith.mulf %977, %983 : vector<8x128xf32>
    %991 = arith.addf %989, %990 : vector<8x128xf32>
    %992 = math.tanh %991 : vector<8x128xf32>
    %993 = arith.mulf %988, %992 : vector<8x128xf32>
    %c0_335 = arith.constant 0 : index
    %c0_336 = arith.constant 0 : index
    %994 = vector.load %arg4[%c0_335, %c0_336] : memref<1x128xf32, #tpu.memory_space<vmem>>, vector<1x128xf32>
    %995 = vector.broadcast %994 : vector<1x128xf32> to vector<8x128xf32>
    %996 = arith.mulf %993, %995 : vector<8x128xf32>
    %cst_337 = arith.constant dense<0.000000e+00> : vector<8xf32>
    %997 = vector.multi_reduction <add>, %996, %cst_337 [1] : vector<8x128xf32> to vector<8xf32>
    %998 = vector.shape_cast %997 : vector<8xf32> to vector<8x1xf32>
    %c0_338 = arith.constant 0 : index
    %c0_339 = arith.constant 0 : index
    %999 = vector.load %arg5[%c0_338, %c0_339] : memref<1x1xf32, #tpu.memory_space<vmem>>, vector<1x1xf32>
    %1000 = vector.broadcast %999 : vector<1x1xf32> to vector<8x1xf32>
    %1001 = arith.addf %998, %1000 : vector<8x1xf32>
    %c0_340 = arith.constant 0 : index
    %c0_341 = arith.constant 0 : index
    %1002 = vector.load %arg6[%c0_340, %c0_341] : memref<8x1xf32, #tpu.memory_space<vmem>>, vector<8x1xf32>
    tpu.vector_store %arg6[%c0_340, %c0_341], %1001 {strides = array<i32>} : memref<8x1xf32, #tpu.memory_space<vmem>>, vector<8x1xf32>,
    return
  }
}

</mosaic_0001>

<bundles_post_ra>
// kernel: lstm_forward_prepared.1
= control target key start
LH: loop header
LB: loop body
LE: loop exit
PB: predicated region body
PF: predicated region fallthrough
CT: control target
= control target key end

     0   :  { %v4336_v1 = vmov 0   ;;  %v35_v48 = vlaneseq  ;;  %vm3788_vm0 = vcmask 7168   ;;  %s6669_s2 = inlined_call_operand.vmem [shape: bf16[128,512], index: 2, kind: input, shape index: {}]   ;;  %s6670_s0 = inlined_call_operand.vmem [shape: f32[30,8,1], index: 0, kind: input, shape index: {}]   ;;  %s6671_s1 = inlined_call_operand.vmem [shape: f32[1,512], index: 1, kind: input, shape index: {}]   ;;  %s6672_s3 = inlined_call_operand.vmem [shape: f32[1,512], index: 3, kind: input, shape index: {}]   ;;  %s6673_s5 = inlined_call_operand.<no memory space> [shape: f32[1,1], index: 5, kind: input, shape index: {}]   ;;  %s6674_s4 = inlined_call_operand.vmem [shape: f32[1,128], index: 4, kind: input, shape index: {}]   ;;  %s6675_s6 = inlined_call_operand.vmem [shape: f32[8,1], index: 6, kind: output, shape index: {}]  }
   0x1   :  { %v4375_v0 = vld [vmem:[%s6669_s2 + $0x4] ss:$16 sps:$4 sm:$0xff]   ;;  %308 = vmatprep.mubr.bf16.mxu0 %v4336_v1  ;;  %349 = vmatprep.mubr.bf16.mxu1 %v4336_v1  ;;  %v4382_v2 = vld [vmem:[%s6669_s2 + $0xc] ss:$16 sps:$4 sm:$0xff]   ;;  %v4390_v3 = vld [vmem:[%s6669_s2] ss:$16 sps:$4 sm:$0xff]  }
   0x2   :  { %3858 = vset.pattern.permute.xlu0 %v4336_v1  ;;  %3859 = vset.pattern.permute.xlu1 %v4336_v1  ;;  %v4395_v4 = vld [vmem:[%s6669_s2 + $0x8] ss:$16 sps:$4 sm:$0xff]   ;;  %v4401_v5 = vld [vmem:[%s6669_s2 + $0x24] ss:$16 sps:$4 sm:$0xff]   ;;  %v4408_v6 = vld [vmem:[%s6669_s2 + $0x2c] ss:$16 sps:$4 sm:$0xff]  }
   0x3   :  { %276 = vmatprep.subr.bf16.mxu0 %v4375_v0  ;;  %317 = vmatprep.subr.bf16.mxu1 %v4382_v2  ;;  %v4413_v7 = vld [vmem:[%s6669_s2 + $0x20] ss:$16 sps:$4 sm:$0xff]   ;;  %v4419_v8 = vld [vmem:[%s6669_s2 + $0x28] ss:$16 sps:$4 sm:$0xff]   ;;  %v4425_v9 = vld [vmem:[%s6669_s2 + $0x44] ss:$16 sps:$4 sm:$0xff]  }
   0x4   :  { %277 = vmatpush1.bf16.msra.mxu0 %v4390_v3  ;;  %318 = vmatpush1.bf16.msra.mxu1 %v4395_v4  ;;  %v4430_v10 = vld [vmem:[%s6669_s2 + $0x4c] ss:$16 sps:$4 sm:$0xff]   ;;  %v4435_v11 = vld [vmem:[%s6669_s2 + $0x40] ss:$16 sps:$4 sm:$0xff]   ;;  %v4440_v12 = vld [vmem:[%s6669_s2 + $0x48] ss:$16 sps:$4 sm:$0xff]  }
   0x5   :  { %278 = vmatprep.subr.bf16.mxu0 %v4401_v5  ;;  %319 = vmatprep.subr.bf16.mxu1 %v4408_v6  ;;  %v4447_v13 = vld [vmem:[%s6669_s2 + $0x64] ss:$16 sps:$4 sm:$0xff]   ;;  %v4454_v14 = vld [vmem:[%s6669_s2 + $0x6c] ss:$16 sps:$4 sm:$0xff]   ;;  %v4459_v15 = vld [vmem:[%s6669_s2 + $0x60] ss:$16 sps:$4 sm:$0xff]  }
   0x6   :  { %v4466_v16 = vld [vmem:[%s6669_s2 + $0x68] ss:$16 sps:$4 sm:$0xff]   ;;  %v4471_v17 = vld [vmem:[%s6669_s2 + $0x84] ss:$16 sps:$4 sm:$0xff]   ;;  %v4478_v18 = vld [vmem:[%s6669_s2 + $0x8c] ss:$16 sps:$4 sm:$0xff]  }
   0x7   :  { %v4483_v19 = vld [vmem:[%s6669_s2 + $0x80] ss:$16 sps:$4 sm:$0xff]   ;;  %v4488_v20 = vld [vmem:[%s6669_s2 + $0x88] ss:$16 sps:$4 sm:$0xff]   ;;  %v4495_v21 = vld [vmem:[%s6669_s2 + $0xa4] ss:$16 sps:$4 sm:$0xff]  }
   0x8   :  { %279 = vmatpush1.bf16.msra.mxu0 %v4413_v7  ;;  %320 = vmatpush1.bf16.msra.mxu1 %v4419_v8  ;;  %v4502_v22 = vld [vmem:[%s6669_s2 + $0xac] ss:$16 sps:$4 sm:$0xff]   ;;  %v4509_v23 = vld [vmem:[%s6669_s2 + $0xa0] ss:$16 sps:$4 sm:$0xff]   ;;  %v4514_v24 = vld [vmem:[%s6669_s2 + $0xa8] ss:$16 sps:$4 sm:$0xff]  }
   0x9   :  { %280 = vmatprep.subr.bf16.mxu0 %v4425_v9  ;;  %321 = vmatprep.subr.bf16.mxu1 %v4430_v10  ;;  %v4521_v25 = vld [vmem:[%s6669_s2 + $0xc4] ss:$16 sps:$4 sm:$0xff]   ;;  %v4526_v26 = vld [vmem:[%s6669_s2 + $0xcc] ss:$16 sps:$4 sm:$0xff]   ;;  %v4539_v29 = vld [vmem:[%s6669_s2 + $0xc0] ss:$16 sps:$4 sm:$0xff]  }
   0xa   :  { %v28_v27 = vld [vmem:[%s6670_s0] sm:$0xff]  ;;  %v3826_v28 = vld [vmem:[%s6670_s0 + $0x8] sm:$0xff]  ;;  %v3831_v36 = vld [vmem:[%s6670_s0 + $0x30] sm:$0xff]  ;;  %v36_v49 = vshrl.u32 %v35_v48, 7 }
   0xb   :  { %31 = vperm.xlu0 %3858, %v28_v27   ;;  %v4544_v30 = vld [vmem:[%s6669_s2 + $0xc8] ss:$16 sps:$4 sm:$0xff]   ;;  %v4551_v31 = vld [vmem:[%s6669_s2 + $0xe4] ss:$16 sps:$4 sm:$0xff]   ;;  %v4556_v32 = vld [vmem:[%s6669_s2 + $0xec] ss:$16 sps:$4 sm:$0xff]  }
   0xc   :  { %281 = vmatpush1.bf16.msra.mxu0 %v4435_v11  ;;  %322 = vmatpush1.bf16.msra.mxu1 %v4440_v12  ;;  %v3829_v33 = vld [vmem:[%s6670_s0 + $0x20] sm:$0xff]  ;;  %v4571_v35 = vld [vmem:[%s6669_s2 + $0xe8] ss:$16 sps:$4 sm:$0xff]   ;;  %v3835_v38 = vld [vmem:[%s6670_s0 + $0x50] sm:$0xff]  ;;  %v37_v50 = vsub.s32 0, %v36_v49  ;;  %v41_v52 = vsub.s32 1, %v36_v49 }
   0xd   :  { %282 = vmatprep.subr.bf16.mxu0 %v4447_v13  ;;  %323 = vmatprep.subr.bf16.mxu1 %v4454_v14  ;;  %v4566_v34 = vld [vmem:[%s6669_s2 + $0xe0] ss:$16 sps:$4 sm:$0xff]   ;;  %v45_v53 = vsub.s32 2, %v36_v49 }
   0xe   :  { %v3833_v37 = vld [vmem:[%s6670_s0 + $0x40] sm:$0xff]  ;;  %v3839_v40 = vld [vmem:[%s6670_s0 + $0x70] sm:$0xff] }
   0xf   :  { %381 = vperm.xlu0 %3858, %v3826_v28   ;;  %v3837_v39 = vld [vmem:[%s6670_s0 + $0x60] sm:$0xff]  ;;  %v3843_v42 = vld [vmem:[%s6670_s0 + $0x90] sm:$0xff]  ;;  %v49_v28 = vsub.s32 3, %v36_v49 }
  0x10   :  { %283 = vmatpush1.bf16.msra.mxu0 %v4459_v15  ;;  %324 = vmatpush1.bf16.msra.mxu1 %v4466_v16  ;;  %v3841_v41 = vld [vmem:[%s6670_s0 + $0x80] sm:$0xff]  ;;  %v3847_v44 = vld [vmem:[%s6670_s0 + $0xb0] sm:$0xff] }
  0x11   :  { %284 = vmatprep.subr.bf16.mxu0 %v4471_v17  ;;  %325 = vmatprep.subr.bf16.mxu1 %v4478_v18  ;;  %v3845_v43 = vld [vmem:[%s6670_s0 + $0xa0] sm:$0xff]  ;;  %v3851_v46 = vld [vmem:[%s6670_s0 + $0xd0] sm:$0xff] }
  0x12   :  { %v3849_v45 = vld [vmem:[%s6670_s0 + $0xc0] sm:$0xff] }
  0x13   :  { %732 = vperm.xlu0 %3858, %v3829_v33   ;;  %v3853_v47 = vld [vmem:[%s6670_s0 + $0xe0] sm:$0xff] }
  0x14   :  { %285 = vmatpush1.bf16.msra.mxu0 %v4483_v19  ;;  %326 = vmatpush1.bf16.msra.mxu1 %v4488_v20  ;;  %v26_v51 = vld [vmem:[%s6671_s1] sm:$0xf] }
  0x15   :  { %286 = vmatprep.subr.bf16.mxu0 %v4495_v21  ;;  %327 = vmatprep.subr.bf16.mxu1 %v4502_v22  ;;  %v4654_v54 = vrot.slane %v26_v51, %v37_v50  ;;  %v27_v55 = vld [vmem:[%s6672_s3] sm:$0xf]  ;;  %v4659_v56 = vrot.slane %v26_v51, %v41_v52  ;;  %v4661_v57 = vrot.slane %v26_v51, %v45_v53 }
  0x16   :  { %v4664_v60 = vrot.slane %v27_v55, %v37_v50  ;;  %v4667_v62 = vrot.slane %v27_v55, %v41_v52  ;;  %v4670_v27 = vrot.slane %v27_v55, %v45_v53  ;;  %v4678_v52 = vrot.slane %v27_v55, %v49_v28 }
  0x17   :  { %966 = vperm.xlu0 %3858, %v3831_v36  }
  0x18   :  { %287 = vmatpush1.bf16.msra.mxu0 %v4509_v23  ;;  %328 = vmatpush1.bf16.msra.mxu1 %v4514_v24 }
  0x19   :  { %288 = vmatprep.subr.bf16.mxu0 %v4521_v25  ;;  %329 = vmatprep.subr.bf16.mxu1 %v4526_v26 }
  0x1b   :  { %1200 = vperm.xlu0 %3858, %v3833_v37  }
  0x1c   :  { %289 = vmatpush1.bf16.msra.mxu0 %v4539_v29  ;;  %330 = vmatpush1.bf16.msra.mxu1 %v4544_v30 }
  0x1d   :  { %290 = vmatprep.subr.bf16.mxu0 %v4551_v31  ;;  %331 = vmatprep.subr.bf16.mxu1 %v4556_v32 }
  0x1f   :  { %1434 = vperm.xlu0 %3858, %v3835_v38  }
  0x20   :  { %291 = vmatpush1.bf16.msra.mxu0 %v4566_v34  ;;  %332 = vmatpush1.bf16.msra.mxu1 %v4571_v35 }
  0x21   :  { %393 = vmatprep.subr.bf16.mxu0 %v4375_v0  ;;  %434 = vmatprep.subr.bf16.mxu1 %v4382_v2 }
  0x23   :  { %309 = vmatmul.mubr.bf16.vlgmr.msra.gmra.mrb[0].mxu0 %v4336_v1  ;;  %350 = vmatmul.mubr.bf16.vlgmr.msra.gmra.mrb[0].mxu1 %v4336_v1 }
  0x24   :  { %394 = vmatpush1.bf16.msra.mxu0 %v4390_v3  ;;  %435 = vmatpush1.bf16.msra.mxu1 %v4395_v4 }
  0x25   :  { %395 = vmatprep.subr.bf16.mxu0 %v4401_v5  ;;  %436 = vmatprep.subr.bf16.mxu1 %v4408_v6 }
  0x26   :  { %425 = vmatprep.mubr.bf16.mxu0 %v4336_v1  ;;  %466 = vmatprep.mubr.bf16.mxu1 %v4336_v1 }
  0x27   :  { %1668 = vperm.xlu0 %3858, %v3837_v39  }
  0x28   :  { %396 = vmatpush1.bf16.msra.mxu0 %v4413_v7  ;;  %437 = vmatpush1.bf16.msra.mxu1 %v4419_v8 }
  0x29   :  { %397 = vmatprep.subr.bf16.mxu0 %v4425_v9  ;;  %438 = vmatprep.subr.bf16.mxu1 %v4430_v10 }
  0x2b   :  { %1902 = vperm.xlu0 %3858, %v3839_v40   ;;  %v4675_v40 = vrot.slane %v26_v51, %v49_v28 }
  0x2c   :  { %398 = vmatpush1.bf16.msra.mxu0 %v4435_v11  ;;  %439 = vmatpush1.bf16.msra.mxu1 %v4440_v12 }
  0x2d   :  { %399 = vmatprep.subr.bf16.mxu0 %v4447_v13  ;;  %440 = vmatprep.subr.bf16.mxu1 %v4454_v14 }
  0x2f   :  { %2136 = vperm.xlu0 %3858, %v3841_v41  }
  0x30   :  { %400 = vmatpush1.bf16.msra.mxu0 %v4459_v15  ;;  %441 = vmatpush1.bf16.msra.mxu1 %v4466_v16 }
  0x31   :  { %401 = vmatprep.subr.bf16.mxu0 %v4471_v17  ;;  %442 = vmatprep.subr.bf16.mxu1 %v4478_v18 }
  0x33   :  { %2370 = vperm.xlu0 %3858, %v3843_v42  }
  0x34   :  { %402 = vmatpush1.bf16.msra.mxu0 %v4483_v19  ;;  %443 = vmatpush1.bf16.msra.mxu1 %v4488_v20 }
  0x35   :  { %403 = vmatprep.subr.bf16.mxu0 %v4495_v21  ;;  %444 = vmatprep.subr.bf16.mxu1 %v4502_v22 }
  0x37   :  { %2604 = vperm.xlu0 %3858, %v3845_v43  }
  0x38   :  { %404 = vmatpush1.bf16.msra.mxu0 %v4509_v23  ;;  %445 = vmatpush1.bf16.msra.mxu1 %v4514_v24 }
  0x39   :  { %405 = vmatprep.subr.bf16.mxu0 %v4521_v25  ;;  %446 = vmatprep.subr.bf16.mxu1 %v4526_v26 }
  0x3b   :  { %2838 = vperm.xlu0 %3858, %v3847_v44  }
  0x3c   :  { %406 = vmatpush1.bf16.msra.mxu0 %v4539_v29  ;;  %447 = vmatpush1.bf16.msra.mxu1 %v4544_v30 }
  0x3d   :  { %407 = vmatprep.subr.bf16.mxu0 %v4551_v31  ;;  %448 = vmatprep.subr.bf16.mxu1 %v4556_v32 }
  0x3f   :  { %3072 = vperm.xlu0 %3858, %v3849_v45  }
  0x40   :  { %408 = vmatpush1.bf16.msra.mxu0 %v4566_v34  ;;  %449 = vmatpush1.bf16.msra.mxu1 %v4571_v35 }
  0x41   :  { %510 = vmatprep.subr.bf16.mxu0 %v4375_v0  ;;  %551 = vmatprep.subr.bf16.mxu1 %v4382_v2 }
  0x43   :  { %3306 = vperm.xlu0 %3858, %v3851_v46  }
  0x47   :  { %3540 = vperm.xlu0 %3858, %v3853_v47  }
  0x8a   :  { %v32_v58 = vpop.permute.xlu0 %31 }
  0x8b   :  { %v55_v59 = vmul.f32 %v4654_v54, %v32_v58  ;;  %v56_v61 = vmul.f32 %v4659_v56, %v32_v58  ;;  %v57_v63 = vmul.f32 %v4661_v57, %v32_v58  ;;  %v58_v50 = vmul.f32 %v4675_v40, %v32_v58 }
  0x8d   :  { %v80_v33 = vadd.f32 %v4664_v60, %v55_v59  ;;  %v81_v36 = vadd.f32 %v4667_v62, %v56_v61  ;;  %v82_v37 = vadd.f32 %v4670_v27, %v57_v63  ;;  %v83_v53 = vadd.f32 %v4678_v52, %v58_v50  ;;  %v3834_v50 = vld [vmem:[%s6670_s0 + $0x48] sm:$0xff] }
  0xf6   :  { %v310_v38 = vpop.f32.mrb[0].mxu0  ;;  %v351_v39 = vpop.f32.mrb[0].mxu1 }
  0xf7   :  { %v358_v41 = vadd.f32 %v310_v38, %v80_v33  ;;  %v312_v42 = vpop.f32.mrb[1].mxu0  ;;  %v353_v43 = vpop.f32.mrb[1].mxu1  ;;  %v360_v47 = vadd.f32 %v351_v39, %v82_v37 }
  0xf8   :  { %v359_v44 = vadd.f32 %v312_v42, %v81_v36  ;;  %v314_v45 = vpop.f32.mrb[2].mxu0  ;;  %v355_v46 = vpop.f32.mrb[2].mxu1  ;;  %v361_v51 = vadd.f32 %v353_v43, %v83_v53  ;;  %v3836_v53 = vld [vmem:[%s6670_s0 + $0x58] sm:$0xff] }
  0xf9   :  { %3908 = vtanh.f32 %v358_v41  ;;  %v315_v48 = vpop.f32.mrb[3].mxu0  ;;  %v356_v49 = vpop.f32.mrb[3].mxu1  ;;  %v3827_v46 = vld [vmem:[%s6670_s0 + $0x10] sm:$0xff] }
  0xfa   :  { %3910 = vtanh.f32 %v359_v44  ;;  %498 = vperm.xlu1 %3859, %v3827_v46   ;;  %v3830_v48 = vld [vmem:[%s6670_s0 + $0x28] sm:$0xff]  ;;  %v3832_v49 = vld [vmem:[%s6670_s0 + $0x38] sm:$0xff] }
  0xfb   :  { %3912 = vtanh.f32 %v360_v47  ;;  %v3828_v47 = vld [vmem:[%s6670_s0 + $0x18] sm:$0xff] }
  0xfc   :  { %3914 = vtanh.f32 %v361_v51  ;;  %v3838_v51 = vld [vmem:[%s6670_s0 + $0x68] sm:$0xff] }
  0xfe   :  { %615 = vperm.xlu1 %3859, %v3828_v47  }
 0x102   :  { %849 = vperm.xlu1 %3859, %v3830_v48  }
 0x103   :  { %v3909_v59 = vpop.eup %3908 }
 0x104   :  { %v366_v61 = vmul.f32 0.5, %v3909_v59  ;;  %v3911_v63 = vpop.eup %3910  ;;  %v3840_v59 = vld [vmem:[%s6670_s0 + $0x78] sm:$0xff] }
 0x105   :  { %v368_v36 = vmul.f32 0.5, %v3911_v63  ;;  %v3913_v38 = vpop.eup %3912  ;;  %v3844_v63 = vld [vmem:[%s6670_s0 + $0x98] sm:$0xff] }
 0x106   :  { %v367_v33 = vadd.f32 0.5, %v366_v61  ;;  %v3915_v55 = vpop.eup %3914  ;;  %1083 = vperm.xlu1 %3859, %v3832_v49   ;;  %v3842_v61 = vld [vmem:[%s6670_s0 + $0x88] sm:$0xff] }
 0x107   :  { %v369_v41 = vadd.f32 0.5, %v368_v36  ;;  %v370_v58 = vmul.f32 0.5, %v3915_v55  ;;  %v3848_v36 = vld [vmem:[%s6670_s0 + $0xb8] sm:$0xff] }
 0x108   :  { %v373_v37 = vmul.f32 %v3913_v38, %v367_v33  ;;  %v3846_v33 = vld [vmem:[%s6670_s0 + $0xa8] sm:$0xff] }
 0x109   :  { %v372_v39 = vmul.f32 0.0, %v369_v41  ;;  %v371_v28 = vadd.f32 0.5, %v370_v58  ;;  %v3850_v38 = vld [vmem:[%s6670_s0 + $0xc8] sm:$0xff]  ;;  %v3852_v41 = vld [vmem:[%s6670_s0 + $0xd8] sm:$0xff] }
 0x10a   :  { %1317 = vperm.xlu1 %3859, %v3834_v50  }
 0x10b   :  { %v4681_v42 = vadd.f32 %v373_v37, %v372_v39  ;;  %v3854_v37 = vld [vmem:[%s6670_s0 + $0xe8] sm:$0xff]  ;;  %v382_v39 = vpop.permute.xlu0 %381 }
 0x10c   :  { %v384_v55 = vmul.f32 %v382_v39, %v4654_v54  ;;  %v385_v58 = vmul.f32 %v382_v39, %v4659_v56 }
 0x10d   :  { %3916 = vtanh.f32 %v4681_v42 }
 0x10e   :  { %1551 = vperm.xlu1 %3859, %v3836_v53   ;;  %v389_v46 = vadd.f32 %v385_v58, %v4667_v62 }
 0x112   :  { %1785 = vperm.xlu1 %3859, %v3838_v51  }
 0x116   :  { %2019 = vperm.xlu1 %3859, %v3840_v59  }
 0x117   :  { %v3917_v44 = vpop.eup %3916 }
 0x118   :  { %v376_v45 = vmul.f32 %v3917_v44, %v371_v28  ;;  %v386_v28 = vmul.f32 %v382_v39, %v4661_v57  ;;  %v388_v44 = vadd.f32 %v384_v55, %v4664_v60 }
 0x11a   :  { %v392_v43 = vpack.c.bf16 %v376_v45, %v376_v45  ;;  %2253 = vperm.xlu1 %3859, %v3842_v61   ;;  %v390_v48 = vadd.f32 %v386_v28, %v4670_v27 }
 0x11c   :  { %426 = vmatmul.mubr.bf16.vlgmr.msra.gmra.mrb[4].mxu0 %v392_v43  ;;  %467 = vmatmul.mubr.bf16.vlgmr.msra.gmra.mrb[4].mxu1 %v392_v43 }
 0x11d   :  { %511 = vmatpush1.bf16.msra.mxu0 %v4390_v3  ;;  %552 = vmatpush1.bf16.msra.mxu1 %v4395_v4 }
 0x11e   :  { %512 = vmatprep.subr.bf16.mxu0 %v4401_v5  ;;  %553 = vmatprep.subr.bf16.mxu1 %v4408_v6 }
 0x11f   :  { %542 = vmatprep.mubr.bf16.mxu0 %v4336_v1  ;;  %583 = vmatprep.mubr.bf16.mxu1 %v4336_v1 }
 0x120   :  { %2487 = vperm.xlu1 %3859, %v3844_v63  }
 0x121   :  { %513 = vmatpush1.bf16.msra.mxu0 %v4413_v7  ;;  %554 = vmatpush1.bf16.msra.mxu1 %v4419_v8 }
 0x122   :  { %514 = vmatprep.subr.bf16.mxu0 %v4425_v9  ;;  %555 = vmatprep.subr.bf16.mxu1 %v4430_v10 }
 0x124   :  { %2721 = vperm.xlu1 %3859, %v3846_v33  }
 0x125   :  { %515 = vmatpush1.bf16.msra.mxu0 %v4435_v11  ;;  %556 = vmatpush1.bf16.msra.mxu1 %v4440_v12 }
 0x126   :  { %516 = vmatprep.subr.bf16.mxu0 %v4447_v13  ;;  %557 = vmatprep.subr.bf16.mxu1 %v4454_v14 }
 0x128   :  { %2955 = vperm.xlu1 %3859, %v3848_v36   ;;  %v387_v36 = vmul.f32 %v382_v39, %v4675_v40 }
 0x129   :  { %517 = vmatpush1.bf16.msra.mxu0 %v4459_v15  ;;  %558 = vmatpush1.bf16.msra.mxu1 %v4466_v16 }
 0x12a   :  { %518 = vmatprep.subr.bf16.mxu0 %v4471_v17  ;;  %559 = vmatprep.subr.bf16.mxu1 %v4478_v18 }
 0x12c   :  { %3189 = vperm.xlu1 %3859, %v3850_v38   ;;  %v391_v38 = vadd.f32 %v387_v36, %v4678_v52 }
 0x12d   :  { %519 = vmatpush1.bf16.msra.mxu0 %v4483_v19  ;;  %560 = vmatpush1.bf16.msra.mxu1 %v4488_v20 }
 0x12e   :  { %520 = vmatprep.subr.bf16.mxu0 %v4495_v21  ;;  %561 = vmatprep.subr.bf16.mxu1 %v4502_v22 }
 0x130   :  { %3423 = vperm.xlu1 %3859, %v3852_v41  }
 0x131   :  { %521 = vmatpush1.bf16.msra.mxu0 %v4509_v23  ;;  %562 = vmatpush1.bf16.msra.mxu1 %v4514_v24 }
 0x132   :  { %522 = vmatprep.subr.bf16.mxu0 %v4521_v25  ;;  %563 = vmatprep.subr.bf16.mxu1 %v4526_v26 }
 0x134   :  { %3657 = vperm.xlu1 %3859, %v3854_v37  }
 0x135   :  { %523 = vmatpush1.bf16.msra.mxu0 %v4539_v29  ;;  %564 = vmatpush1.bf16.msra.mxu1 %v4544_v30 }
 0x136   :  { %524 = vmatprep.subr.bf16.mxu0 %v4551_v31  ;;  %565 = vmatprep.subr.bf16.mxu1 %v4556_v32 }
 0x139   :  { %525 = vmatpush1.bf16.msra.mxu0 %v4566_v34  ;;  %566 = vmatpush1.bf16.msra.mxu1 %v4571_v35 }
 0x13a   :  { %627 = vmatprep.subr.bf16.mxu0 %v4375_v0  ;;  %668 = vmatprep.subr.bf16.mxu1 %v4382_v2 }
 0x1ef   :  { %v427_v45 = vpop.f32.mrb[4].mxu0  ;;  %v468_v43 = vpop.f32.mrb[4].mxu1 }
 0x1f0   :  { %v475_v47 = vadd.f32 %v427_v45, %v388_v44  ;;  %v429_v49 = vpop.f32.mrb[5].mxu0  ;;  %v470_v50 = vpop.f32.mrb[5].mxu1  ;;  %v477_v61 = vadd.f32 %v468_v43, %v390_v48 }
 0x1f1   :  { %v476_v53 = vadd.f32 %v429_v49, %v389_v46  ;;  %v431_v51 = vpop.f32.mrb[6].mxu0  ;;  %v472_v59 = vpop.f32.mrb[6].mxu1  ;;  %v478_v41 = vadd.f32 %v470_v50, %v391_v38 }
 0x1f2   :  { %3918 = vtanh.f32 %v475_v47  ;;  %v432_v63 = vpop.f32.mrb[7].mxu0  ;;  %v473_v33 = vpop.f32.mrb[7].mxu1 }
 0x1f3   :  { %3920 = vtanh.f32 %v476_v53 }
 0x1f4   :  { %3922 = vtanh.f32 %v477_v61 }
 0x1f5   :  { %3924 = vtanh.f32 %v478_v41 }
 0x1fc   :  { %v3919_v37 = vpop.eup %3918 }
 0x1fd   :  { %v483_v55 = vmul.f32 0.5, %v3919_v37  ;;  %v3921_v58 = vpop.eup %3920 }
 0x1fe   :  { %v485_v44 = vmul.f32 0.5, %v3921_v58  ;;  %v3923_v45 = vpop.eup %3922 }
 0x1ff   :  { %v484_v28 = vadd.f32 0.5, %v483_v55  ;;  %v3925_v39 = vpop.eup %3924 }
 0x200   :  { %v486_v46 = vadd.f32 0.5, %v485_v44  ;;  %v487_v48 = vmul.f32 0.5, %v3925_v39 }
 0x201   :  { %v490_v49 = vmul.f32 %v3923_v45, %v484_v28 }
 0x202   :  { %v489_v43 = vmul.f32 %v486_v46, %v4681_v42  ;;  %v488_v53 = vadd.f32 0.5, %v487_v48  ;;  %v499_v42 = vpop.permute.xlu1 %498 }
 0x203   :  { %v501_v61 = vmul.f32 %v499_v42, %v4654_v54  ;;  %v502_v63 = vmul.f32 %v499_v42, %v4659_v56  ;;  %v503_v33 = vmul.f32 %v499_v42, %v4661_v57 }
 0x204   :  { %v4772_v47 = vadd.f32 %v490_v49, %v489_v43 }
 0x205   :  { %v505_v36 = vadd.f32 %v501_v61, %v4664_v60  ;;  %v506_v38 = vadd.f32 %v502_v63, %v4667_v62  ;;  %v507_v41 = vadd.f32 %v503_v33, %v4670_v27 }
 0x206   :  { %3926 = vtanh.f32 %v4772_v47 }
 0x210   :  { %v3927_v51 = vpop.eup %3926 }
 0x211   :  { %v493_v50 = vmul.f32 %v3927_v51, %v488_v53  ;;  %v504_v53 = vmul.f32 %v499_v42, %v4675_v40 }
 0x213   :  { %v509_v59 = vpack.c.bf16 %v493_v50, %v493_v50  ;;  %v508_v51 = vadd.f32 %v504_v53, %v4678_v52 }
 0x215   :  { %543 = vmatmul.mubr.bf16.vlgmr.msra.gmra.mrb[8].mxu0 %v509_v59  ;;  %584 = vmatmul.mubr.bf16.vlgmr.msra.gmra.mrb[8].mxu1 %v509_v59 }
 0x216   :  { %628 = vmatpush1.bf16.msra.mxu0 %v4390_v3  ;;  %669 = vmatpush1.bf16.msra.mxu1 %v4395_v4 }
 0x217   :  { %629 = vmatprep.subr.bf16.mxu0 %v4401_v5  ;;  %670 = vmatprep.subr.bf16.mxu1 %v4408_v6 }
 0x218   :  { %659 = vmatprep.mubr.bf16.mxu0 %v4336_v1  ;;  %700 = vmatprep.mubr.bf16.mxu1 %v4336_v1 }
 0x21a   :  { %630 = vmatpush1.bf16.msra.mxu0 %v4413_v7  ;;  %671 = vmatpush1.bf16.msra.mxu1 %v4419_v8 }
 0x21b   :  { %631 = vmatprep.subr.bf16.mxu0 %v4425_v9  ;;  %672 = vmatprep.subr.bf16.mxu1 %v4430_v10 }
 0x21e   :  { %632 = vmatpush1.bf16.msra.mxu0 %v4435_v11  ;;  %673 = vmatpush1.bf16.msra.mxu1 %v4440_v12 }
 0x21f   :  { %633 = vmatprep.subr.bf16.mxu0 %v4447_v13  ;;  %674 = vmatprep.subr.bf16.mxu1 %v4454_v14 }
 0x222   :  { %634 = vmatpush1.bf16.msra.mxu0 %v4459_v15  ;;  %675 = vmatpush1.bf16.msra.mxu1 %v4466_v16 }
 0x223   :  { %635 = vmatprep.subr.bf16.mxu0 %v4471_v17  ;;  %676 = vmatprep.subr.bf16.mxu1 %v4478_v18 }
 0x226   :  { %636 = vmatpush1.bf16.msra.mxu0 %v4483_v19  ;;  %677 = vmatpush1.bf16.msra.mxu1 %v4488_v20 }
 0x227   :  { %637 = vmatprep.subr.bf16.mxu0 %v4495_v21  ;;  %678 = vmatprep.subr.bf16.mxu1 %v4502_v22 }
 0x22a   :  { %638 = vmatpush1.bf16.msra.mxu0 %v4509_v23  ;;  %679 = vmatpush1.bf16.msra.mxu1 %v4514_v24 }
 0x22b   :  { %639 = vmatprep.subr.bf16.mxu0 %v4521_v25  ;;  %680 = vmatprep.subr.bf16.mxu1 %v4526_v26 }
 0x22e   :  { %640 = vmatpush1.bf16.msra.mxu0 %v4539_v29  ;;  %681 = vmatpush1.bf16.msra.mxu1 %v4544_v30 }
 0x22f   :  { %641 = vmatprep.subr.bf16.mxu0 %v4551_v31  ;;  %682 = vmatprep.subr.bf16.mxu1 %v4556_v32 }
 0x232   :  { %642 = vmatpush1.bf16.msra.mxu0 %v4566_v34  ;;  %683 = vmatpush1.bf16.msra.mxu1 %v4571_v35 }
 0x233   :  { %744 = vmatprep.subr.bf16.mxu0 %v4375_v0  ;;  %785 = vmatprep.subr.bf16.mxu1 %v4382_v2 }
 0x2e8   :  { %v544_v37 = vpop.f32.mrb[8].mxu0  ;;  %v585_v55 = vpop.f32.mrb[8].mxu1 }
 0x2e9   :  { %v592_v58 = vadd.f32 %v544_v37, %v505_v36  ;;  %v546_v28 = vpop.f32.mrb[9].mxu0  ;;  %v587_v44 = vpop.f32.mrb[9].mxu1  ;;  %v594_v43 = vadd.f32 %v585_v55, %v507_v41 }
 0x2ea   :  { %v593_v45 = vadd.f32 %v546_v28, %v506_v38  ;;  %v548_v46 = vpop.f32.mrb[10].mxu0  ;;  %v589_v49 = vpop.f32.mrb[10].mxu1  ;;  %v595_v50 = vadd.f32 %v587_v44, %v508_v51 }
 0x2eb   :  { %3928 = vtanh.f32 %v592_v58  ;;  %v549_v39 = vpop.f32.mrb[11].mxu0  ;;  %v590_v48 = vpop.f32.mrb[11].mxu1 }
 0x2ec   :  { %3930 = vtanh.f32 %v593_v45 }
 0x2ed   :  { %3932 = vtanh.f32 %v594_v43 }
 0x2ee   :  { %3934 = vtanh.f32 %v595_v50 }
 0x2f5   :  { %v3929_v59 = vpop.eup %3928 }
 0x2f6   :  { %v600_v61 = vmul.f32 0.5, %v3929_v59  ;;  %v3931_v63 = vpop.eup %3930 }
 0x2f7   :  { %v602_v36 = vmul.f32 0.5, %v3931_v63  ;;  %v3933_v38 = vpop.eup %3932 }
 0x2f8   :  { %v601_v33 = vadd.f32 0.5, %v600_v61  ;;  %v3935_v42 = vpop.eup %3934 }
 0x2f9   :  { %v603_v37 = vadd.f32 0.5, %v602_v36  ;;  %v604_v58 = vmul.f32 0.5, %v3935_v42 }
 0x2fa   :  { %v607_v28 = vmul.f32 %v3933_v38, %v601_v33 }
 0x2fb   :  { %v606_v41 = vmul.f32 %v603_v37, %v4772_v47  ;;  %v605_v45 = vadd.f32 0.5, %v604_v58  ;;  %v616_v47 = vpop.permute.xlu1 %615 }
 0x2fc   :  { %v618_v43 = vmul.f32 %v616_v47, %v4654_v54  ;;  %v619_v39 = vmul.f32 %v616_v47, %v4659_v56  ;;  %v620_v48 = vmul.f32 %v616_v47, %v4661_v57  ;;  %v621_v42 = vmul.f32 %v616_v47, %v4675_v40 }
 0x2fd   :  { %v4818_v55 = vadd.f32 %v607_v28, %v606_v41 }
 0x2fe   :  { %v622_v53 = vadd.f32 %v618_v43, %v4664_v60  ;;  %v623_v59 = vadd.f32 %v619_v39, %v4667_v62  ;;  %v624_v63 = vadd.f32 %v620_v48, %v4670_v27  ;;  %v625_v58 = vadd.f32 %v621_v42, %v4678_v52 }
 0x2ff   :  { %3936 = vtanh.f32 %v4818_v55 }
 0x309   :  { %v3937_v46 = vpop.eup %3936 }
 0x30a   :  { %v610_v44 = vmul.f32 %v3937_v46, %v605_v45 }
 0x30c   :  { %v626_v49 = vpack.c.bf16 %v610_v44, %v610_v44 }
 0x30e   :  { %660 = vmatmul.mubr.bf16.vlgmr.msra.gmra.mrb[12].mxu0 %v626_v49  ;;  %701 = vmatmul.mubr.bf16.vlgmr.msra.gmra.mrb[12].mxu1 %v626_v49 }
 0x30f   :  { %745 = vmatpush1.bf16.msra.mxu0 %v4390_v3  ;;  %786 = vmatpush1.bf16.msra.mxu1 %v4395_v4 }
 0x310   :  { %746 = vmatprep.subr.bf16.mxu0 %v4401_v5  ;;  %787 = vmatprep.subr.bf16.mxu1 %v4408_v6 }
 0x311   :  { %776 = vmatprep.mubr.bf16.mxu0 %v4336_v1  ;;  %817 = vmatprep.mubr.bf16.mxu1 %v4336_v1 }
 0x313   :  { %747 = vmatpush1.bf16.msra.mxu0 %v4413_v7  ;;  %788 = vmatpush1.bf16.msra.mxu1 %v4419_v8 }
 0x314   :  { %748 = vmatprep.subr.bf16.mxu0 %v4425_v9  ;;  %789 = vmatprep.subr.bf16.mxu1 %v4430_v10 }
 0x317   :  { %749 = vmatpush1.bf16.msra.mxu0 %v4435_v11  ;;  %790 = vmatpush1.bf16.msra.mxu1 %v4440_v12 }
 0x318   :  { %750 = vmatprep.subr.bf16.mxu0 %v4447_v13  ;;  %791 = vmatprep.subr.bf16.mxu1 %v4454_v14 }
 0x31b   :  { %751 = vmatpush1.bf16.msra.mxu0 %v4459_v15  ;;  %792 = vmatpush1.bf16.msra.mxu1 %v4466_v16 }
 0x31c   :  { %752 = vmatprep.subr.bf16.mxu0 %v4471_v17  ;;  %793 = vmatprep.subr.bf16.mxu1 %v4478_v18 }
 0x31f   :  { %753 = vmatpush1.bf16.msra.mxu0 %v4483_v19  ;;  %794 = vmatpush1.bf16.msra.mxu1 %v4488_v20 }
 0x320   :  { %754 = vmatprep.subr.bf16.mxu0 %v4495_v21  ;;  %795 = vmatprep.subr.bf16.mxu1 %v4502_v22 }
 0x323   :  { %755 = vmatpush1.bf16.msra.mxu0 %v4509_v23  ;;  %796 = vmatpush1.bf16.msra.mxu1 %v4514_v24 }
 0x324   :  { %756 = vmatprep.subr.bf16.mxu0 %v4521_v25  ;;  %797 = vmatprep.subr.bf16.mxu1 %v4526_v26 }
 0x327   :  { %757 = vmatpush1.bf16.msra.mxu0 %v4539_v29  ;;  %798 = vmatpush1.bf16.msra.mxu1 %v4544_v30 }
 0x328   :  { %758 = vmatprep.subr.bf16.mxu0 %v4551_v31  ;;  %799 = vmatprep.subr.bf16.mxu1 %v4556_v32 }
 0x32b   :  { %759 = vmatpush1.bf16.msra.mxu0 %v4566_v34  ;;  %800 = vmatpush1.bf16.msra.mxu1 %v4571_v35 }
 0x32c   :  { %861 = vmatprep.subr.bf16.mxu0 %v4375_v0  ;;  %902 = vmatprep.subr.bf16.mxu1 %v4382_v2 }
 0x3e1   :  { %v661_v51 = vpop.f32.mrb[12].mxu0  ;;  %v702_v50 = vpop.f32.mrb[12].mxu1 }
 0x3e2   :  { %v709_v61 = vadd.f32 %v661_v51, %v622_v53  ;;  %v663_v33 = vpop.f32.mrb[13].mxu0  ;;  %v704_v0 = vpop.f32.mrb[13].mxu1  ;;  %v711_v37 = vadd.f32 %v702_v50, %v624_v63 }
 0x3e3   :  { %v710_v36 = vadd.f32 %v663_v33, %v623_v59  ;;  %v665_v2 = vpop.f32.mrb[14].mxu0  ;;  %v706_v38 = vpop.f32.mrb[14].mxu1  ;;  %v712_v45 = vadd.f32 %v704_v0, %v625_v58 }
 0x3e4   :  { %3938 = vtanh.f32 %v709_v61  ;;  %v666_v28 = vpop.f32.mrb[15].mxu0  ;;  %v707_v41 = vpop.f32.mrb[15].mxu1 }
 0x3e5   :  { %3940 = vtanh.f32 %v710_v36 }
 0x3e6   :  { %3942 = vtanh.f32 %v711_v37 }
 0x3e7   :  { %3944 = vtanh.f32 %v712_v45 }
 0x3ee   :  { %v3939_v46 = vpop.eup %3938 }
 0x3ef   :  { %v717_v44 = vmul.f32 0.5, %v3939_v46  ;;  %v3941_v49 = vpop.eup %3940 }
 0x3f0   :  { %v719_v39 = vmul.f32 0.5, %v3941_v49  ;;  %v3943_v48 = vpop.eup %3942 }
 0x3f1   :  { %v718_v43 = vadd.f32 0.5, %v717_v44  ;;  %v3945_v47 = vpop.eup %3944 }
 0x3f2   :  { %v720_v53 = vadd.f32 0.5, %v719_v39  ;;  %v721_v61 = vmul.f32 0.5, %v3945_v47  ;;  %v4952_v47 = vld [vmem:[%s6669_s2 + $0x20] ss:$16 sps:$4 sm:$0xff]  }
 0x3f3   :  { %v724_v51 = vmul.f32 %v3943_v48, %v718_v43 }
 0x3f4   :  { %v723_v50 = vmul.f32 %v720_v53, %v4818_v55  ;;  %v722_v63 = vadd.f32 0.5, %v721_v61  ;;  %v4926_v53 = vld [vmem:[%s6669_s2] ss:$16 sps:$4 sm:$0xff]   ;;  %v4958_v61 = vld [vmem:[%s6669_s2 + $0x28] ss:$16 sps:$4 sm:$0xff]  }
 0x3f6   :  { %v4864_v59 = vadd.f32 %v724_v51, %v723_v50  ;;  %v4932_v51 = vld [vmem:[%s6669_s2 + $0x8] ss:$16 sps:$4 sm:$0xff]   ;;  %v4938_v50 = vld [vmem:[%s6669_s2 + $0x24] ss:$16 sps:$4 sm:$0xff]  }
 0x3f8   :  { %3946 = vtanh.f32 %v4864_v59 }
 0x402   :  { %v3947_v33 = vpop.eup %3946 }
 0x403   :  { %v727_v0 = vmul.f32 %v3947_v33, %v722_v63  ;;  %v4964_v63 = vld [vmem:[%s6669_s2 + $0x44] ss:$16 sps:$4 sm:$0xff]   ;;  %v4970_v33 = vld [vmem:[%s6669_s2 + $0x4c] ss:$16 sps:$4 sm:$0xff]  }
 0x405   :  { %v743_v36 = vpack.c.bf16 %v727_v0, %v727_v0  ;;  %v4976_v0 = vld [vmem:[%s6669_s2 + $0x40] ss:$16 sps:$4 sm:$0xff]  }
 0x407   :  { %777 = vmatmul.mubr.bf16.vlgmr.msra.gmra.mrb[16].mxu0 %v743_v36  ;;  %818 = vmatmul.mubr.bf16.vlgmr.msra.gmra.mrb[16].mxu1 %v743_v36  ;;  %v4982_v36 = vld [vmem:[%s6669_s2 + $0x48] ss:$16 sps:$4 sm:$0xff]  }
 0x408   :  { %862 = vmatpush1.bf16.msra.mxu0 %v4390_v3  ;;  %903 = vmatpush1.bf16.msra.mxu1 %v4395_v4  ;;  %v4902_v3 = vld [vmem:[%s6669_s2 + $0x4] ss:$16 sps:$4 sm:$0xff]   ;;  %v4908_v4 = vld [vmem:[%s6669_s2 + $0xc] ss:$16 sps:$4 sm:$0xff]  }
 0x409   :  { %863 = vmatprep.subr.bf16.mxu0 %v4401_v5  ;;  %904 = vmatprep.subr.bf16.mxu1 %v4408_v6  ;;  %v733_v5 = vpop.permute.xlu0 %732 }
 0x40a   :  { %893 = vmatprep.mubr.bf16.mxu0 %v4336_v1  ;;  %934 = vmatprep.mubr.bf16.mxu1 %v4336_v1  ;;  %v735_v6 = vmul.f32 %v733_v5, %v4654_v54 }
 0x40c   :  { %864 = vmatpush1.bf16.msra.mxu0 %v4413_v7  ;;  %905 = vmatpush1.bf16.msra.mxu1 %v4419_v8  ;;  %v736_v7 = vmul.f32 %v733_v5, %v4659_v56  ;;  %v737_v8 = vmul.f32 %v733_v5, %v4661_v57 }
 0x40d   :  { %865 = vmatprep.subr.bf16.mxu0 %v4425_v9  ;;  %906 = vmatprep.subr.bf16.mxu1 %v4430_v10  ;;  %v739_v9 = vadd.f32 %v735_v6, %v4664_v60  ;;  %v4994_v6 = vld [vmem:[%s6669_s2 + $0x6c] ss:$16 sps:$4 sm:$0xff]  }
 0x410   :  { %866 = vmatpush1.bf16.msra.mxu0 %v4435_v11  ;;  %907 = vmatpush1.bf16.msra.mxu1 %v4440_v12  ;;  %v740_v12 = vadd.f32 %v736_v7, %v4667_v62  ;;  %v5000_v7 = vld [vmem:[%s6669_s2 + $0x60] ss:$16 sps:$4 sm:$0xff]  }
 0x411   :  { %867 = vmatprep.subr.bf16.mxu0 %v4447_v13  ;;  %908 = vmatprep.subr.bf16.mxu1 %v4454_v14  ;;  %v741_v14 = vadd.f32 %v737_v8, %v4670_v27  ;;  %v5006_v8 = vld [vmem:[%s6669_s2 + $0x68] ss:$16 sps:$4 sm:$0xff]  }
 0x414   :  { %868 = vmatpush1.bf16.msra.mxu0 %v4459_v15  ;;  %909 = vmatpush1.bf16.msra.mxu1 %v4466_v16 }
 0x415   :  { %869 = vmatprep.subr.bf16.mxu0 %v4471_v17  ;;  %910 = vmatprep.subr.bf16.mxu1 %v4478_v18 }
 0x418   :  { %870 = vmatpush1.bf16.msra.mxu0 %v4483_v19  ;;  %911 = vmatpush1.bf16.msra.mxu1 %v4488_v20 }
 0x419   :  { %871 = vmatprep.subr.bf16.mxu0 %v4495_v21  ;;  %912 = vmatprep.subr.bf16.mxu1 %v4502_v22 }
 0x41c   :  { %872 = vmatpush1.bf16.msra.mxu0 %v4509_v23  ;;  %913 = vmatpush1.bf16.msra.mxu1 %v4514_v24  ;;  %v738_v23 = vmul.f32 %v733_v5, %v4675_v40  ;;  %v4988_v5 = vld [vmem:[%s6669_s2 + $0x64] ss:$16 sps:$4 sm:$0xff]  }
 0x41d   :  { %873 = vmatprep.subr.bf16.mxu0 %v4521_v25  ;;  %914 = vmatprep.subr.bf16.mxu1 %v4526_v26 }
 0x41e   :  { %v742_v24 = vadd.f32 %v738_v23, %v4678_v52 }
 0x420   :  { %874 = vmatpush1.bf16.msra.mxu0 %v4539_v29  ;;  %915 = vmatpush1.bf16.msra.mxu1 %v4544_v30 }
 0x421   :  { %875 = vmatprep.subr.bf16.mxu0 %v4551_v31  ;;  %916 = vmatprep.subr.bf16.mxu1 %v4556_v32 }
 0x424   :  { %876 = vmatpush1.bf16.msra.mxu0 %v4566_v34  ;;  %917 = vmatpush1.bf16.msra.mxu1 %v4571_v35 }
 0x425   :  { %978 = vmatprep.subr.bf16.mxu0 %v4902_v3  ;;  %1019 = vmatprep.subr.bf16.mxu1 %v4908_v4 }
 0x4da   :  { %v778_v10 = vpop.f32.mrb[16].mxu0  ;;  %v819_v11 = vpop.f32.mrb[16].mxu1 }
 0x4db   :  { %v826_v13 = vadd.f32 %v778_v10, %v739_v9  ;;  %v780_v15 = vpop.f32.mrb[17].mxu0  ;;  %v821_v16 = vpop.f32.mrb[17].mxu1  ;;  %v828_v20 = vadd.f32 %v819_v11, %v741_v14  ;;  %v5012_v9 = vld [vmem:[%s6669_s2 + $0x84] ss:$16 sps:$4 sm:$0xff]   ;;  %v5018_v10 = vld [vmem:[%s6669_s2 + $0x8c] ss:$16 sps:$4 sm:$0xff]  }
 0x4dc   :  { %v827_v17 = vadd.f32 %v780_v15, %v740_v12  ;;  %v782_v18 = vpop.f32.mrb[18].mxu0  ;;  %v823_v19 = vpop.f32.mrb[18].mxu1  ;;  %v829_v25 = vadd.f32 %v821_v16, %v742_v24  ;;  %v5024_v11 = vld [vmem:[%s6669_s2 + $0x80] ss:$16 sps:$4 sm:$0xff]   ;;  %v5030_v12 = vld [vmem:[%s6669_s2 + $0x88] ss:$16 sps:$4 sm:$0xff]  }
 0x4dd   :  { %3948 = vtanh.f32 %v826_v13  ;;  %v783_v21 = vpop.f32.mrb[19].mxu0  ;;  %v824_v22 = vpop.f32.mrb[19].mxu1  ;;  %v5036_v13 = vld [vmem:[%s6669_s2 + $0xa4] ss:$16 sps:$4 sm:$0xff]   ;;  %v5042_v14 = vld [vmem:[%s6669_s2 + $0xac] ss:$16 sps:$4 sm:$0xff]  }
 0x4de   :  { %3950 = vtanh.f32 %v827_v17  ;;  %v5048_v15 = vld [vmem:[%s6669_s2 + $0xa0] ss:$16 sps:$4 sm:$0xff]   ;;  %v5054_v16 = vld [vmem:[%s6669_s2 + $0xa8] ss:$16 sps:$4 sm:$0xff]   ;;  %v5060_v17 = vld [vmem:[%s6669_s2 + $0xc4] ss:$16 sps:$4 sm:$0xff]   ;;  %v850_v19 = vpop.permute.xlu1 %849 }
 0x4df   :  { %3952 = vtanh.f32 %v828_v20  ;;  %v5066_v18 = vld [vmem:[%s6669_s2 + $0xcc] ss:$16 sps:$4 sm:$0xff]   ;;  %v852_v20 = vmul.f32 %v850_v19, %v4654_v54  ;;  %v853_v21 = vmul.f32 %v850_v19, %v4659_v56 }
 0x4e0   :  { %3954 = vtanh.f32 %v829_v25 }
 0x4e7   :  { %v3949_v26 = vpop.eup %3948 }
 0x4e8   :  { %v834_v55 = vmul.f32 0.5, %v3949_v26  ;;  %v3951_v2 = vpop.eup %3950 }
 0x4e9   :  { %v836_v37 = vmul.f32 0.5, %v3951_v2  ;;  %v3953_v28 = vpop.eup %3952 }
 0x4ea   :  { %v835_v38 = vadd.f32 0.5, %v834_v55  ;;  %v3955_v46 = vpop.eup %3954 }
 0x4eb   :  { %v837_v41 = vadd.f32 0.5, %v836_v37  ;;  %v838_v44 = vmul.f32 0.5, %v3955_v46 }
 0x4ec   :  { %v841_v42 = vmul.f32 %v3953_v28, %v835_v38  ;;  %v855_v28 = vmul.f32 %v850_v19, %v4675_v40 }
 0x4ed   :  { %v840_v58 = vmul.f32 %v837_v41, %v4864_v59  ;;  %v839_v49 = vadd.f32 0.5, %v838_v44  ;;  %v4944_v59 = vld [vmem:[%s6669_s2 + $0x2c] ss:$16 sps:$4 sm:$0xff]  }
 0x4ee   :  { %v859_v41 = vadd.f32 %v855_v28, %v4678_v52 }
 0x4ef   :  { %v4920_v45 = vadd.f32 %v841_v42, %v840_v58 }
 0x4f1   :  { %3956 = vtanh.f32 %v4920_v45 }
 0x4fb   :  { %v3957_v43 = vpop.eup %3956 }
 0x4fc   :  { %v844_v39 = vmul.f32 %v3957_v43, %v839_v49 }
 0x4fe   :  { %v860_v48 = vpack.c.bf16 %v844_v39, %v844_v39 }
 0x500   :  { %894 = vmatmul.mubr.bf16.vlgmr.msra.gmra.mrb[20].mxu0 %v860_v48  ;;  %935 = vmatmul.mubr.bf16.vlgmr.msra.gmra.mrb[20].mxu1 %v860_v48 }
 0x501   :  { %979 = vmatpush1.bf16.msra.mxu0 %v4926_v53  ;;  %1020 = vmatpush1.bf16.msra.mxu1 %v4932_v51 }
 0x502   :  { %980 = vmatprep.subr.bf16.mxu0 %v4938_v50  ;;  %1021 = vmatprep.subr.bf16.mxu1 %v4944_v59 }
 0x503   :  { %1010 = vmatprep.mubr.bf16.mxu0 %v4336_v1  ;;  %1051 = vmatprep.mubr.bf16.mxu1 %v4336_v1 }
 0x505   :  { %981 = vmatpush1.bf16.msra.mxu0 %v4952_v47  ;;  %1022 = vmatpush1.bf16.msra.mxu1 %v4958_v61 }
 0x506   :  { %982 = vmatprep.subr.bf16.mxu0 %v4964_v63  ;;  %1023 = vmatprep.subr.bf16.mxu1 %v4970_v33 }
 0x509   :  { %983 = vmatpush1.bf16.msra.mxu0 %v4976_v0  ;;  %1024 = vmatpush1.bf16.msra.mxu1 %v4982_v36 }
 0x50a   :  { %984 = vmatprep.subr.bf16.mxu0 %v4988_v5  ;;  %1025 = vmatprep.subr.bf16.mxu1 %v4994_v6 }
 0x50d   :  { %985 = vmatpush1.bf16.msra.mxu0 %v5000_v7  ;;  %1026 = vmatpush1.bf16.msra.mxu1 %v5006_v8 }
 0x50e   :  { %986 = vmatprep.subr.bf16.mxu0 %v5012_v9  ;;  %1027 = vmatprep.subr.bf16.mxu1 %v5018_v10 }
 0x511   :  { %987 = vmatpush1.bf16.msra.mxu0 %v5024_v11  ;;  %1028 = vmatpush1.bf16.msra.mxu1 %v5030_v12 }
 0x512   :  { %988 = vmatprep.subr.bf16.mxu0 %v5036_v13  ;;  %1029 = vmatprep.subr.bf16.mxu1 %v5042_v14 }
 0x515   :  { %989 = vmatpush1.bf16.msra.mxu0 %v5048_v15  ;;  %1030 = vmatpush1.bf16.msra.mxu1 %v5054_v16 }
 0x516   :  { %990 = vmatprep.subr.bf16.mxu0 %v5060_v17  ;;  %1031 = vmatprep.subr.bf16.mxu1 %v5066_v18 }
 0x519   :  { %991 = vmatpush1.bf16.msra.mxu0 %v4539_v29  ;;  %1032 = vmatpush1.bf16.msra.mxu1 %v4544_v30  ;;  %v854_v29 = vmul.f32 %v850_v19, %v4661_v57  ;;  %v856_v30 = vadd.f32 %v852_v20, %v4664_v60 }
 0x51a   :  { %992 = vmatprep.subr.bf16.mxu0 %v4551_v31  ;;  %1033 = vmatprep.subr.bf16.mxu1 %v4556_v32  ;;  %v857_v32 = vadd.f32 %v853_v21, %v4667_v62 }
 0x51d   :  { %993 = vmatpush1.bf16.msra.mxu0 %v4566_v34  ;;  %1034 = vmatpush1.bf16.msra.mxu1 %v4571_v35  ;;  %v858_v35 = vadd.f32 %v854_v29, %v4670_v27 }
 0x51e   :  { %1095 = vmatprep.subr.bf16.mxu0 %v4902_v3  ;;  %1136 = vmatprep.subr.bf16.mxu1 %v4908_v4 }
 0x5d3   :  { %v895_v31 = vpop.f32.mrb[20].mxu0  ;;  %v936_v22 = vpop.f32.mrb[20].mxu1 }
 0x5d4   :  { %v943_v34 = vadd.f32 %v895_v31, %v856_v30  ;;  %v897_v23 = vpop.f32.mrb[21].mxu0  ;;  %v938_v24 = vpop.f32.mrb[21].mxu1  ;;  %v945_v2 = vadd.f32 %v936_v22, %v858_v35  ;;  %v5124_v35 = vld [vmem:[%s6669_s2 + $0xc8] ss:$16 sps:$4 sm:$0xff]  }
 0x5d5   :  { %v944_v25 = vadd.f32 %v897_v23, %v857_v32  ;;  %v899_v26 = vpop.f32.mrb[22].mxu0  ;;  %v940_v55 = vpop.f32.mrb[22].mxu1  ;;  %v946_v42 = vadd.f32 %v938_v24, %v859_v41  ;;  %v5130_v23 = vld [vmem:[%s6669_s2 + $0xe4] ss:$16 sps:$4 sm:$0xff]   ;;  %v5136_v24 = vld [vmem:[%s6669_s2 + $0xec] ss:$16 sps:$4 sm:$0xff]  }
 0x5d6   :  { %3958 = vtanh.f32 %v943_v34  ;;  %v900_v38 = vpop.f32.mrb[23].mxu0  ;;  %v941_v37 = vpop.f32.mrb[23].mxu1  ;;  %v5148_v26 = vld [vmem:[%s6669_s2 + $0xe8] ss:$16 sps:$4 sm:$0xff]  }
 0x5d7   :  { %3960 = vtanh.f32 %v944_v25  ;;  %v5142_v25 = vld [vmem:[%s6669_s2 + $0xe0] ss:$16 sps:$4 sm:$0xff]   ;;  %v967_v55 = vpop.permute.xlu0 %966 }
 0x5d8   :  { %3962 = vtanh.f32 %v945_v2  ;;  %v969_v2 = vmul.f32 %v967_v55, %v4654_v54  ;;  %v970_v38 = vmul.f32 %v967_v55, %v4659_v56  ;;  %v971_v37 = vmul.f32 %v967_v55, %v4661_v57 }
 0x5d9   :  { %3964 = vtanh.f32 %v946_v42 }
 0x5da   :  { %v973_v28 = vadd.f32 %v969_v2, %v4664_v60 }
 0x5e0   :  { %v3959_v58 = vpop.eup %3958 }
 0x5e1   :  { %v951_v46 = vmul.f32 0.5, %v3959_v58  ;;  %v3961_v44 = vpop.eup %3960  ;;  %v974_v58 = vadd.f32 %v970_v38, %v4667_v62 }
 0x5e2   :  { %v953_v43 = vmul.f32 0.5, %v3961_v44  ;;  %v3963_v39 = vpop.eup %3962  ;;  %v975_v44 = vadd.f32 %v971_v37, %v4670_v27 }
 0x5e3   :  { %v952_v49 = vadd.f32 0.5, %v951_v46  ;;  %v3965_v19 = vpop.eup %3964 }
 0x5e4   :  { %v954_v48 = vadd.f32 0.5, %v953_v43  ;;  %v955_v30 = vmul.f32 0.5, %v3965_v19 }
 0x5e5   :  { %v958_v20 = vmul.f32 %v3963_v39, %v952_v49 }
 0x5e6   :  { %v957_v21 = vmul.f32 %v954_v48, %v4920_v45  ;;  %v956_v31 = vadd.f32 0.5, %v955_v30  ;;  %v5118_v45 = vld [vmem:[%s6669_s2 + $0xc0] ss:$16 sps:$4 sm:$0xff]  }
 0x5e8   :  { %v5086_v29 = vadd.f32 %v958_v20, %v957_v21 }
 0x5ea   :  { %3966 = vtanh.f32 %v5086_v29 }
 0x5f4   :  { %v3967_v22 = vpop.eup %3966 }
 0x5f5   :  { %v961_v32 = vmul.f32 %v3967_v22, %v956_v31  ;;  %v972_v31 = vmul.f32 %v967_v55, %v4675_v40 }
 0x5f7   :  { %v977_v34 = vpack.c.bf16 %v961_v32, %v961_v32  ;;  %v976_v22 = vadd.f32 %v972_v31, %v4678_v52 }
 0x5f9   :  { %1011 = vmatmul.mubr.bf16.vlgmr.msra.gmra.mrb[24].mxu0 %v977_v34  ;;  %1052 = vmatmul.mubr.bf16.vlgmr.msra.gmra.mrb[24].mxu1 %v977_v34 }
 0x5fa   :  { %1096 = vmatpush1.bf16.msra.mxu0 %v4926_v53  ;;  %1137 = vmatpush1.bf16.msra.mxu1 %v4932_v51 }
 0x5fb   :  { %1097 = vmatprep.subr.bf16.mxu0 %v4938_v50  ;;  %1138 = vmatprep.subr.bf16.mxu1 %v4944_v59 }
 0x5fc   :  { %1127 = vmatprep.mubr.bf16.mxu0 %v4336_v1  ;;  %1168 = vmatprep.mubr.bf16.mxu1 %v4336_v1 }
 0x5fe   :  { %1098 = vmatpush1.bf16.msra.mxu0 %v4952_v47  ;;  %1139 = vmatpush1.bf16.msra.mxu1 %v4958_v61 }
 0x5ff   :  { %1099 = vmatprep.subr.bf16.mxu0 %v4964_v63  ;;  %1140 = vmatprep.subr.bf16.mxu1 %v4970_v33 }
 0x602   :  { %1100 = vmatpush1.bf16.msra.mxu0 %v4976_v0  ;;  %1141 = vmatpush1.bf16.msra.mxu1 %v4982_v36 }
 0x603   :  { %1101 = vmatprep.subr.bf16.mxu0 %v4988_v5  ;;  %1142 = vmatprep.subr.bf16.mxu1 %v4994_v6 }
 0x606   :  { %1102 = vmatpush1.bf16.msra.mxu0 %v5000_v7  ;;  %1143 = vmatpush1.bf16.msra.mxu1 %v5006_v8 }
 0x607   :  { %1103 = vmatprep.subr.bf16.mxu0 %v5012_v9  ;;  %1144 = vmatprep.subr.bf16.mxu1 %v5018_v10 }
 0x60a   :  { %1104 = vmatpush1.bf16.msra.mxu0 %v5024_v11  ;;  %1145 = vmatpush1.bf16.msra.mxu1 %v5030_v12 }
 0x60b   :  { %1105 = vmatprep.subr.bf16.mxu0 %v5036_v13  ;;  %1146 = vmatprep.subr.bf16.mxu1 %v5042_v14 }
 0x60e   :  { %1106 = vmatpush1.bf16.msra.mxu0 %v5048_v15  ;;  %1147 = vmatpush1.bf16.msra.mxu1 %v5054_v16 }
 0x60f   :  { %1107 = vmatprep.subr.bf16.mxu0 %v5060_v17  ;;  %1148 = vmatprep.subr.bf16.mxu1 %v5066_v18 }
 0x612   :  { %1108 = vmatpush1.bf16.msra.mxu0 %v5118_v45  ;;  %1149 = vmatpush1.bf16.msra.mxu1 %v5124_v35 }
 0x613   :  { %1109 = vmatprep.subr.bf16.mxu0 %v5130_v23  ;;  %1150 = vmatprep.subr.bf16.mxu1 %v5136_v24 }
 0x616   :  { %1110 = vmatpush1.bf16.msra.mxu0 %v5142_v25  ;;  %1151 = vmatpush1.bf16.msra.mxu1 %v5148_v26 }
 0x617   :  { %1212 = vmatprep.subr.bf16.mxu0 %v4902_v3  ;;  %1253 = vmatprep.subr.bf16.mxu1 %v4908_v4 }
 0x6cc   :  { %v1012_v41 = vpop.f32.mrb[24].mxu0  ;;  %v1053_v42 = vpop.f32.mrb[24].mxu1 }
 0x6cd   :  { %v1060_v46 = vadd.f32 %v1012_v41, %v973_v28  ;;  %v1014_v49 = vpop.f32.mrb[25].mxu0  ;;  %v1055_v43 = vpop.f32.mrb[25].mxu1  ;;  %v1062_v21 = vadd.f32 %v1053_v42, %v975_v44 }
 0x6ce   :  { %v1061_v39 = vadd.f32 %v1014_v49, %v974_v58  ;;  %v1016_v48 = vpop.f32.mrb[26].mxu0  ;;  %v1057_v20 = vpop.f32.mrb[26].mxu1  ;;  %v1063_v32 = vadd.f32 %v1055_v43, %v976_v22 }
 0x6cf   :  { %3968 = vtanh.f32 %v1060_v46  ;;  %v1017_v19 = vpop.f32.mrb[27].mxu0  ;;  %v1058_v30 = vpop.f32.mrb[27].mxu1 }
 0x6d0   :  { %3970 = vtanh.f32 %v1061_v39 }
 0x6d1   :  { %3972 = vtanh.f32 %v1062_v21 }
 0x6d2   :  { %3974 = vtanh.f32 %v1063_v32 }
 0x6d9   :  { %v3969_v34 = vpop.eup %3968 }
 0x6da   :  { %v1068_v2 = vmul.f32 0.5, %v3969_v34  ;;  %v3971_v38 = vpop.eup %3970 }
 0x6db   :  { %v1070_v28 = vmul.f32 0.5, %v3971_v38  ;;  %v3973_v41 = vpop.eup %3972 }
 0x6dc   :  { %v1069_v37 = vadd.f32 0.5, %v1068_v2  ;;  %v3975_v55 = vpop.eup %3974 }
 0x6dd   :  { %v1071_v58 = vadd.f32 0.5, %v1070_v28  ;;  %v1072_v44 = vmul.f32 0.5, %v3975_v55 }
 0x6de   :  { %v1075_v49 = vmul.f32 %v3973_v41, %v1069_v37 }
 0x6df   :  { %v1074_v42 = vmul.f32 %v1071_v58, %v5086_v29  ;;  %v1073_v39 = vadd.f32 0.5, %v1072_v44  ;;  %v1084_v29 = vpop.permute.xlu1 %1083 }
 0x6e0   :  { %v1086_v21 = vmul.f32 %v1084_v29, %v4654_v54  ;;  %v1087_v19 = vmul.f32 %v1084_v29, %v4659_v56  ;;  %v1088_v30 = vmul.f32 %v1084_v29, %v4661_v57 }
 0x6e1   :  { %v5162_v46 = vadd.f32 %v1075_v49, %v1074_v42 }
 0x6e2   :  { %v1090_v31 = vadd.f32 %v1086_v21, %v4664_v60  ;;  %v1091_v34 = vadd.f32 %v1087_v19, %v4667_v62  ;;  %v1092_v38 = vadd.f32 %v1088_v30, %v4670_v27 }
 0x6e3   :  { %3976 = vtanh.f32 %v5162_v46 }
 0x6ed   :  { %v3977_v48 = vpop.eup %3976 }
 0x6ee   :  { %v1078_v43 = vmul.f32 %v3977_v48, %v1073_v39  ;;  %v1089_v39 = vmul.f32 %v1084_v29, %v4675_v40 }
 0x6f0   :  { %v1094_v20 = vpack.c.bf16 %v1078_v43, %v1078_v43  ;;  %v1093_v48 = vadd.f32 %v1089_v39, %v4678_v52 }
 0x6f2   :  { %1128 = vmatmul.mubr.bf16.vlgmr.msra.gmra.mrb[28].mxu0 %v1094_v20  ;;  %1169 = vmatmul.mubr.bf16.vlgmr.msra.gmra.mrb[28].mxu1 %v1094_v20 }
 0x6f3   :  { %1213 = vmatpush1.bf16.msra.mxu0 %v4926_v53  ;;  %1254 = vmatpush1.bf16.msra.mxu1 %v4932_v51 }
 0x6f4   :  { %1214 = vmatprep.subr.bf16.mxu0 %v4938_v50  ;;  %1255 = vmatprep.subr.bf16.mxu1 %v4944_v59 }
 0x6f5   :  { %1244 = vmatprep.mubr.bf16.mxu0 %v4336_v1  ;;  %1285 = vmatprep.mubr.bf16.mxu1 %v4336_v1 }
 0x6f7   :  { %1215 = vmatpush1.bf16.msra.mxu0 %v4952_v47  ;;  %1256 = vmatpush1.bf16.msra.mxu1 %v4958_v61 }
 0x6f8   :  { %1216 = vmatprep.subr.bf16.mxu0 %v4964_v63  ;;  %1257 = vmatprep.subr.bf16.mxu1 %v4970_v33 }
 0x6fb   :  { %1217 = vmatpush1.bf16.msra.mxu0 %v4976_v0  ;;  %1258 = vmatpush1.bf16.msra.mxu1 %v4982_v36 }
 0x6fc   :  { %1218 = vmatprep.subr.bf16.mxu0 %v4988_v5  ;;  %1259 = vmatprep.subr.bf16.mxu1 %v4994_v6 }
 0x6ff   :  { %1219 = vmatpush1.bf16.msra.mxu0 %v5000_v7  ;;  %1260 = vmatpush1.bf16.msra.mxu1 %v5006_v8 }
 0x700   :  { %1220 = vmatprep.subr.bf16.mxu0 %v5012_v9  ;;  %1261 = vmatprep.subr.bf16.mxu1 %v5018_v10 }
 0x703   :  { %1221 = vmatpush1.bf16.msra.mxu0 %v5024_v11  ;;  %1262 = vmatpush1.bf16.msra.mxu1 %v5030_v12 }
 0x704   :  { %1222 = vmatprep.subr.bf16.mxu0 %v5036_v13  ;;  %1263 = vmatprep.subr.bf16.mxu1 %v5042_v14 }
 0x707   :  { %1223 = vmatpush1.bf16.msra.mxu0 %v5048_v15  ;;  %1264 = vmatpush1.bf16.msra.mxu1 %v5054_v16 }
 0x708   :  { %1224 = vmatprep.subr.bf16.mxu0 %v5060_v17  ;;  %1265 = vmatprep.subr.bf16.mxu1 %v5066_v18 }
 0x70b   :  { %1225 = vmatpush1.bf16.msra.mxu0 %v5118_v45  ;;  %1266 = vmatpush1.bf16.msra.mxu1 %v5124_v35 }
 0x70c   :  { %1226 = vmatprep.subr.bf16.mxu0 %v5130_v23  ;;  %1267 = vmatprep.subr.bf16.mxu1 %v5136_v24 }
 0x70f   :  { %1227 = vmatpush1.bf16.msra.mxu0 %v5142_v25  ;;  %1268 = vmatpush1.bf16.msra.mxu1 %v5148_v26 }
 0x710   :  { %1329 = vmatprep.subr.bf16.mxu0 %v4902_v3  ;;  %1370 = vmatprep.subr.bf16.mxu1 %v4908_v4 }
 0x7c5   :  { %v1129_v22 = vpop.f32.mrb[28].mxu0  ;;  %v1170_v32 = vpop.f32.mrb[28].mxu1 }
 0x7c6   :  { %v1177_v2 = vadd.f32 %v1129_v22, %v1090_v31  ;;  %v1131_v37 = vpop.f32.mrb[29].mxu0  ;;  %v1172_v28 = vpop.f32.mrb[29].mxu1  ;;  %v1179_v42 = vadd.f32 %v1170_v32, %v1092_v38 }
 0x7c7   :  { %v1178_v41 = vadd.f32 %v1131_v37, %v1091_v34  ;;  %v1133_v58 = vpop.f32.mrb[30].mxu0  ;;  %v1174_v49 = vpop.f32.mrb[30].mxu1  ;;  %v1180_v43 = vadd.f32 %v1172_v28, %v1093_v48 }
 0x7c8   :  { %3978 = vtanh.f32 %v1177_v2  ;;  %v1134_v55 = vpop.f32.mrb[31].mxu0  ;;  %v1175_v44 = vpop.f32.mrb[31].mxu1 }
 0x7c9   :  { %3980 = vtanh.f32 %v1178_v41 }
 0x7ca   :  { %3982 = vtanh.f32 %v1179_v42 }
 0x7cb   :  { %3984 = vtanh.f32 %v1180_v43 }
 0x7d2   :  { %v3979_v20 = vpop.eup %3978 }
 0x7d3   :  { %v1185_v21 = vmul.f32 0.5, %v3979_v20  ;;  %v3981_v19 = vpop.eup %3980 }
 0x7d4   :  { %v1187_v31 = vmul.f32 0.5, %v3981_v19  ;;  %v3983_v22 = vpop.eup %3982 }
 0x7d5   :  { %v1186_v30 = vadd.f32 0.5, %v1185_v21  ;;  %v3985_v29 = vpop.eup %3984 }
 0x7d6   :  { %v1188_v34 = vadd.f32 0.5, %v1187_v31  ;;  %v1189_v38 = vmul.f32 0.5, %v3985_v29 }
 0x7d7   :  { %v1192_v37 = vmul.f32 %v3983_v22, %v1186_v30 }
 0x7d8   :  { %v1191_v32 = vmul.f32 %v1188_v34, %v5162_v46  ;;  %v1190_v41 = vadd.f32 0.5, %v1189_v38  ;;  %v1201_v46 = vpop.permute.xlu0 %1200 }
 0x7d9   :  { %v1203_v42 = vmul.f32 %v1201_v46, %v4654_v54  ;;  %v1204_v55 = vmul.f32 %v1201_v46, %v4659_v56  ;;  %v1205_v44 = vmul.f32 %v1201_v46, %v4661_v57 }
 0x7da   :  { %v5208_v2 = vadd.f32 %v1192_v37, %v1191_v32 }
 0x7db   :  { %v1207_v39 = vadd.f32 %v1203_v42, %v4664_v60  ;;  %v1208_v20 = vadd.f32 %v1204_v55, %v4667_v62  ;;  %v1209_v19 = vadd.f32 %v1205_v44, %v4670_v27 }
 0x7dc   :  { %3986 = vtanh.f32 %v5208_v2 }
 0x7e6   :  { %v3987_v58 = vpop.eup %3986 }
 0x7e7   :  { %v1195_v28 = vmul.f32 %v3987_v58, %v1190_v41  ;;  %v1206_v41 = vmul.f32 %v1201_v46, %v4675_v40 }
 0x7e9   :  { %v1211_v49 = vpack.c.bf16 %v1195_v28, %v1195_v28  ;;  %v1210_v58 = vadd.f32 %v1206_v41, %v4678_v52 }
 0x7eb   :  { %1245 = vmatmul.mubr.bf16.vlgmr.msra.gmra.mrb[32].mxu0 %v1211_v49  ;;  %1286 = vmatmul.mubr.bf16.vlgmr.msra.gmra.mrb[32].mxu1 %v1211_v49 }
 0x7ec   :  { %1330 = vmatpush1.bf16.msra.mxu0 %v4926_v53  ;;  %1371 = vmatpush1.bf16.msra.mxu1 %v4932_v51 }
 0x7ed   :  { %1331 = vmatprep.subr.bf16.mxu0 %v4938_v50  ;;  %1372 = vmatprep.subr.bf16.mxu1 %v4944_v59 }
 0x7ee   :  { %1361 = vmatprep.mubr.bf16.mxu0 %v4336_v1  ;;  %1402 = vmatprep.mubr.bf16.mxu1 %v4336_v1 }
 0x7f0   :  { %1332 = vmatpush1.bf16.msra.mxu0 %v4952_v47  ;;  %1373 = vmatpush1.bf16.msra.mxu1 %v4958_v61 }
 0x7f1   :  { %1333 = vmatprep.subr.bf16.mxu0 %v4964_v63  ;;  %1374 = vmatprep.subr.bf16.mxu1 %v4970_v33 }
 0x7f4   :  { %1334 = vmatpush1.bf16.msra.mxu0 %v4976_v0  ;;  %1375 = vmatpush1.bf16.msra.mxu1 %v4982_v36 }
 0x7f5   :  { %1335 = vmatprep.subr.bf16.mxu0 %v4988_v5  ;;  %1376 = vmatprep.subr.bf16.mxu1 %v4994_v6 }
 0x7f8   :  { %1336 = vmatpush1.bf16.msra.mxu0 %v5000_v7  ;;  %1377 = vmatpush1.bf16.msra.mxu1 %v5006_v8 }
 0x7f9   :  { %1337 = vmatprep.subr.bf16.mxu0 %v5012_v9  ;;  %1378 = vmatprep.subr.bf16.mxu1 %v5018_v10 }
 0x7fc   :  { %1338 = vmatpush1.bf16.msra.mxu0 %v5024_v11  ;;  %1379 = vmatpush1.bf16.msra.mxu1 %v5030_v12 }
 0x7fd   :  { %1339 = vmatprep.subr.bf16.mxu0 %v5036_v13  ;;  %1380 = vmatprep.subr.bf16.mxu1 %v5042_v14 }
 0x800   :  { %1340 = vmatpush1.bf16.msra.mxu0 %v5048_v15  ;;  %1381 = vmatpush1.bf16.msra.mxu1 %v5054_v16 }
 0x801   :  { %1341 = vmatprep.subr.bf16.mxu0 %v5060_v17  ;;  %1382 = vmatprep.subr.bf16.mxu1 %v5066_v18 }
 0x804   :  { %1342 = vmatpush1.bf16.msra.mxu0 %v5118_v45  ;;  %1383 = vmatpush1.bf16.msra.mxu1 %v5124_v35 }
 0x805   :  { %1343 = vmatprep.subr.bf16.mxu0 %v5130_v23  ;;  %1384 = vmatprep.subr.bf16.mxu1 %v5136_v24 }
 0x808   :  { %1344 = vmatpush1.bf16.msra.mxu0 %v5142_v25  ;;  %1385 = vmatpush1.bf16.msra.mxu1 %v5148_v26 }
 0x809   :  { %1446 = vmatprep.subr.bf16.mxu0 %v4902_v3  ;;  %1487 = vmatprep.subr.bf16.mxu1 %v4908_v4 }
 0x8be   :  { %v1246_v48 = vpop.f32.mrb[32].mxu0  ;;  %v1287_v43 = vpop.f32.mrb[32].mxu1 }
 0x8bf   :  { %v1294_v21 = vadd.f32 %v1246_v48, %v1207_v39  ;;  %v1248_v30 = vpop.f32.mrb[33].mxu0  ;;  %v1289_v31 = vpop.f32.mrb[33].mxu1  ;;  %v1296_v32 = vadd.f32 %v1287_v43, %v1209_v19 }
 0x8c0   :  { %v1295_v22 = vadd.f32 %v1248_v30, %v1208_v20  ;;  %v1250_v34 = vpop.f32.mrb[34].mxu0  ;;  %v1291_v37 = vpop.f32.mrb[34].mxu1  ;;  %v1297_v28 = vadd.f32 %v1289_v31, %v1210_v58 }
 0x8c1   :  { %3988 = vtanh.f32 %v1294_v21  ;;  %v1251_v29 = vpop.f32.mrb[35].mxu0  ;;  %v1292_v38 = vpop.f32.mrb[35].mxu1 }
 0x8c2   :  { %3990 = vtanh.f32 %v1295_v22 }
 0x8c3   :  { %3992 = vtanh.f32 %v1296_v32 }
 0x8c4   :  { %3994 = vtanh.f32 %v1297_v28 }
 0x8cb   :  { %v3989_v49 = vpop.eup %3988 }
 0x8cc   :  { %v1302_v42 = vmul.f32 0.5, %v3989_v49  ;;  %v3991_v55 = vpop.eup %3990 }
 0x8cd   :  { %v1304_v39 = vmul.f32 0.5, %v3991_v55  ;;  %v3993_v48 = vpop.eup %3992 }
 0x8ce   :  { %v1303_v44 = vadd.f32 0.5, %v1302_v42  ;;  %v3995_v46 = vpop.eup %3994 }
 0x8cf   :  { %v1305_v20 = vadd.f32 0.5, %v1304_v39  ;;  %v1306_v19 = vmul.f32 0.5, %v3995_v46 }
 0x8d0   :  { %v1309_v30 = vmul.f32 %v3993_v48, %v1303_v44 }
 0x8d1   :  { %v1308_v43 = vmul.f32 %v1305_v20, %v5208_v2  ;;  %v1307_v22 = vadd.f32 0.5, %v1306_v19  ;;  %v1318_v2 = vpop.permute.xlu1 %1317 }
 0x8d2   :  { %v1320_v32 = vmul.f32 %v1318_v2, %v4654_v54  ;;  %v1321_v29 = vmul.f32 %v1318_v2, %v4659_v56  ;;  %v1322_v38 = vmul.f32 %v1318_v2, %v4661_v57 }
 0x8d3   :  { %v5254_v21 = vadd.f32 %v1309_v30, %v1308_v43 }
 0x8d4   :  { %v1324_v41 = vadd.f32 %v1320_v32, %v4664_v60  ;;  %v1325_v49 = vadd.f32 %v1321_v29, %v4667_v62  ;;  %v1326_v55 = vadd.f32 %v1322_v38, %v4670_v27 }
 0x8d5   :  { %3996 = vtanh.f32 %v5254_v21 }
 0x8df   :  { %v3997_v34 = vpop.eup %3996 }
 0x8e0   :  { %v1312_v31 = vmul.f32 %v3997_v34, %v1307_v22  ;;  %v1323_v22 = vmul.f32 %v1318_v2, %v4675_v40 }
 0x8e2   :  { %v1328_v37 = vpack.c.bf16 %v1312_v31, %v1312_v31  ;;  %v1327_v34 = vadd.f32 %v1323_v22, %v4678_v52 }
 0x8e4   :  { %1362 = vmatmul.mubr.bf16.vlgmr.msra.gmra.mrb[36].mxu0 %v1328_v37  ;;  %1403 = vmatmul.mubr.bf16.vlgmr.msra.gmra.mrb[36].mxu1 %v1328_v37 }
 0x8e5   :  { %1447 = vmatpush1.bf16.msra.mxu0 %v4926_v53  ;;  %1488 = vmatpush1.bf16.msra.mxu1 %v4932_v51 }
 0x8e6   :  { %1448 = vmatprep.subr.bf16.mxu0 %v4938_v50  ;;  %1489 = vmatprep.subr.bf16.mxu1 %v4944_v59 }
 0x8e7   :  { %1478 = vmatprep.mubr.bf16.mxu0 %v4336_v1  ;;  %1519 = vmatprep.mubr.bf16.mxu1 %v4336_v1 }
 0x8e9   :  { %1449 = vmatpush1.bf16.msra.mxu0 %v4952_v47  ;;  %1490 = vmatpush1.bf16.msra.mxu1 %v4958_v61 }
 0x8ea   :  { %1450 = vmatprep.subr.bf16.mxu0 %v4964_v63  ;;  %1491 = vmatprep.subr.bf16.mxu1 %v4970_v33 }
 0x8ed   :  { %1451 = vmatpush1.bf16.msra.mxu0 %v4976_v0  ;;  %1492 = vmatpush1.bf16.msra.mxu1 %v4982_v36 }
 0x8ee   :  { %1452 = vmatprep.subr.bf16.mxu0 %v4988_v5  ;;  %1493 = vmatprep.subr.bf16.mxu1 %v4994_v6 }
 0x8f1   :  { %1453 = vmatpush1.bf16.msra.mxu0 %v5000_v7  ;;  %1494 = vmatpush1.bf16.msra.mxu1 %v5006_v8 }
 0x8f2   :  { %1454 = vmatprep.subr.bf16.mxu0 %v5012_v9  ;;  %1495 = vmatprep.subr.bf16.mxu1 %v5018_v10 }
 0x8f5   :  { %1455 = vmatpush1.bf16.msra.mxu0 %v5024_v11  ;;  %1496 = vmatpush1.bf16.msra.mxu1 %v5030_v12 }
 0x8f6   :  { %1456 = vmatprep.subr.bf16.mxu0 %v5036_v13  ;;  %1497 = vmatprep.subr.bf16.mxu1 %v5042_v14 }
 0x8f9   :  { %1457 = vmatpush1.bf16.msra.mxu0 %v5048_v15  ;;  %1498 = vmatpush1.bf16.msra.mxu1 %v5054_v16 }
 0x8fa   :  { %1458 = vmatprep.subr.bf16.mxu0 %v5060_v17  ;;  %1499 = vmatprep.subr.bf16.mxu1 %v5066_v18 }
 0x8fd   :  { %1459 = vmatpush1.bf16.msra.mxu0 %v5118_v45  ;;  %1500 = vmatpush1.bf16.msra.mxu1 %v5124_v35 }
 0x8fe   :  { %1460 = vmatprep.subr.bf16.mxu0 %v5130_v23  ;;  %1501 = vmatprep.subr.bf16.mxu1 %v5136_v24 }
 0x901   :  { %1461 = vmatpush1.bf16.msra.mxu0 %v5142_v25  ;;  %1502 = vmatpush1.bf16.msra.mxu1 %v5148_v26 }
 0x902   :  { %1563 = vmatprep.subr.bf16.mxu0 %v4902_v3  ;;  %1604 = vmatprep.subr.bf16.mxu1 %v4908_v4 }
 0x9b7   :  { %v1363_v58 = vpop.f32.mrb[36].mxu0  ;;  %v1404_v28 = vpop.f32.mrb[36].mxu1 }
 0x9b8   :  { %v1411_v42 = vadd.f32 %v1363_v58, %v1324_v41  ;;  %v1365_v44 = vpop.f32.mrb[37].mxu0  ;;  %v1406_v39 = vpop.f32.mrb[37].mxu1  ;;  %v1413_v43 = vadd.f32 %v1404_v28, %v1326_v55 }
 0x9b9   :  { %v1412_v48 = vadd.f32 %v1365_v44, %v1325_v49  ;;  %v1367_v20 = vpop.f32.mrb[38].mxu0  ;;  %v1408_v30 = vpop.f32.mrb[38].mxu1  ;;  %v1414_v31 = vadd.f32 %v1406_v39, %v1327_v34 }
 0x9ba   :  { %3998 = vtanh.f32 %v1411_v42  ;;  %v1368_v46 = vpop.f32.mrb[39].mxu0  ;;  %v1409_v19 = vpop.f32.mrb[39].mxu1 }
 0x9bb   :  { %4000 = vtanh.f32 %v1412_v48 }
 0x9bc   :  { %4002 = vtanh.f32 %v1413_v43 }
 0x9bd   :  { %4004 = vtanh.f32 %v1414_v31 }
 0x9c4   :  { %v3999_v37 = vpop.eup %3998 }
 0x9c5   :  { %v1419_v32 = vmul.f32 0.5, %v3999_v37  ;;  %v4001_v29 = vpop.eup %4000 }
 0x9c6   :  { %v1421_v41 = vmul.f32 0.5, %v4001_v29  ;;  %v4003_v58 = vpop.eup %4002 }
 0x9c7   :  { %v1420_v38 = vadd.f32 0.5, %v1419_v32  ;;  %v4005_v2 = vpop.eup %4004 }
 0x9c8   :  { %v1422_v49 = vadd.f32 0.5, %v1421_v41  ;;  %v1423_v55 = vmul.f32 0.5, %v4005_v2 }
 0x9c9   :  { %v1426_v44 = vmul.f32 %v4003_v58, %v1420_v38 }
 0x9ca   :  { %v1425_v28 = vmul.f32 %v1422_v49, %v5254_v21  ;;  %v1424_v48 = vadd.f32 0.5, %v1423_v55  ;;  %v1435_v21 = vpop.permute.xlu0 %1434 }
 0x9cb   :  { %v1437_v43 = vmul.f32 %v1435_v21, %v4654_v54  ;;  %v1438_v46 = vmul.f32 %v1435_v21, %v4659_v56  ;;  %v1439_v19 = vmul.f32 %v1435_v21, %v4661_v57  ;;  %v1440_v2 = vmul.f32 %v1435_v21, %v4675_v40 }
 0x9cc   :  { %v5300_v42 = vadd.f32 %v1426_v44, %v1425_v28 }
 0x9cd   :  { %v1441_v22 = vadd.f32 %v1437_v43, %v4664_v60  ;;  %v1442_v37 = vadd.f32 %v1438_v46, %v4667_v62  ;;  %v1443_v29 = vadd.f32 %v1439_v19, %v4670_v27  ;;  %v1444_v55 = vadd.f32 %v1440_v2, %v4678_v52 }
 0x9ce   :  { %4006 = vtanh.f32 %v5300_v42 }
 0x9d8   :  { %v4007_v20 = vpop.eup %4006 }
 0x9d9   :  { %v1429_v39 = vmul.f32 %v4007_v20, %v1424_v48 }
 0x9db   :  { %v1445_v30 = vpack.c.bf16 %v1429_v39, %v1429_v39 }
 0x9dd   :  { %1479 = vmatmul.mubr.bf16.vlgmr.msra.gmra.mrb[40].mxu0 %v1445_v30  ;;  %1520 = vmatmul.mubr.bf16.vlgmr.msra.gmra.mrb[40].mxu1 %v1445_v30 }
 0x9de   :  { %1564 = vmatpush1.bf16.msra.mxu0 %v4926_v53  ;;  %1605 = vmatpush1.bf16.msra.mxu1 %v4932_v51 }
 0x9df   :  { %1565 = vmatprep.subr.bf16.mxu0 %v4938_v50  ;;  %1606 = vmatprep.subr.bf16.mxu1 %v4944_v59 }
 0x9e0   :  { %1595 = vmatprep.mubr.bf16.mxu0 %v4336_v1  ;;  %1636 = vmatprep.mubr.bf16.mxu1 %v4336_v1 }
 0x9e2   :  { %1566 = vmatpush1.bf16.msra.mxu0 %v4952_v47  ;;  %1607 = vmatpush1.bf16.msra.mxu1 %v4958_v61 }
 0x9e3   :  { %1567 = vmatprep.subr.bf16.mxu0 %v4964_v63  ;;  %1608 = vmatprep.subr.bf16.mxu1 %v4970_v33 }
 0x9e6   :  { %1568 = vmatpush1.bf16.msra.mxu0 %v4976_v0  ;;  %1609 = vmatpush1.bf16.msra.mxu1 %v4982_v36 }
 0x9e7   :  { %1569 = vmatprep.subr.bf16.mxu0 %v4988_v5  ;;  %1610 = vmatprep.subr.bf16.mxu1 %v4994_v6 }
 0x9ea   :  { %1570 = vmatpush1.bf16.msra.mxu0 %v5000_v7  ;;  %1611 = vmatpush1.bf16.msra.mxu1 %v5006_v8 }
 0x9eb   :  { %1571 = vmatprep.subr.bf16.mxu0 %v5012_v9  ;;  %1612 = vmatprep.subr.bf16.mxu1 %v5018_v10 }
 0x9ee   :  { %1572 = vmatpush1.bf16.msra.mxu0 %v5024_v11  ;;  %1613 = vmatpush1.bf16.msra.mxu1 %v5030_v12 }
 0x9ef   :  { %1573 = vmatprep.subr.bf16.mxu0 %v5036_v13  ;;  %1614 = vmatprep.subr.bf16.mxu1 %v5042_v14 }
 0x9f2   :  { %1574 = vmatpush1.bf16.msra.mxu0 %v5048_v15  ;;  %1615 = vmatpush1.bf16.msra.mxu1 %v5054_v16 }
 0x9f3   :  { %1575 = vmatprep.subr.bf16.mxu0 %v5060_v17  ;;  %1616 = vmatprep.subr.bf16.mxu1 %v5066_v18 }
 0x9f6   :  { %1576 = vmatpush1.bf16.msra.mxu0 %v5118_v45  ;;  %1617 = vmatpush1.bf16.msra.mxu1 %v5124_v35 }
 0x9f7   :  { %1577 = vmatprep.subr.bf16.mxu0 %v5130_v23  ;;  %1618 = vmatprep.subr.bf16.mxu1 %v5136_v24 }
 0x9fa   :  { %1578 = vmatpush1.bf16.msra.mxu0 %v5142_v25  ;;  %1619 = vmatpush1.bf16.msra.mxu1 %v5148_v26 }
 0x9fb   :  { %1680 = vmatprep.subr.bf16.mxu0 %v4902_v3  ;;  %1721 = vmatprep.subr.bf16.mxu1 %v4908_v4 }
 0xab0   :  { %v1480_v34 = vpop.f32.mrb[40].mxu0  ;;  %v1521_v31 = vpop.f32.mrb[40].mxu1 }
 0xab1   :  { %v1528_v32 = vadd.f32 %v1480_v34, %v1441_v22  ;;  %v1482_v38 = vpop.f32.mrb[41].mxu0  ;;  %v1523_v3 = vpop.f32.mrb[41].mxu1  ;;  %v1530_v49 = vadd.f32 %v1521_v31, %v1443_v29 }
 0xab2   :  { %v1529_v41 = vadd.f32 %v1482_v38, %v1442_v37  ;;  %v1484_v4 = vpop.f32.mrb[42].mxu0  ;;  %v1525_v58 = vpop.f32.mrb[42].mxu1  ;;  %v1531_v48 = vadd.f32 %v1523_v3, %v1444_v55 }
 0xab3   :  { %4008 = vtanh.f32 %v1528_v32  ;;  %v1485_v44 = vpop.f32.mrb[43].mxu0  ;;  %v1526_v28 = vpop.f32.mrb[43].mxu1 }
 0xab4   :  { %4010 = vtanh.f32 %v1529_v41 }
 0xab5   :  { %4012 = vtanh.f32 %v1530_v49 }
 0xab6   :  { %4014 = vtanh.f32 %v1531_v48 }
 0xabd   :  { %v4009_v20 = vpop.eup %4008 }
 0xabe   :  { %v1536_v39 = vmul.f32 0.5, %v4009_v20  ;;  %v4011_v30 = vpop.eup %4010 }
 0xabf   :  { %v1538_v46 = vmul.f32 0.5, %v4011_v30  ;;  %v4013_v19 = vpop.eup %4012 }
 0xac0   :  { %v1537_v43 = vadd.f32 0.5, %v1536_v39  ;;  %v4015_v21 = vpop.eup %4014 }
 0xac1   :  { %v1539_v22 = vadd.f32 0.5, %v1538_v46  ;;  %v1540_v32 = vmul.f32 0.5, %v4015_v21  ;;  %v5434_v21 = vld [vmem:[%s6669_s2 + $0x20] ss:$16 sps:$4 sm:$0xff]  }
 0xac2   :  { %v1543_v34 = vmul.f32 %v4013_v19, %v1537_v43 }
 0xac3   :  { %v1542_v31 = vmul.f32 %v1539_v22, %v5300_v42  ;;  %v1541_v29 = vadd.f32 0.5, %v1540_v32  ;;  %v5408_v22 = vld [vmem:[%s6669_s2] ss:$16 sps:$4 sm:$0xff]   ;;  %v5440_v32 = vld [vmem:[%s6669_s2 + $0x28] ss:$16 sps:$4 sm:$0xff]  }
 0xac5   :  { %v5346_v37 = vadd.f32 %v1543_v34, %v1542_v31  ;;  %v5414_v34 = vld [vmem:[%s6669_s2 + $0x8] ss:$16 sps:$4 sm:$0xff]   ;;  %v5420_v31 = vld [vmem:[%s6669_s2 + $0x24] ss:$16 sps:$4 sm:$0xff]  }
 0xac7   :  { %4016 = vtanh.f32 %v5346_v37 }
 0xad1   :  { %v4017_v38 = vpop.eup %4016 }
 0xad2   :  { %v1546_v3 = vmul.f32 %v4017_v38, %v1541_v29  ;;  %v5446_v29 = vld [vmem:[%s6669_s2 + $0x44] ss:$16 sps:$4 sm:$0xff]   ;;  %v5452_v38 = vld [vmem:[%s6669_s2 + $0x4c] ss:$16 sps:$4 sm:$0xff]  }
 0xad4   :  { %v1562_v41 = vpack.c.bf16 %v1546_v3, %v1546_v3  ;;  %v5458_v3 = vld [vmem:[%s6669_s2 + $0x40] ss:$16 sps:$4 sm:$0xff]  }
 0xad6   :  { %1596 = vmatmul.mubr.bf16.vlgmr.msra.gmra.mrb[44].mxu0 %v1562_v41  ;;  %1637 = vmatmul.mubr.bf16.vlgmr.msra.gmra.mrb[44].mxu1 %v1562_v41  ;;  %v5464_v41 = vld [vmem:[%s6669_s2 + $0x48] ss:$16 sps:$4 sm:$0xff]  }
 0xad7   :  { %1681 = vmatpush1.bf16.msra.mxu0 %v4926_v53  ;;  %1722 = vmatpush1.bf16.msra.mxu1 %v4932_v51  ;;  %v5384_v53 = vld [vmem:[%s6669_s2 + $0x4] ss:$16 sps:$4 sm:$0xff]   ;;  %v5390_v51 = vld [vmem:[%s6669_s2 + $0xc] ss:$16 sps:$4 sm:$0xff]  }
 0xad8   :  { %1682 = vmatprep.subr.bf16.mxu0 %v4938_v50  ;;  %1723 = vmatprep.subr.bf16.mxu1 %v4944_v59  ;;  %v1552_v50 = vpop.permute.xlu1 %1551 }
 0xad9   :  { %1712 = vmatprep.mubr.bf16.mxu0 %v4336_v1  ;;  %1753 = vmatprep.mubr.bf16.mxu1 %v4336_v1  ;;  %v1554_v59 = vmul.f32 %v1552_v50, %v4654_v54 }
 0xadb   :  { %1683 = vmatpush1.bf16.msra.mxu0 %v4952_v47  ;;  %1724 = vmatpush1.bf16.msra.mxu1 %v4958_v61  ;;  %v1555_v47 = vmul.f32 %v1552_v50, %v4659_v56  ;;  %v1556_v61 = vmul.f32 %v1552_v50, %v4661_v57 }
 0xadc   :  { %1684 = vmatprep.subr.bf16.mxu0 %v4964_v63  ;;  %1725 = vmatprep.subr.bf16.mxu1 %v4970_v33  ;;  %v1558_v63 = vadd.f32 %v1554_v59, %v4664_v60  ;;  %v5476_v59 = vld [vmem:[%s6669_s2 + $0x6c] ss:$16 sps:$4 sm:$0xff]  }
 0xadf   :  { %1685 = vmatpush1.bf16.msra.mxu0 %v4976_v0  ;;  %1726 = vmatpush1.bf16.msra.mxu1 %v4982_v36  ;;  %v1559_v36 = vadd.f32 %v1555_v47, %v4667_v62  ;;  %v5482_v47 = vld [vmem:[%s6669_s2 + $0x60] ss:$16 sps:$4 sm:$0xff]  }
 0xae0   :  { %1686 = vmatprep.subr.bf16.mxu0 %v4988_v5  ;;  %1727 = vmatprep.subr.bf16.mxu1 %v4994_v6  ;;  %v1560_v6 = vadd.f32 %v1556_v61, %v4670_v27  ;;  %v5488_v61 = vld [vmem:[%s6669_s2 + $0x68] ss:$16 sps:$4 sm:$0xff]  }
 0xae3   :  { %1687 = vmatpush1.bf16.msra.mxu0 %v5000_v7  ;;  %1728 = vmatpush1.bf16.msra.mxu1 %v5006_v8 }
 0xae4   :  { %1688 = vmatprep.subr.bf16.mxu0 %v5012_v9  ;;  %1729 = vmatprep.subr.bf16.mxu1 %v5018_v10 }
 0xae7   :  { %1689 = vmatpush1.bf16.msra.mxu0 %v5024_v11  ;;  %1730 = vmatpush1.bf16.msra.mxu1 %v5030_v12 }
 0xae8   :  { %1690 = vmatprep.subr.bf16.mxu0 %v5036_v13  ;;  %1731 = vmatprep.subr.bf16.mxu1 %v5042_v14 }
 0xaeb   :  { %1691 = vmatpush1.bf16.msra.mxu0 %v5048_v15  ;;  %1732 = vmatpush1.bf16.msra.mxu1 %v5054_v16  ;;  %v1557_v15 = vmul.f32 %v1552_v50, %v4675_v40  ;;  %v5470_v50 = vld [vmem:[%s6669_s2 + $0x64] ss:$16 sps:$4 sm:$0xff]  }
 0xaec   :  { %1692 = vmatprep.subr.bf16.mxu0 %v5060_v17  ;;  %1733 = vmatprep.subr.bf16.mxu1 %v5066_v18 }
 0xaed   :  { %v1561_v16 = vadd.f32 %v1557_v15, %v4678_v52 }
 0xaef   :  { %1693 = vmatpush1.bf16.msra.mxu0 %v5118_v45  ;;  %1734 = vmatpush1.bf16.msra.mxu1 %v5124_v35 }
 0xaf0   :  { %1694 = vmatprep.subr.bf16.mxu0 %v5130_v23  ;;  %1735 = vmatprep.subr.bf16.mxu1 %v5136_v24 }
 0xaf3   :  { %1695 = vmatpush1.bf16.msra.mxu0 %v5142_v25  ;;  %1736 = vmatpush1.bf16.msra.mxu1 %v5148_v26 }
 0xaf4   :  { %1797 = vmatprep.subr.bf16.mxu0 %v5384_v53  ;;  %1838 = vmatprep.subr.bf16.mxu1 %v5390_v51 }
 0xba9   :  { %v1597_v33 = vpop.f32.mrb[44].mxu0  ;;  %v1638_v0 = vpop.f32.mrb[44].mxu1 }
 0xbaa   :  { %v1645_v5 = vadd.f32 %v1597_v33, %v1558_v63  ;;  %v1599_v7 = vpop.f32.mrb[45].mxu0  ;;  %v1640_v8 = vpop.f32.mrb[45].mxu1  ;;  %v1647_v12 = vadd.f32 %v1638_v0, %v1560_v6  ;;  %v5494_v63 = vld [vmem:[%s6669_s2 + $0x84] ss:$16 sps:$4 sm:$0xff]   ;;  %v5500_v33 = vld [vmem:[%s6669_s2 + $0x8c] ss:$16 sps:$4 sm:$0xff]  }
 0xbab   :  { %v1646_v9 = vadd.f32 %v1599_v7, %v1559_v36  ;;  %v1601_v10 = vpop.f32.mrb[46].mxu0  ;;  %v1642_v11 = vpop.f32.mrb[46].mxu1  ;;  %v1648_v17 = vadd.f32 %v1640_v8, %v1561_v16  ;;  %v5506_v0 = vld [vmem:[%s6669_s2 + $0x80] ss:$16 sps:$4 sm:$0xff]   ;;  %v5512_v36 = vld [vmem:[%s6669_s2 + $0x88] ss:$16 sps:$4 sm:$0xff]  }
 0xbac   :  { %4018 = vtanh.f32 %v1645_v5  ;;  %v1602_v13 = vpop.f32.mrb[47].mxu0  ;;  %v1643_v14 = vpop.f32.mrb[47].mxu1  ;;  %v5518_v5 = vld [vmem:[%s6669_s2 + $0xa4] ss:$16 sps:$4 sm:$0xff]   ;;  %v5524_v6 = vld [vmem:[%s6669_s2 + $0xac] ss:$16 sps:$4 sm:$0xff]  }
 0xbad   :  { %4020 = vtanh.f32 %v1646_v9  ;;  %v5530_v7 = vld [vmem:[%s6669_s2 + $0xa0] ss:$16 sps:$4 sm:$0xff]   ;;  %v5536_v8 = vld [vmem:[%s6669_s2 + $0xa8] ss:$16 sps:$4 sm:$0xff]   ;;  %v5542_v9 = vld [vmem:[%s6669_s2 + $0xc4] ss:$16 sps:$4 sm:$0xff]   ;;  %v1669_v11 = vpop.permute.xlu0 %1668 }
 0xbae   :  { %4022 = vtanh.f32 %v1647_v12  ;;  %v5548_v10 = vld [vmem:[%s6669_s2 + $0xcc] ss:$16 sps:$4 sm:$0xff]   ;;  %v1671_v12 = vmul.f32 %v1669_v11, %v4654_v54  ;;  %v1672_v13 = vmul.f32 %v1669_v11, %v4659_v56 }
 0xbaf   :  { %4024 = vtanh.f32 %v1648_v17 }
 0xbb6   :  { %v4019_v18 = vpop.eup %4018 }
 0xbb7   :  { %v1653_v42 = vmul.f32 0.5, %v4019_v18  ;;  %v4021_v4 = vpop.eup %4020 }
 0xbb8   :  { %v1655_v49 = vmul.f32 0.5, %v4021_v4  ;;  %v4023_v44 = vpop.eup %4022 }
 0xbb9   :  { %v1654_v58 = vadd.f32 0.5, %v1653_v42  ;;  %v4025_v20 = vpop.eup %4024 }
 0xbba   :  { %v1656_v28 = vadd.f32 0.5, %v1655_v49  ;;  %v1657_v39 = vmul.f32 0.5, %v4025_v20 }
 0xbbb   :  { %v1660_v2 = vmul.f32 %v4023_v44, %v1654_v58  ;;  %v1674_v44 = vmul.f32 %v1669_v11, %v4675_v40 }
 0xbbc   :  { %v1659_v55 = vmul.f32 %v1656_v28, %v5346_v37  ;;  %v1658_v30 = vadd.f32 0.5, %v1657_v39  ;;  %v5426_v37 = vld [vmem:[%s6669_s2 + $0x2c] ss:$16 sps:$4 sm:$0xff]  }
 0xbbd   :  { %v1678_v28 = vadd.f32 %v1674_v44, %v4678_v52 }
 0xbbe   :  { %v5402_v48 = vadd.f32 %v1660_v2, %v1659_v55 }
 0xbc0   :  { %4026 = vtanh.f32 %v5402_v48 }
 0xbca   :  { %v4027_v43 = vpop.eup %4026 }
 0xbcb   :  { %v1663_v46 = vmul.f32 %v4027_v43, %v1658_v30 }
 0xbcd   :  { %v1679_v19 = vpack.c.bf16 %v1663_v46, %v1663_v46 }
 0xbcf   :  { %1713 = vmatmul.mubr.bf16.vlgmr.msra.gmra.mrb[48].mxu0 %v1679_v19  ;;  %1754 = vmatmul.mubr.bf16.vlgmr.msra.gmra.mrb[48].mxu1 %v1679_v19 }
 0xbd0   :  { %1798 = vmatpush1.bf16.msra.mxu0 %v5408_v22  ;;  %1839 = vmatpush1.bf16.msra.mxu1 %v5414_v34 }
 0xbd1   :  { %1799 = vmatprep.subr.bf16.mxu0 %v5420_v31  ;;  %1840 = vmatprep.subr.bf16.mxu1 %v5426_v37 }
 0xbd2   :  { %1829 = vmatprep.mubr.bf16.mxu0 %v4336_v1  ;;  %1870 = vmatprep.mubr.bf16.mxu1 %v4336_v1 }
 0xbd4   :  { %1800 = vmatpush1.bf16.msra.mxu0 %v5434_v21  ;;  %1841 = vmatpush1.bf16.msra.mxu1 %v5440_v32 }
 0xbd5   :  { %1801 = vmatprep.subr.bf16.mxu0 %v5446_v29  ;;  %1842 = vmatprep.subr.bf16.mxu1 %v5452_v38 }
 0xbd8   :  { %1802 = vmatpush1.bf16.msra.mxu0 %v5458_v3  ;;  %1843 = vmatpush1.bf16.msra.mxu1 %v5464_v41 }
 0xbd9   :  { %1803 = vmatprep.subr.bf16.mxu0 %v5470_v50  ;;  %1844 = vmatprep.subr.bf16.mxu1 %v5476_v59 }
 0xbdc   :  { %1804 = vmatpush1.bf16.msra.mxu0 %v5482_v47  ;;  %1845 = vmatpush1.bf16.msra.mxu1 %v5488_v61 }
 0xbdd   :  { %1805 = vmatprep.subr.bf16.mxu0 %v5494_v63  ;;  %1846 = vmatprep.subr.bf16.mxu1 %v5500_v33 }
 0xbe0   :  { %1806 = vmatpush1.bf16.msra.mxu0 %v5506_v0  ;;  %1847 = vmatpush1.bf16.msra.mxu1 %v5512_v36 }
 0xbe1   :  { %1807 = vmatprep.subr.bf16.mxu0 %v5518_v5  ;;  %1848 = vmatprep.subr.bf16.mxu1 %v5524_v6 }
 0xbe4   :  { %1808 = vmatpush1.bf16.msra.mxu0 %v5530_v7  ;;  %1849 = vmatpush1.bf16.msra.mxu1 %v5536_v8 }
 0xbe5   :  { %1809 = vmatprep.subr.bf16.mxu0 %v5542_v9  ;;  %1850 = vmatprep.subr.bf16.mxu1 %v5548_v10 }
 0xbe8   :  { %1810 = vmatpush1.bf16.msra.mxu0 %v5118_v45  ;;  %1851 = vmatpush1.bf16.msra.mxu1 %v5124_v35  ;;  %v1673_v45 = vmul.f32 %v1669_v11, %v4661_v57  ;;  %v1675_v35 = vadd.f32 %v1671_v12, %v4664_v60 }
 0xbe9   :  { %1811 = vmatprep.subr.bf16.mxu0 %v5130_v23  ;;  %1852 = vmatprep.subr.bf16.mxu1 %v5136_v24  ;;  %v1676_v24 = vadd.f32 %v1672_v13, %v4667_v62 }
 0xbec   :  { %1812 = vmatpush1.bf16.msra.mxu0 %v5142_v25  ;;  %1853 = vmatpush1.bf16.msra.mxu1 %v5148_v26  ;;  %v1677_v26 = vadd.f32 %v1673_v45, %v4670_v27 }
 0xbed   :  { %1914 = vmatprep.subr.bf16.mxu0 %v5384_v53  ;;  %1955 = vmatprep.subr.bf16.mxu1 %v5390_v51 }
 0xca2   :  { %v1714_v23 = vpop.f32.mrb[48].mxu0  ;;  %v1755_v14 = vpop.f32.mrb[48].mxu1 }
 0xca3   :  { %v1762_v25 = vadd.f32 %v1714_v23, %v1675_v35  ;;  %v1716_v15 = vpop.f32.mrb[49].mxu0  ;;  %v1757_v16 = vpop.f32.mrb[49].mxu1  ;;  %v1764_v4 = vadd.f32 %v1755_v14, %v1677_v26  ;;  %v5606_v26 = vld [vmem:[%s6669_s2 + $0xc8] ss:$16 sps:$4 sm:$0xff]  }
 0xca4   :  { %v1763_v17 = vadd.f32 %v1716_v15, %v1676_v24  ;;  %v1718_v18 = vpop.f32.mrb[50].mxu0  ;;  %v1759_v42 = vpop.f32.mrb[50].mxu1  ;;  %v1765_v2 = vadd.f32 %v1757_v16, %v1678_v28  ;;  %v5612_v15 = vld [vmem:[%s6669_s2 + $0xe4] ss:$16 sps:$4 sm:$0xff]   ;;  %v5618_v16 = vld [vmem:[%s6669_s2 + $0xec] ss:$16 sps:$4 sm:$0xff]  }
 0xca5   :  { %4028 = vtanh.f32 %v1762_v25  ;;  %v1719_v58 = vpop.f32.mrb[51].mxu0  ;;  %v1760_v49 = vpop.f32.mrb[51].mxu1  ;;  %v5630_v18 = vld [vmem:[%s6669_s2 + $0xe8] ss:$16 sps:$4 sm:$0xff]  }
 0xca6   :  { %4030 = vtanh.f32 %v1763_v17  ;;  %v5624_v17 = vld [vmem:[%s6669_s2 + $0xe0] ss:$16 sps:$4 sm:$0xff]   ;;  %v1786_v42 = vpop.permute.xlu1 %1785 }
 0xca7   :  { %4032 = vtanh.f32 %v1764_v4  ;;  %v1788_v4 = vmul.f32 %v1786_v42, %v4654_v54  ;;  %v1789_v58 = vmul.f32 %v1786_v42, %v4659_v56  ;;  %v1790_v49 = vmul.f32 %v1786_v42, %v4661_v57 }
 0xca8   :  { %4034 = vtanh.f32 %v1765_v2 }
 0xca9   :  { %v1792_v44 = vadd.f32 %v1788_v4, %v4664_v60 }
 0xcaf   :  { %v4029_v55 = vpop.eup %4028 }
 0xcb0   :  { %v1770_v20 = vmul.f32 0.5, %v4029_v55  ;;  %v4031_v39 = vpop.eup %4030  ;;  %v1793_v55 = vadd.f32 %v1789_v58, %v4667_v62 }
 0xcb1   :  { %v1772_v43 = vmul.f32 0.5, %v4031_v39  ;;  %v4033_v46 = vpop.eup %4032  ;;  %v1794_v39 = vadd.f32 %v1790_v49, %v4670_v27 }
 0xcb2   :  { %v1771_v30 = vadd.f32 0.5, %v1770_v20  ;;  %v4035_v11 = vpop.eup %4034 }
 0xcb3   :  { %v1773_v19 = vadd.f32 0.5, %v1772_v43  ;;  %v1774_v35 = vmul.f32 0.5, %v4035_v11 }
 0xcb4   :  { %v1777_v12 = vmul.f32 %v4033_v46, %v1771_v30 }
 0xcb5   :  { %v1776_v13 = vmul.f32 %v1773_v19, %v5402_v48  ;;  %v1775_v23 = vadd.f32 0.5, %v1774_v35  ;;  %v5600_v48 = vld [vmem:[%s6669_s2 + $0xc0] ss:$16 sps:$4 sm:$0xff]  }
 0xcb7   :  { %v5568_v45 = vadd.f32 %v1777_v12, %v1776_v13 }
 0xcb9   :  { %4036 = vtanh.f32 %v5568_v45 }
 0xcc3   :  { %v4037_v14 = vpop.eup %4036 }
 0xcc4   :  { %v1780_v24 = vmul.f32 %v4037_v14, %v1775_v23  ;;  %v1791_v23 = vmul.f32 %v1786_v42, %v4675_v40 }
 0xcc6   :  { %v1796_v25 = vpack.c.bf16 %v1780_v24, %v1780_v24  ;;  %v1795_v14 = vadd.f32 %v1791_v23, %v4678_v52 }
 0xcc8   :  { %1830 = vmatmul.mubr.bf16.vlgmr.msra.gmra.mrb[52].mxu0 %v1796_v25  ;;  %1871 = vmatmul.mubr.bf16.vlgmr.msra.gmra.mrb[52].mxu1 %v1796_v25 }
 0xcc9   :  { %1915 = vmatpush1.bf16.msra.mxu0 %v5408_v22  ;;  %1956 = vmatpush1.bf16.msra.mxu1 %v5414_v34 }
 0xcca   :  { %1916 = vmatprep.subr.bf16.mxu0 %v5420_v31  ;;  %1957 = vmatprep.subr.bf16.mxu1 %v5426_v37 }
 0xccb   :  { %1946 = vmatprep.mubr.bf16.mxu0 %v4336_v1  ;;  %1987 = vmatprep.mubr.bf16.mxu1 %v4336_v1 }
 0xccd   :  { %1917 = vmatpush1.bf16.msra.mxu0 %v5434_v21  ;;  %1958 = vmatpush1.bf16.msra.mxu1 %v5440_v32 }
 0xcce   :  { %1918 = vmatprep.subr.bf16.mxu0 %v5446_v29  ;;  %1959 = vmatprep.subr.bf16.mxu1 %v5452_v38 }
 0xcd1   :  { %1919 = vmatpush1.bf16.msra.mxu0 %v5458_v3  ;;  %1960 = vmatpush1.bf16.msra.mxu1 %v5464_v41 }
 0xcd2   :  { %1920 = vmatprep.subr.bf16.mxu0 %v5470_v50  ;;  %1961 = vmatprep.subr.bf16.mxu1 %v5476_v59 }
 0xcd5   :  { %1921 = vmatpush1.bf16.msra.mxu0 %v5482_v47  ;;  %1962 = vmatpush1.bf16.msra.mxu1 %v5488_v61 }
 0xcd6   :  { %1922 = vmatprep.subr.bf16.mxu0 %v5494_v63  ;;  %1963 = vmatprep.subr.bf16.mxu1 %v5500_v33 }
 0xcd9   :  { %1923 = vmatpush1.bf16.msra.mxu0 %v5506_v0  ;;  %1964 = vmatpush1.bf16.msra.mxu1 %v5512_v36 }
 0xcda   :  { %1924 = vmatprep.subr.bf16.mxu0 %v5518_v5  ;;  %1965 = vmatprep.subr.bf16.mxu1 %v5524_v6 }
 0xcdd   :  { %1925 = vmatpush1.bf16.msra.mxu0 %v5530_v7  ;;  %1966 = vmatpush1.bf16.msra.mxu1 %v5536_v8 }
 0xcde   :  { %1926 = vmatprep.subr.bf16.mxu0 %v5542_v9  ;;  %1967 = vmatprep.subr.bf16.mxu1 %v5548_v10 }
 0xce1   :  { %1927 = vmatpush1.bf16.msra.mxu0 %v5600_v48  ;;  %1968 = vmatpush1.bf16.msra.mxu1 %v5606_v26 }
 0xce2   :  { %1928 = vmatprep.subr.bf16.mxu0 %v5612_v15  ;;  %1969 = vmatprep.subr.bf16.mxu1 %v5618_v16 }
 0xce5   :  { %1929 = vmatpush1.bf16.msra.mxu0 %v5624_v17  ;;  %1970 = vmatpush1.bf16.msra.mxu1 %v5630_v18 }
 0xce6   :  { %2031 = vmatprep.subr.bf16.mxu0 %v5384_v53  ;;  %2072 = vmatprep.subr.bf16.mxu1 %v5390_v51 }
 0xd9b   :  { %v1831_v28 = vpop.f32.mrb[52].mxu0  ;;  %v1872_v2 = vpop.f32.mrb[52].mxu1 }
 0xd9c   :  { %v1879_v20 = vadd.f32 %v1831_v28, %v1792_v44  ;;  %v1833_v30 = vpop.f32.mrb[53].mxu0  ;;  %v1874_v43 = vpop.f32.mrb[53].mxu1  ;;  %v1881_v13 = vadd.f32 %v1872_v2, %v1794_v39 }
 0xd9d   :  { %v1880_v46 = vadd.f32 %v1833_v30, %v1793_v55  ;;  %v1835_v19 = vpop.f32.mrb[54].mxu0  ;;  %v1876_v12 = vpop.f32.mrb[54].mxu1  ;;  %v1882_v24 = vadd.f32 %v1874_v43, %v1795_v14 }
 0xd9e   :  { %4038 = vtanh.f32 %v1879_v20  ;;  %v1836_v11 = vpop.f32.mrb[55].mxu0  ;;  %v1877_v35 = vpop.f32.mrb[55].mxu1 }
 0xd9f   :  { %4040 = vtanh.f32 %v1880_v46 }
 0xda0   :  { %4042 = vtanh.f32 %v1881_v13 }
 0xda1   :  { %4044 = vtanh.f32 %v1882_v24 }
 0xda8   :  { %v4039_v25 = vpop.eup %4038 }
 0xda9   :  { %v1887_v4 = vmul.f32 0.5, %v4039_v25  ;;  %v4041_v58 = vpop.eup %4040 }
 0xdaa   :  { %v1889_v44 = vmul.f32 0.5, %v4041_v58  ;;  %v4043_v28 = vpop.eup %4042 }
 0xdab   :  { %v1888_v49 = vadd.f32 0.5, %v1887_v4  ;;  %v4045_v42 = vpop.eup %4044 }
 0xdac   :  { %v1890_v55 = vadd.f32 0.5, %v1889_v44  ;;  %v1891_v39 = vmul.f32 0.5, %v4045_v42 }
 0xdad   :  { %v1894_v30 = vmul.f32 %v4043_v28, %v1888_v49 }
 0xdae   :  { %v1893_v2 = vmul.f32 %v1890_v55, %v5568_v45  ;;  %v1892_v46 = vadd.f32 0.5, %v1891_v39  ;;  %v1903_v45 = vpop.permute.xlu0 %1902 }
 0xdaf   :  { %v1905_v13 = vmul.f32 %v1903_v45, %v4654_v54  ;;  %v1906_v11 = vmul.f32 %v1903_v45, %v4659_v56  ;;  %v1907_v35 = vmul.f32 %v1903_v45, %v4661_v57 }
 0xdb0   :  { %v5644_v20 = vadd.f32 %v1894_v30, %v1893_v2 }
 0xdb1   :  { %v1909_v23 = vadd.f32 %v1905_v13, %v4664_v60  ;;  %v1910_v25 = vadd.f32 %v1906_v11, %v4667_v62  ;;  %v1911_v58 = vadd.f32 %v1907_v35, %v4670_v27 }
 0xdb2   :  { %4046 = vtanh.f32 %v5644_v20 }
 0xdbc   :  { %v4047_v19 = vpop.eup %4046 }
 0xdbd   :  { %v1897_v43 = vmul.f32 %v4047_v19, %v1892_v46  ;;  %v1908_v46 = vmul.f32 %v1903_v45, %v4675_v40 }
 0xdbf   :  { %v1913_v12 = vpack.c.bf16 %v1897_v43, %v1897_v43  ;;  %v1912_v19 = vadd.f32 %v1908_v46, %v4678_v52 }
 0xdc1   :  { %1947 = vmatmul.mubr.bf16.vlgmr.msra.gmra.mrb[56].mxu0 %v1913_v12  ;;  %1988 = vmatmul.mubr.bf16.vlgmr.msra.gmra.mrb[56].mxu1 %v1913_v12 }
 0xdc2   :  { %2032 = vmatpush1.bf16.msra.mxu0 %v5408_v22  ;;  %2073 = vmatpush1.bf16.msra.mxu1 %v5414_v34 }
 0xdc3   :  { %2033 = vmatprep.subr.bf16.mxu0 %v5420_v31  ;;  %2074 = vmatprep.subr.bf16.mxu1 %v5426_v37 }
 0xdc4   :  { %2063 = vmatprep.mubr.bf16.mxu0 %v4336_v1  ;;  %2104 = vmatprep.mubr.bf16.mxu1 %v4336_v1 }
 0xdc6   :  { %2034 = vmatpush1.bf16.msra.mxu0 %v5434_v21  ;;  %2075 = vmatpush1.bf16.msra.mxu1 %v5440_v32 }
 0xdc7   :  { %2035 = vmatprep.subr.bf16.mxu0 %v5446_v29  ;;  %2076 = vmatprep.subr.bf16.mxu1 %v5452_v38 }
 0xdca   :  { %2036 = vmatpush1.bf16.msra.mxu0 %v5458_v3  ;;  %2077 = vmatpush1.bf16.msra.mxu1 %v5464_v41 }
 0xdcb   :  { %2037 = vmatprep.subr.bf16.mxu0 %v5470_v50  ;;  %2078 = vmatprep.subr.bf16.mxu1 %v5476_v59 }
 0xdce   :  { %2038 = vmatpush1.bf16.msra.mxu0 %v5482_v47  ;;  %2079 = vmatpush1.bf16.msra.mxu1 %v5488_v61 }
 0xdcf   :  { %2039 = vmatprep.subr.bf16.mxu0 %v5494_v63  ;;  %2080 = vmatprep.subr.bf16.mxu1 %v5500_v33 }
 0xdd2   :  { %2040 = vmatpush1.bf16.msra.mxu0 %v5506_v0  ;;  %2081 = vmatpush1.bf16.msra.mxu1 %v5512_v36 }
 0xdd3   :  { %2041 = vmatprep.subr.bf16.mxu0 %v5518_v5  ;;  %2082 = vmatprep.subr.bf16.mxu1 %v5524_v6 }
 0xdd6   :  { %2042 = vmatpush1.bf16.msra.mxu0 %v5530_v7  ;;  %2083 = vmatpush1.bf16.msra.mxu1 %v5536_v8 }
 0xdd7   :  { %2043 = vmatprep.subr.bf16.mxu0 %v5542_v9  ;;  %2084 = vmatprep.subr.bf16.mxu1 %v5548_v10 }
 0xdda   :  { %2044 = vmatpush1.bf16.msra.mxu0 %v5600_v48  ;;  %2085 = vmatpush1.bf16.msra.mxu1 %v5606_v26 }
 0xddb   :  { %2045 = vmatprep.subr.bf16.mxu0 %v5612_v15  ;;  %2086 = vmatprep.subr.bf16.mxu1 %v5618_v16 }
 0xdde   :  { %2046 = vmatpush1.bf16.msra.mxu0 %v5624_v17  ;;  %2087 = vmatpush1.bf16.msra.mxu1 %v5630_v18 }
 0xddf   :  { %2148 = vmatprep.subr.bf16.mxu0 %v5384_v53  ;;  %2189 = vmatprep.subr.bf16.mxu1 %v5390_v51 }
 0xe94   :  { %v1948_v14 = vpop.f32.mrb[56].mxu0  ;;  %v1989_v24 = vpop.f32.mrb[56].mxu1 }
 0xe95   :  { %v1996_v4 = vadd.f32 %v1948_v14, %v1909_v23  ;;  %v1950_v49 = vpop.f32.mrb[57].mxu0  ;;  %v1991_v44 = vpop.f32.mrb[57].mxu1  ;;  %v1998_v2 = vadd.f32 %v1989_v24, %v1911_v58 }
 0xe96   :  { %v1997_v28 = vadd.f32 %v1950_v49, %v1910_v25  ;;  %v1952_v55 = vpop.f32.mrb[58].mxu0  ;;  %v1993_v30 = vpop.f32.mrb[58].mxu1  ;;  %v1999_v43 = vadd.f32 %v1991_v44, %v1912_v19 }
 0xe97   :  { %4048 = vtanh.f32 %v1996_v4  ;;  %v1953_v42 = vpop.f32.mrb[59].mxu0  ;;  %v1994_v39 = vpop.f32.mrb[59].mxu1 }
 0xe98   :  { %4050 = vtanh.f32 %v1997_v28 }
 0xe99   :  { %4052 = vtanh.f32 %v1998_v2 }
 0xe9a   :  { %4054 = vtanh.f32 %v1999_v43 }
 0xea1   :  { %v4049_v12 = vpop.eup %4048 }
 0xea2   :  { %v2004_v13 = vmul.f32 0.5, %v4049_v12  ;;  %v4051_v11 = vpop.eup %4050 }
 0xea3   :  { %v2006_v23 = vmul.f32 0.5, %v4051_v11  ;;  %v4053_v14 = vpop.eup %4052 }
 0xea4   :  { %v2005_v35 = vadd.f32 0.5, %v2004_v13  ;;  %v4055_v45 = vpop.eup %4054 }
 0xea5   :  { %v2007_v25 = vadd.f32 0.5, %v2006_v23  ;;  %v2008_v58 = vmul.f32 0.5, %v4055_v45 }
 0xea6   :  { %v2011_v49 = vmul.f32 %v4053_v14, %v2005_v35 }
 0xea7   :  { %v2010_v24 = vmul.f32 %v2007_v25, %v5644_v20  ;;  %v2009_v28 = vadd.f32 0.5, %v2008_v58  ;;  %v2020_v20 = vpop.permute.xlu1 %2019 }
 0xea8   :  { %v2022_v2 = vmul.f32 %v2020_v20, %v4654_v54  ;;  %v2023_v42 = vmul.f32 %v2020_v20, %v4659_v56  ;;  %v2024_v39 = vmul.f32 %v2020_v20, %v4661_v57 }
 0xea9   :  { %v5690_v4 = vadd.f32 %v2011_v49, %v2010_v24 }
 0xeaa   :  { %v2026_v46 = vadd.f32 %v2022_v2, %v4664_v60  ;;  %v2027_v12 = vadd.f32 %v2023_v42, %v4667_v62  ;;  %v2028_v11 = vadd.f32 %v2024_v39, %v4670_v27 }
 0xeab   :  { %4056 = vtanh.f32 %v5690_v4 }
 0xeb5   :  { %v4057_v55 = vpop.eup %4056 }
 0xeb6   :  { %v2014_v44 = vmul.f32 %v4057_v55, %v2009_v28  ;;  %v2025_v28 = vmul.f32 %v2020_v20, %v4675_v40 }
 0xeb8   :  { %v2030_v30 = vpack.c.bf16 %v2014_v44, %v2014_v44  ;;  %v2029_v55 = vadd.f32 %v2025_v28, %v4678_v52 }
 0xeba   :  { %2064 = vmatmul.mubr.bf16.vlgmr.msra.gmra.mrb[60].mxu0 %v2030_v30  ;;  %2105 = vmatmul.mubr.bf16.vlgmr.msra.gmra.mrb[60].mxu1 %v2030_v30 }
 0xebb   :  { %2149 = vmatpush1.bf16.msra.mxu0 %v5408_v22  ;;  %2190 = vmatpush1.bf16.msra.mxu1 %v5414_v34 }
 0xebc   :  { %2150 = vmatprep.subr.bf16.mxu0 %v5420_v31  ;;  %2191 = vmatprep.subr.bf16.mxu1 %v5426_v37 }
 0xebd   :  { %2180 = vmatprep.mubr.bf16.mxu0 %v4336_v1  ;;  %2221 = vmatprep.mubr.bf16.mxu1 %v4336_v1 }
 0xebf   :  { %2151 = vmatpush1.bf16.msra.mxu0 %v5434_v21  ;;  %2192 = vmatpush1.bf16.msra.mxu1 %v5440_v32 }
 0xec0   :  { %2152 = vmatprep.subr.bf16.mxu0 %v5446_v29  ;;  %2193 = vmatprep.subr.bf16.mxu1 %v5452_v38 }
 0xec3   :  { %2153 = vmatpush1.bf16.msra.mxu0 %v5458_v3  ;;  %2194 = vmatpush1.bf16.msra.mxu1 %v5464_v41 }
 0xec4   :  { %2154 = vmatprep.subr.bf16.mxu0 %v5470_v50  ;;  %2195 = vmatprep.subr.bf16.mxu1 %v5476_v59 }
 0xec7   :  { %2155 = vmatpush1.bf16.msra.mxu0 %v5482_v47  ;;  %2196 = vmatpush1.bf16.msra.mxu1 %v5488_v61 }
 0xec8   :  { %2156 = vmatprep.subr.bf16.mxu0 %v5494_v63  ;;  %2197 = vmatprep.subr.bf16.mxu1 %v5500_v33 }
 0xecb   :  { %2157 = vmatpush1.bf16.msra.mxu0 %v5506_v0  ;;  %2198 = vmatpush1.bf16.msra.mxu1 %v5512_v36 }
 0xecc   :  { %2158 = vmatprep.subr.bf16.mxu0 %v5518_v5  ;;  %2199 = vmatprep.subr.bf16.mxu1 %v5524_v6 }
 0xecf   :  { %2159 = vmatpush1.bf16.msra.mxu0 %v5530_v7  ;;  %2200 = vmatpush1.bf16.msra.mxu1 %v5536_v8 }
 0xed0   :  { %2160 = vmatprep.subr.bf16.mxu0 %v5542_v9  ;;  %2201 = vmatprep.subr.bf16.mxu1 %v5548_v10 }
 0xed3   :  { %2161 = vmatpush1.bf16.msra.mxu0 %v5600_v48  ;;  %2202 = vmatpush1.bf16.msra.mxu1 %v5606_v26 }
 0xed4   :  { %2162 = vmatprep.subr.bf16.mxu0 %v5612_v15  ;;  %2203 = vmatprep.subr.bf16.mxu1 %v5618_v16 }
 0xed7   :  { %2163 = vmatpush1.bf16.msra.mxu0 %v5624_v17  ;;  %2204 = vmatpush1.bf16.msra.mxu1 %v5630_v18 }
 0xed8   :  { %2265 = vmatprep.subr.bf16.mxu0 %v5384_v53  ;;  %2306 = vmatprep.subr.bf16.mxu1 %v5390_v51 }
 0xf8d   :  { %v2065_v19 = vpop.f32.mrb[60].mxu0  ;;  %v2106_v43 = vpop.f32.mrb[60].mxu1 }
 0xf8e   :  { %v2113_v13 = vadd.f32 %v2065_v19, %v2026_v46  ;;  %v2067_v35 = vpop.f32.mrb[61].mxu0  ;;  %v2108_v23 = vpop.f32.mrb[61].mxu1  ;;  %v2115_v24 = vadd.f32 %v2106_v43, %v2028_v11 }
 0xf8f   :  { %v2114_v14 = vadd.f32 %v2067_v35, %v2027_v12  ;;  %v2069_v25 = vpop.f32.mrb[62].mxu0  ;;  %v2110_v49 = vpop.f32.mrb[62].mxu1  ;;  %v2116_v44 = vadd.f32 %v2108_v23, %v2029_v55 }
 0xf90   :  { %4058 = vtanh.f32 %v2113_v13  ;;  %v2070_v45 = vpop.f32.mrb[63].mxu0  ;;  %v2111_v58 = vpop.f32.mrb[63].mxu1 }
 0xf91   :  { %4060 = vtanh.f32 %v2114_v14 }
 0xf92   :  { %4062 = vtanh.f32 %v2115_v24 }
 0xf93   :  { %4064 = vtanh.f32 %v2116_v44 }
 0xf9a   :  { %v4059_v30 = vpop.eup %4058 }
 0xf9b   :  { %v2121_v2 = vmul.f32 0.5, %v4059_v30  ;;  %v4061_v42 = vpop.eup %4060 }
 0xf9c   :  { %v2123_v46 = vmul.f32 0.5, %v4061_v42  ;;  %v4063_v19 = vpop.eup %4062 }
 0xf9d   :  { %v2122_v39 = vadd.f32 0.5, %v2121_v2  ;;  %v4065_v20 = vpop.eup %4064 }
 0xf9e   :  { %v2124_v12 = vadd.f32 0.5, %v2123_v46  ;;  %v2125_v11 = vmul.f32 0.5, %v4065_v20 }
 0xf9f   :  { %v2128_v35 = vmul.f32 %v4063_v19, %v2122_v39 }
 0xfa0   :  { %v2127_v43 = vmul.f32 %v2124_v12, %v5690_v4  ;;  %v2126_v14 = vadd.f32 0.5, %v2125_v11  ;;  %v2137_v4 = vpop.permute.xlu0 %2136 }
 0xfa1   :  { %v2139_v24 = vmul.f32 %v2137_v4, %v4654_v54  ;;  %v2140_v45 = vmul.f32 %v2137_v4, %v4659_v56  ;;  %v2141_v58 = vmul.f32 %v2137_v4, %v4661_v57 }
 0xfa2   :  { %v5736_v13 = vadd.f32 %v2128_v35, %v2127_v43 }
 0xfa3   :  { %v2143_v28 = vadd.f32 %v2139_v24, %v4664_v60  ;;  %v2144_v30 = vadd.f32 %v2140_v45, %v4667_v62  ;;  %v2145_v42 = vadd.f32 %v2141_v58, %v4670_v27 }
 0xfa4   :  { %4066 = vtanh.f32 %v5736_v13 }
 0xfae   :  { %v4067_v25 = vpop.eup %4066 }
 0xfaf   :  { %v2131_v23 = vmul.f32 %v4067_v25, %v2126_v14  ;;  %v2142_v14 = vmul.f32 %v2137_v4, %v4675_v40 }
 0xfb1   :  { %v2147_v49 = vpack.c.bf16 %v2131_v23, %v2131_v23  ;;  %v2146_v25 = vadd.f32 %v2142_v14, %v4678_v52 }
 0xfb3   :  { %2181 = vmatmul.mubr.bf16.vlgmr.msra.gmra.mrb[64].mxu0 %v2147_v49  ;;  %2222 = vmatmul.mubr.bf16.vlgmr.msra.gmra.mrb[64].mxu1 %v2147_v49 }
 0xfb4   :  { %2266 = vmatpush1.bf16.msra.mxu0 %v5408_v22  ;;  %2307 = vmatpush1.bf16.msra.mxu1 %v5414_v34 }
 0xfb5   :  { %2267 = vmatprep.subr.bf16.mxu0 %v5420_v31  ;;  %2308 = vmatprep.subr.bf16.mxu1 %v5426_v37 }
 0xfb6   :  { %2297 = vmatprep.mubr.bf16.mxu0 %v4336_v1  ;;  %2338 = vmatprep.mubr.bf16.mxu1 %v4336_v1 }
 0xfb8   :  { %2268 = vmatpush1.bf16.msra.mxu0 %v5434_v21  ;;  %2309 = vmatpush1.bf16.msra.mxu1 %v5440_v32 }
 0xfb9   :  { %2269 = vmatprep.subr.bf16.mxu0 %v5446_v29  ;;  %2310 = vmatprep.subr.bf16.mxu1 %v5452_v38 }
 0xfbc   :  { %2270 = vmatpush1.bf16.msra.mxu0 %v5458_v3  ;;  %2311 = vmatpush1.bf16.msra.mxu1 %v5464_v41 }
 0xfbd   :  { %2271 = vmatprep.subr.bf16.mxu0 %v5470_v50  ;;  %2312 = vmatprep.subr.bf16.mxu1 %v5476_v59 }
 0xfc0   :  { %2272 = vmatpush1.bf16.msra.mxu0 %v5482_v47  ;;  %2313 = vmatpush1.bf16.msra.mxu1 %v5488_v61 }
 0xfc1   :  { %2273 = vmatprep.subr.bf16.mxu0 %v5494_v63  ;;  %2314 = vmatprep.subr.bf16.mxu1 %v5500_v33 }
 0xfc4   :  { %2274 = vmatpush1.bf16.msra.mxu0 %v5506_v0  ;;  %2315 = vmatpush1.bf16.msra.mxu1 %v5512_v36 }
 0xfc5   :  { %2275 = vmatprep.subr.bf16.mxu0 %v5518_v5  ;;  %2316 = vmatprep.subr.bf16.mxu1 %v5524_v6 }
 0xfc8   :  { %2276 = vmatpush1.bf16.msra.mxu0 %v5530_v7  ;;  %2317 = vmatpush1.bf16.msra.mxu1 %v5536_v8 }
 0xfc9   :  { %2277 = vmatprep.subr.bf16.mxu0 %v5542_v9  ;;  %2318 = vmatprep.subr.bf16.mxu1 %v5548_v10 }
 0xfcc   :  { %2278 = vmatpush1.bf16.msra.mxu0 %v5600_v48  ;;  %2319 = vmatpush1.bf16.msra.mxu1 %v5606_v26 }
 0xfcd   :  { %2279 = vmatprep.subr.bf16.mxu0 %v5612_v15  ;;  %2320 = vmatprep.subr.bf16.mxu1 %v5618_v16 }
 0xfd0   :  { %2280 = vmatpush1.bf16.msra.mxu0 %v5624_v17  ;;  %2321 = vmatpush1.bf16.msra.mxu1 %v5630_v18 }
 0xfd1   :  { %2382 = vmatprep.subr.bf16.mxu0 %v5384_v53  ;;  %2423 = vmatprep.subr.bf16.mxu1 %v5390_v51 }
0x1086   :  { %v2182_v55 = vpop.f32.mrb[64].mxu0  ;;  %v2223_v44 = vpop.f32.mrb[64].mxu1 }
0x1087   :  { %v2230_v2 = vadd.f32 %v2182_v55, %v2143_v28  ;;  %v2184_v39 = vpop.f32.mrb[65].mxu0  ;;  %v2225_v46 = vpop.f32.mrb[65].mxu1  ;;  %v2232_v43 = vadd.f32 %v2223_v44, %v2145_v42 }
0x1088   :  { %v2231_v19 = vadd.f32 %v2184_v39, %v2144_v30  ;;  %v2186_v12 = vpop.f32.mrb[66].mxu0  ;;  %v2227_v35 = vpop.f32.mrb[66].mxu1  ;;  %v2233_v23 = vadd.f32 %v2225_v46, %v2146_v25 }
0x1089   :  { %4068 = vtanh.f32 %v2230_v2  ;;  %v2187_v20 = vpop.f32.mrb[67].mxu0  ;;  %v2228_v11 = vpop.f32.mrb[67].mxu1 }
0x108a   :  { %4070 = vtanh.f32 %v2231_v19 }
0x108b   :  { %4072 = vtanh.f32 %v2232_v43 }
0x108c   :  { %4074 = vtanh.f32 %v2233_v23 }
0x1093   :  { %v4069_v49 = vpop.eup %4068 }
0x1094   :  { %v2238_v24 = vmul.f32 0.5, %v4069_v49  ;;  %v4071_v45 = vpop.eup %4070 }
0x1095   :  { %v2240_v28 = vmul.f32 0.5, %v4071_v45  ;;  %v4073_v55 = vpop.eup %4072 }
0x1096   :  { %v2239_v58 = vadd.f32 0.5, %v2238_v24  ;;  %v4075_v4 = vpop.eup %4074 }
0x1097   :  { %v2241_v30 = vadd.f32 0.5, %v2240_v28  ;;  %v2242_v42 = vmul.f32 0.5, %v4075_v4 }
0x1098   :  { %v2245_v39 = vmul.f32 %v4073_v55, %v2239_v58 }
0x1099   :  { %v2244_v44 = vmul.f32 %v2241_v30, %v5736_v13  ;;  %v2243_v19 = vadd.f32 0.5, %v2242_v42  ;;  %v2254_v13 = vpop.permute.xlu1 %2253 }
0x109a   :  { %v2256_v43 = vmul.f32 %v2254_v13, %v4654_v54  ;;  %v2257_v20 = vmul.f32 %v2254_v13, %v4659_v56  ;;  %v2258_v11 = vmul.f32 %v2254_v13, %v4661_v57  ;;  %v2259_v4 = vmul.f32 %v2254_v13, %v4675_v40 }
0x109b   :  { %v5782_v2 = vadd.f32 %v2245_v39, %v2244_v44 }
0x109c   :  { %v2260_v14 = vadd.f32 %v2256_v43, %v4664_v60  ;;  %v2261_v49 = vadd.f32 %v2257_v20, %v4667_v62  ;;  %v2262_v45 = vadd.f32 %v2258_v11, %v4670_v27  ;;  %v2263_v42 = vadd.f32 %v2259_v4, %v4678_v52 }
0x109d   :  { %4076 = vtanh.f32 %v5782_v2 }
0x10a7   :  { %v4077_v12 = vpop.eup %4076 }
0x10a8   :  { %v2248_v46 = vmul.f32 %v4077_v12, %v2243_v19 }
0x10aa   :  { %v2264_v35 = vpack.c.bf16 %v2248_v46, %v2248_v46 }
0x10ac   :  { %2298 = vmatmul.mubr.bf16.vlgmr.msra.gmra.mrb[68].mxu0 %v2264_v35  ;;  %2339 = vmatmul.mubr.bf16.vlgmr.msra.gmra.mrb[68].mxu1 %v2264_v35 }
0x10ad   :  { %2383 = vmatpush1.bf16.msra.mxu0 %v5408_v22  ;;  %2424 = vmatpush1.bf16.msra.mxu1 %v5414_v34 }
0x10ae   :  { %2384 = vmatprep.subr.bf16.mxu0 %v5420_v31  ;;  %2425 = vmatprep.subr.bf16.mxu1 %v5426_v37 }
0x10af   :  { %2414 = vmatprep.mubr.bf16.mxu0 %v4336_v1  ;;  %2455 = vmatprep.mubr.bf16.mxu1 %v4336_v1 }
0x10b1   :  { %2385 = vmatpush1.bf16.msra.mxu0 %v5434_v21  ;;  %2426 = vmatpush1.bf16.msra.mxu1 %v5440_v32 }
0x10b2   :  { %2386 = vmatprep.subr.bf16.mxu0 %v5446_v29  ;;  %2427 = vmatprep.subr.bf16.mxu1 %v5452_v38 }
0x10b5   :  { %2387 = vmatpush1.bf16.msra.mxu0 %v5458_v3  ;;  %2428 = vmatpush1.bf16.msra.mxu1 %v5464_v41 }
0x10b6   :  { %2388 = vmatprep.subr.bf16.mxu0 %v5470_v50  ;;  %2429 = vmatprep.subr.bf16.mxu1 %v5476_v59 }
0x10b9   :  { %2389 = vmatpush1.bf16.msra.mxu0 %v5482_v47  ;;  %2430 = vmatpush1.bf16.msra.mxu1 %v5488_v61 }
0x10ba   :  { %2390 = vmatprep.subr.bf16.mxu0 %v5494_v63  ;;  %2431 = vmatprep.subr.bf16.mxu1 %v5500_v33 }
0x10bd   :  { %2391 = vmatpush1.bf16.msra.mxu0 %v5506_v0  ;;  %2432 = vmatpush1.bf16.msra.mxu1 %v5512_v36 }
0x10be   :  { %2392 = vmatprep.subr.bf16.mxu0 %v5518_v5  ;;  %2433 = vmatprep.subr.bf16.mxu1 %v5524_v6 }
0x10c1   :  { %2393 = vmatpush1.bf16.msra.mxu0 %v5530_v7  ;;  %2434 = vmatpush1.bf16.msra.mxu1 %v5536_v8 }
0x10c2   :  { %2394 = vmatprep.subr.bf16.mxu0 %v5542_v9  ;;  %2435 = vmatprep.subr.bf16.mxu1 %v5548_v10 }
0x10c5   :  { %2395 = vmatpush1.bf16.msra.mxu0 %v5600_v48  ;;  %2436 = vmatpush1.bf16.msra.mxu1 %v5606_v26 }
0x10c6   :  { %2396 = vmatprep.subr.bf16.mxu0 %v5612_v15  ;;  %2437 = vmatprep.subr.bf16.mxu1 %v5618_v16 }
0x10c9   :  { %2397 = vmatpush1.bf16.msra.mxu0 %v5624_v17  ;;  %2438 = vmatpush1.bf16.msra.mxu1 %v5630_v18 }
0x10ca   :  { %2499 = vmatprep.subr.bf16.mxu0 %v5384_v53  ;;  %2540 = vmatprep.subr.bf16.mxu1 %v5390_v51 }
0x117f   :  { %v2299_v25 = vpop.f32.mrb[68].mxu0  ;;  %v2340_v23 = vpop.f32.mrb[68].mxu1 }
0x1180   :  { %v2347_v24 = vadd.f32 %v2299_v25, %v2260_v14  ;;  %v2301_v58 = vpop.f32.mrb[69].mxu0  ;;  %v2342_v53 = vpop.f32.mrb[69].mxu1  ;;  %v2349_v30 = vadd.f32 %v2340_v23, %v2262_v45 }
0x1181   :  { %v2348_v28 = vadd.f32 %v2301_v58, %v2261_v49  ;;  %v2303_v51 = vpop.f32.mrb[70].mxu0  ;;  %v2344_v55 = vpop.f32.mrb[70].mxu1  ;;  %v2350_v19 = vadd.f32 %v2342_v53, %v2263_v42 }
0x1182   :  { %4078 = vtanh.f32 %v2347_v24  ;;  %v2304_v39 = vpop.f32.mrb[71].mxu0  ;;  %v2345_v44 = vpop.f32.mrb[71].mxu1 }
0x1183   :  { %4080 = vtanh.f32 %v2348_v28 }
0x1184   :  { %4082 = vtanh.f32 %v2349_v30 }
0x1185   :  { %4084 = vtanh.f32 %v2350_v19 }
0x118c   :  { %v4079_v12 = vpop.eup %4078 }
0x118d   :  { %v2355_v46 = vmul.f32 0.5, %v4079_v12  ;;  %v4081_v35 = vpop.eup %4080 }
0x118e   :  { %v2357_v20 = vmul.f32 0.5, %v4081_v35  ;;  %v4083_v11 = vpop.eup %4082 }
0x118f   :  { %v2356_v43 = vadd.f32 0.5, %v2355_v46  ;;  %v4085_v13 = vpop.eup %4084 }
0x1190   :  { %v2358_v14 = vadd.f32 0.5, %v2357_v20  ;;  %v2359_v24 = vmul.f32 0.5, %v4085_v13  ;;  %v5916_v13 = vld [vmem:[%s6669_s2 + $0x20] ss:$16 sps:$4 sm:$0xff]  }
0x1191   :  { %v2362_v25 = vmul.f32 %v4083_v11, %v2356_v43 }
0x1192   :  { %v2361_v23 = vmul.f32 %v2358_v14, %v5782_v2  ;;  %v2360_v45 = vadd.f32 0.5, %v2359_v24  ;;  %v5890_v14 = vld [vmem:[%s6669_s2] ss:$16 sps:$4 sm:$0xff]   ;;  %v5922_v24 = vld [vmem:[%s6669_s2 + $0x28] ss:$16 sps:$4 sm:$0xff]  }
0x1194   :  { %v5828_v49 = vadd.f32 %v2362_v25, %v2361_v23  ;;  %v5896_v25 = vld [vmem:[%s6669_s2 + $0x8] ss:$16 sps:$4 sm:$0xff]   ;;  %v5902_v23 = vld [vmem:[%s6669_s2 + $0x24] ss:$16 sps:$4 sm:$0xff]  }
0x1196   :  { %4086 = vtanh.f32 %v5828_v49 }
0x11a0   :  { %v4087_v58 = vpop.eup %4086 }
0x11a1   :  { %v2365_v53 = vmul.f32 %v4087_v58, %v2360_v45  ;;  %v5928_v45 = vld [vmem:[%s6669_s2 + $0x44] ss:$16 sps:$4 sm:$0xff]   ;;  %v5934_v58 = vld [vmem:[%s6669_s2 + $0x4c] ss:$16 sps:$4 sm:$0xff]  }
0x11a3   :  { %v2381_v28 = vpack.c.bf16 %v2365_v53, %v2365_v53  ;;  %v5940_v53 = vld [vmem:[%s6669_s2 + $0x40] ss:$16 sps:$4 sm:$0xff]  }
0x11a5   :  { %2415 = vmatmul.mubr.bf16.vlgmr.msra.gmra.mrb[72].mxu0 %v2381_v28  ;;  %2456 = vmatmul.mubr.bf16.vlgmr.msra.gmra.mrb[72].mxu1 %v2381_v28  ;;  %v5946_v28 = vld [vmem:[%s6669_s2 + $0x48] ss:$16 sps:$4 sm:$0xff]  }
0x11a6   :  { %2500 = vmatpush1.bf16.msra.mxu0 %v5408_v22  ;;  %2541 = vmatpush1.bf16.msra.mxu1 %v5414_v34  ;;  %v5866_v22 = vld [vmem:[%s6669_s2 + $0x4] ss:$16 sps:$4 sm:$0xff]   ;;  %v5872_v34 = vld [vmem:[%s6669_s2 + $0xc] ss:$16 sps:$4 sm:$0xff]  }
0x11a7   :  { %2501 = vmatprep.subr.bf16.mxu0 %v5420_v31  ;;  %2542 = vmatprep.subr.bf16.mxu1 %v5426_v37  ;;  %v2371_v31 = vpop.permute.xlu0 %2370 }
0x11a8   :  { %2531 = vmatprep.mubr.bf16.mxu0 %v4336_v1  ;;  %2572 = vmatprep.mubr.bf16.mxu1 %v4336_v1  ;;  %v2373_v37 = vmul.f32 %v2371_v31, %v4654_v54 }
0x11aa   :  { %2502 = vmatpush1.bf16.msra.mxu0 %v5434_v21  ;;  %2543 = vmatpush1.bf16.msra.mxu1 %v5440_v32  ;;  %v2374_v21 = vmul.f32 %v2371_v31, %v4659_v56  ;;  %v2375_v32 = vmul.f32 %v2371_v31, %v4661_v57 }
0x11ab   :  { %2503 = vmatprep.subr.bf16.mxu0 %v5446_v29  ;;  %2544 = vmatprep.subr.bf16.mxu1 %v5452_v38  ;;  %v2377_v29 = vadd.f32 %v2373_v37, %v4664_v60  ;;  %v5958_v37 = vld [vmem:[%s6669_s2 + $0x6c] ss:$16 sps:$4 sm:$0xff]  }
0x11ae   :  { %2504 = vmatpush1.bf16.msra.mxu0 %v5458_v3  ;;  %2545 = vmatpush1.bf16.msra.mxu1 %v5464_v41  ;;  %v2378_v41 = vadd.f32 %v2374_v21, %v4667_v62  ;;  %v5964_v21 = vld [vmem:[%s6669_s2 + $0x60] ss:$16 sps:$4 sm:$0xff]  }
0x11af   :  { %2505 = vmatprep.subr.bf16.mxu0 %v5470_v50  ;;  %2546 = vmatprep.subr.bf16.mxu1 %v5476_v59  ;;  %v2379_v59 = vadd.f32 %v2375_v32, %v4670_v27  ;;  %v5970_v32 = vld [vmem:[%s6669_s2 + $0x68] ss:$16 sps:$4 sm:$0xff]  }
0x11b2   :  { %2506 = vmatpush1.bf16.msra.mxu0 %v5482_v47  ;;  %2547 = vmatpush1.bf16.msra.mxu1 %v5488_v61 }
0x11b3   :  { %2507 = vmatprep.subr.bf16.mxu0 %v5494_v63  ;;  %2548 = vmatprep.subr.bf16.mxu1 %v5500_v33 }
0x11b6   :  { %2508 = vmatpush1.bf16.msra.mxu0 %v5506_v0  ;;  %2549 = vmatpush1.bf16.msra.mxu1 %v5512_v36 }
0x11b7   :  { %2509 = vmatprep.subr.bf16.mxu0 %v5518_v5  ;;  %2550 = vmatprep.subr.bf16.mxu1 %v5524_v6 }
0x11ba   :  { %2510 = vmatpush1.bf16.msra.mxu0 %v5530_v7  ;;  %2551 = vmatpush1.bf16.msra.mxu1 %v5536_v8  ;;  %v2376_v7 = vmul.f32 %v2371_v31, %v4675_v40  ;;  %v5952_v31 = vld [vmem:[%s6669_s2 + $0x64] ss:$16 sps:$4 sm:$0xff]  }
0x11bb   :  { %2511 = vmatprep.subr.bf16.mxu0 %v5542_v9  ;;  %2552 = vmatprep.subr.bf16.mxu1 %v5548_v10 }
0x11bc   :  { %v2380_v8 = vadd.f32 %v2376_v7, %v4678_v52 }
0x11be   :  { %2512 = vmatpush1.bf16.msra.mxu0 %v5600_v48  ;;  %2553 = vmatpush1.bf16.msra.mxu1 %v5606_v26 }
0x11bf   :  { %2513 = vmatprep.subr.bf16.mxu0 %v5612_v15  ;;  %2554 = vmatprep.subr.bf16.mxu1 %v5618_v16 }
0x11c2   :  { %2514 = vmatpush1.bf16.msra.mxu0 %v5624_v17  ;;  %2555 = vmatpush1.bf16.msra.mxu1 %v5630_v18 }
0x11c3   :  { %2616 = vmatprep.subr.bf16.mxu0 %v5866_v22  ;;  %2657 = vmatprep.subr.bf16.mxu1 %v5872_v34 }
0x1278   :  { %v2416_v38 = vpop.f32.mrb[72].mxu0  ;;  %v2457_v3 = vpop.f32.mrb[72].mxu1 }
0x1279   :  { %v2464_v50 = vadd.f32 %v2416_v38, %v2377_v29  ;;  %v2418_v47 = vpop.f32.mrb[73].mxu0  ;;  %v2459_v61 = vpop.f32.mrb[73].mxu1  ;;  %v2466_v36 = vadd.f32 %v2457_v3, %v2379_v59  ;;  %v5976_v29 = vld [vmem:[%s6669_s2 + $0x84] ss:$16 sps:$4 sm:$0xff]   ;;  %v5982_v38 = vld [vmem:[%s6669_s2 + $0x8c] ss:$16 sps:$4 sm:$0xff]  }
0x127a   :  { %v2465_v63 = vadd.f32 %v2418_v47, %v2378_v41  ;;  %v2420_v33 = vpop.f32.mrb[74].mxu0  ;;  %v2461_v0 = vpop.f32.mrb[74].mxu1  ;;  %v2467_v9 = vadd.f32 %v2459_v61, %v2380_v8  ;;  %v5988_v3 = vld [vmem:[%s6669_s2 + $0x80] ss:$16 sps:$4 sm:$0xff]   ;;  %v5994_v41 = vld [vmem:[%s6669_s2 + $0x88] ss:$16 sps:$4 sm:$0xff]  }
0x127b   :  { %4088 = vtanh.f32 %v2464_v50  ;;  %v2421_v5 = vpop.f32.mrb[75].mxu0  ;;  %v2462_v6 = vpop.f32.mrb[75].mxu1  ;;  %v6000_v50 = vld [vmem:[%s6669_s2 + $0xa4] ss:$16 sps:$4 sm:$0xff]   ;;  %v6006_v59 = vld [vmem:[%s6669_s2 + $0xac] ss:$16 sps:$4 sm:$0xff]  }
0x127c   :  { %4090 = vtanh.f32 %v2465_v63  ;;  %v6012_v47 = vld [vmem:[%s6669_s2 + $0xa0] ss:$16 sps:$4 sm:$0xff]   ;;  %v6018_v61 = vld [vmem:[%s6669_s2 + $0xa8] ss:$16 sps:$4 sm:$0xff]   ;;  %v6024_v63 = vld [vmem:[%s6669_s2 + $0xc4] ss:$16 sps:$4 sm:$0xff]   ;;  %v2488_v0 = vpop.permute.xlu1 %2487 }
0x127d   :  { %4092 = vtanh.f32 %v2466_v36  ;;  %v6030_v33 = vld [vmem:[%s6669_s2 + $0xcc] ss:$16 sps:$4 sm:$0xff]   ;;  %v2490_v36 = vmul.f32 %v2488_v0, %v4654_v54  ;;  %v2491_v5 = vmul.f32 %v2488_v0, %v4659_v56 }
0x127e   :  { %4094 = vtanh.f32 %v2467_v9 }
0x1285   :  { %v4089_v10 = vpop.eup %4088 }
0x1286   :  { %v2472_v2 = vmul.f32 0.5, %v4089_v10  ;;  %v4091_v51 = vpop.eup %4090 }
0x1287   :  { %v2474_v30 = vmul.f32 0.5, %v4091_v51  ;;  %v4093_v39 = vpop.eup %4092 }
0x1288   :  { %v2473_v55 = vadd.f32 0.5, %v2472_v2  ;;  %v4095_v12 = vpop.eup %4094 }
0x1289   :  { %v2475_v44 = vadd.f32 0.5, %v2474_v30  ;;  %v2476_v46 = vmul.f32 0.5, %v4095_v12 }
0x128a   :  { %v2479_v4 = vmul.f32 %v4093_v39, %v2473_v55  ;;  %v2493_v39 = vmul.f32 %v2488_v0, %v4675_v40 }
0x128b   :  { %v2478_v42 = vmul.f32 %v2475_v44, %v5828_v49  ;;  %v2477_v35 = vadd.f32 0.5, %v2476_v46  ;;  %v5908_v49 = vld [vmem:[%s6669_s2 + $0x2c] ss:$16 sps:$4 sm:$0xff]  }
0x128c   :  { %v2497_v44 = vadd.f32 %v2493_v39, %v4678_v52 }
0x128d   :  { %v5884_v19 = vadd.f32 %v2479_v4, %v2478_v42 }
0x128f   :  { %4096 = vtanh.f32 %v5884_v19 }
0x1299   :  { %v4097_v43 = vpop.eup %4096 }
0x129a   :  { %v2482_v20 = vmul.f32 %v4097_v43, %v2477_v35 }
0x129c   :  { %v2498_v11 = vpack.c.bf16 %v2482_v20, %v2482_v20 }
0x129e   :  { %2532 = vmatmul.mubr.bf16.vlgmr.msra.gmra.mrb[76].mxu0 %v2498_v11  ;;  %2573 = vmatmul.mubr.bf16.vlgmr.msra.gmra.mrb[76].mxu1 %v2498_v11 }
0x129f   :  { %2617 = vmatpush1.bf16.msra.mxu0 %v5890_v14  ;;  %2658 = vmatpush1.bf16.msra.mxu1 %v5896_v25 }
0x12a0   :  { %2618 = vmatprep.subr.bf16.mxu0 %v5902_v23  ;;  %2659 = vmatprep.subr.bf16.mxu1 %v5908_v49 }
0x12a1   :  { %2648 = vmatprep.mubr.bf16.mxu0 %v4336_v1  ;;  %2689 = vmatprep.mubr.bf16.mxu1 %v4336_v1 }
0x12a3   :  { %2619 = vmatpush1.bf16.msra.mxu0 %v5916_v13  ;;  %2660 = vmatpush1.bf16.msra.mxu1 %v5922_v24 }
0x12a4   :  { %2620 = vmatprep.subr.bf16.mxu0 %v5928_v45  ;;  %2661 = vmatprep.subr.bf16.mxu1 %v5934_v58 }
0x12a7   :  { %2621 = vmatpush1.bf16.msra.mxu0 %v5940_v53  ;;  %2662 = vmatpush1.bf16.msra.mxu1 %v5946_v28 }
0x12a8   :  { %2622 = vmatprep.subr.bf16.mxu0 %v5952_v31  ;;  %2663 = vmatprep.subr.bf16.mxu1 %v5958_v37 }
0x12ab   :  { %2623 = vmatpush1.bf16.msra.mxu0 %v5964_v21  ;;  %2664 = vmatpush1.bf16.msra.mxu1 %v5970_v32 }
0x12ac   :  { %2624 = vmatprep.subr.bf16.mxu0 %v5976_v29  ;;  %2665 = vmatprep.subr.bf16.mxu1 %v5982_v38 }
0x12af   :  { %2625 = vmatpush1.bf16.msra.mxu0 %v5988_v3  ;;  %2666 = vmatpush1.bf16.msra.mxu1 %v5994_v41 }
0x12b0   :  { %2626 = vmatprep.subr.bf16.mxu0 %v6000_v50  ;;  %2667 = vmatprep.subr.bf16.mxu1 %v6006_v59 }
0x12b3   :  { %2627 = vmatpush1.bf16.msra.mxu0 %v6012_v47  ;;  %2668 = vmatpush1.bf16.msra.mxu1 %v6018_v61 }
0x12b4   :  { %2628 = vmatprep.subr.bf16.mxu0 %v6024_v63  ;;  %2669 = vmatprep.subr.bf16.mxu1 %v6030_v33 }
0x12b7   :  { %2629 = vmatpush1.bf16.msra.mxu0 %v5600_v48  ;;  %2670 = vmatpush1.bf16.msra.mxu1 %v5606_v26  ;;  %v2492_v48 = vmul.f32 %v2488_v0, %v4661_v57  ;;  %v2494_v26 = vadd.f32 %v2490_v36, %v4664_v60 }
0x12b8   :  { %2630 = vmatprep.subr.bf16.mxu0 %v5612_v15  ;;  %2671 = vmatprep.subr.bf16.mxu1 %v5618_v16  ;;  %v2495_v16 = vadd.f32 %v2491_v5, %v4667_v62 }
0x12bb   :  { %2631 = vmatpush1.bf16.msra.mxu0 %v5624_v17  ;;  %2672 = vmatpush1.bf16.msra.mxu1 %v5630_v18  ;;  %v2496_v18 = vadd.f32 %v2492_v48, %v4670_v27 }
0x12bc   :  { %2733 = vmatprep.subr.bf16.mxu0 %v5866_v22  ;;  %2774 = vmatprep.subr.bf16.mxu1 %v5872_v34 }
0x1371   :  { %v2533_v15 = vpop.f32.mrb[76].mxu0  ;;  %v2574_v6 = vpop.f32.mrb[76].mxu1 }
0x1372   :  { %v2581_v17 = vadd.f32 %v2533_v15, %v2494_v26  ;;  %v2535_v7 = vpop.f32.mrb[77].mxu0  ;;  %v2576_v8 = vpop.f32.mrb[77].mxu1  ;;  %v2583_v51 = vadd.f32 %v2574_v6, %v2496_v18  ;;  %v6088_v18 = vld [vmem:[%s6669_s2 + $0xc8] ss:$16 sps:$4 sm:$0xff]  }
0x1373   :  { %v2582_v9 = vadd.f32 %v2535_v7, %v2495_v16  ;;  %v2537_v10 = vpop.f32.mrb[78].mxu0  ;;  %v2578_v2 = vpop.f32.mrb[78].mxu1  ;;  %v2584_v4 = vadd.f32 %v2576_v8, %v2497_v44  ;;  %v6094_v7 = vld [vmem:[%s6669_s2 + $0xe4] ss:$16 sps:$4 sm:$0xff]   ;;  %v6100_v8 = vld [vmem:[%s6669_s2 + $0xec] ss:$16 sps:$4 sm:$0xff]  }
0x1374   :  { %4098 = vtanh.f32 %v2581_v17  ;;  %v2538_v55 = vpop.f32.mrb[79].mxu0  ;;  %v2579_v30 = vpop.f32.mrb[79].mxu1  ;;  %v6112_v10 = vld [vmem:[%s6669_s2 + $0xe8] ss:$16 sps:$4 sm:$0xff]  }
0x1375   :  { %4100 = vtanh.f32 %v2582_v9  ;;  %v6106_v9 = vld [vmem:[%s6669_s2 + $0xe0] ss:$16 sps:$4 sm:$0xff]   ;;  %v2605_v2 = vpop.permute.xlu0 %2604 }
0x1376   :  { %4102 = vtanh.f32 %v2583_v51  ;;  %v2607_v51 = vmul.f32 %v2605_v2, %v4654_v54  ;;  %v2608_v55 = vmul.f32 %v2605_v2, %v4659_v56  ;;  %v2609_v30 = vmul.f32 %v2605_v2, %v4661_v57 }
0x1377   :  { %4104 = vtanh.f32 %v2584_v4 }
0x1378   :  { %v2611_v39 = vadd.f32 %v2607_v51, %v4664_v60 }
0x137e   :  { %v4099_v42 = vpop.eup %4098 }
0x137f   :  { %v2589_v12 = vmul.f32 0.5, %v4099_v42  ;;  %v4101_v46 = vpop.eup %4100  ;;  %v2612_v42 = vadd.f32 %v2608_v55, %v4667_v62 }
0x1380   :  { %v2591_v43 = vmul.f32 0.5, %v4101_v46  ;;  %v4103_v20 = vpop.eup %4102  ;;  %v2613_v46 = vadd.f32 %v2609_v30, %v4670_v27 }
0x1381   :  { %v2590_v35 = vadd.f32 0.5, %v2589_v12  ;;  %v4105_v0 = vpop.eup %4104 }
0x1382   :  { %v2592_v11 = vadd.f32 0.5, %v2591_v43  ;;  %v2593_v26 = vmul.f32 0.5, %v4105_v0 }
0x1383   :  { %v2596_v36 = vmul.f32 %v4103_v20, %v2590_v35 }
0x1384   :  { %v2595_v5 = vmul.f32 %v2592_v11, %v5884_v19  ;;  %v2594_v15 = vadd.f32 0.5, %v2593_v26  ;;  %v6082_v19 = vld [vmem:[%s6669_s2 + $0xc0] ss:$16 sps:$4 sm:$0xff]  }
0x1386   :  { %v6050_v48 = vadd.f32 %v2596_v36, %v2595_v5 }
0x1388   :  { %4106 = vtanh.f32 %v6050_v48 }
0x1392   :  { %v4107_v6 = vpop.eup %4106 }
0x1393   :  { %v2599_v16 = vmul.f32 %v4107_v6, %v2594_v15  ;;  %v2610_v15 = vmul.f32 %v2605_v2, %v4675_v40 }
0x1395   :  { %v2615_v17 = vpack.c.bf16 %v2599_v16, %v2599_v16  ;;  %v2614_v6 = vadd.f32 %v2610_v15, %v4678_v52 }
0x1397   :  { %2649 = vmatmul.mubr.bf16.vlgmr.msra.gmra.mrb[80].mxu0 %v2615_v17  ;;  %2690 = vmatmul.mubr.bf16.vlgmr.msra.gmra.mrb[80].mxu1 %v2615_v17 }
0x1398   :  { %2734 = vmatpush1.bf16.msra.mxu0 %v5890_v14  ;;  %2775 = vmatpush1.bf16.msra.mxu1 %v5896_v25 }
0x1399   :  { %2735 = vmatprep.subr.bf16.mxu0 %v5902_v23  ;;  %2776 = vmatprep.subr.bf16.mxu1 %v5908_v49 }
0x139a   :  { %2765 = vmatprep.mubr.bf16.mxu0 %v4336_v1  ;;  %2806 = vmatprep.mubr.bf16.mxu1 %v4336_v1 }
0x139c   :  { %2736 = vmatpush1.bf16.msra.mxu0 %v5916_v13  ;;  %2777 = vmatpush1.bf16.msra.mxu1 %v5922_v24 }
0x139d   :  { %2737 = vmatprep.subr.bf16.mxu0 %v5928_v45  ;;  %2778 = vmatprep.subr.bf16.mxu1 %v5934_v58 }
0x13a0   :  { %2738 = vmatpush1.bf16.msra.mxu0 %v5940_v53  ;;  %2779 = vmatpush1.bf16.msra.mxu1 %v5946_v28 }
0x13a1   :  { %2739 = vmatprep.subr.bf16.mxu0 %v5952_v31  ;;  %2780 = vmatprep.subr.bf16.mxu1 %v5958_v37 }
0x13a4   :  { %2740 = vmatpush1.bf16.msra.mxu0 %v5964_v21  ;;  %2781 = vmatpush1.bf16.msra.mxu1 %v5970_v32 }
0x13a5   :  { %2741 = vmatprep.subr.bf16.mxu0 %v5976_v29  ;;  %2782 = vmatprep.subr.bf16.mxu1 %v5982_v38 }
0x13a8   :  { %2742 = vmatpush1.bf16.msra.mxu0 %v5988_v3  ;;  %2783 = vmatpush1.bf16.msra.mxu1 %v5994_v41 }
0x13a9   :  { %2743 = vmatprep.subr.bf16.mxu0 %v6000_v50  ;;  %2784 = vmatprep.subr.bf16.mxu1 %v6006_v59 }
0x13ac   :  { %2744 = vmatpush1.bf16.msra.mxu0 %v6012_v47  ;;  %2785 = vmatpush1.bf16.msra.mxu1 %v6018_v61 }
0x13ad   :  { %2745 = vmatprep.subr.bf16.mxu0 %v6024_v63  ;;  %2786 = vmatprep.subr.bf16.mxu1 %v6030_v33 }
0x13b0   :  { %2746 = vmatpush1.bf16.msra.mxu0 %v6082_v19  ;;  %2787 = vmatpush1.bf16.msra.mxu1 %v6088_v18 }
0x13b1   :  { %2747 = vmatprep.subr.bf16.mxu0 %v6094_v7  ;;  %2788 = vmatprep.subr.bf16.mxu1 %v6100_v8 }
0x13b4   :  { %2748 = vmatpush1.bf16.msra.mxu0 %v6106_v9  ;;  %2789 = vmatpush1.bf16.msra.mxu1 %v6112_v10 }
0x13b5   :  { %2850 = vmatprep.subr.bf16.mxu0 %v5866_v22  ;;  %2891 = vmatprep.subr.bf16.mxu1 %v5872_v34 }
0x146a   :  { %v2650_v44 = vpop.f32.mrb[80].mxu0  ;;  %v2691_v4 = vpop.f32.mrb[80].mxu1 }
0x146b   :  { %v2698_v12 = vadd.f32 %v2650_v44, %v2611_v39  ;;  %v2652_v35 = vpop.f32.mrb[81].mxu0  ;;  %v2693_v43 = vpop.f32.mrb[81].mxu1  ;;  %v2700_v5 = vadd.f32 %v2691_v4, %v2613_v46 }
0x146c   :  { %v2699_v20 = vadd.f32 %v2652_v35, %v2612_v42  ;;  %v2654_v11 = vpop.f32.mrb[82].mxu0  ;;  %v2695_v36 = vpop.f32.mrb[82].mxu1  ;;  %v2701_v16 = vadd.f32 %v2693_v43, %v2614_v6 }
0x146d   :  { %4108 = vtanh.f32 %v2698_v12  ;;  %v2655_v0 = vpop.f32.mrb[83].mxu0  ;;  %v2696_v26 = vpop.f32.mrb[83].mxu1 }
0x146e   :  { %4110 = vtanh.f32 %v2699_v20 }
0x146f   :  { %4112 = vtanh.f32 %v2700_v5 }
0x1470   :  { %4114 = vtanh.f32 %v2701_v16 }
0x1477   :  { %v4109_v17 = vpop.eup %4108 }
0x1478   :  { %v2706_v51 = vmul.f32 0.5, %v4109_v17  ;;  %v4111_v55 = vpop.eup %4110 }
0x1479   :  { %v2708_v39 = vmul.f32 0.5, %v4111_v55  ;;  %v4113_v44 = vpop.eup %4112 }
0x147a   :  { %v2707_v30 = vadd.f32 0.5, %v2706_v51  ;;  %v4115_v2 = vpop.eup %4114 }
0x147b   :  { %v2709_v42 = vadd.f32 0.5, %v2708_v39  ;;  %v2710_v46 = vmul.f32 0.5, %v4115_v2 }
0x147c   :  { %v2713_v35 = vmul.f32 %v4113_v44, %v2707_v30 }
0x147d   :  { %v2712_v4 = vmul.f32 %v2709_v42, %v6050_v48  ;;  %v2711_v20 = vadd.f32 0.5, %v2710_v46  ;;  %v2722_v48 = vpop.permute.xlu1 %2721 }
0x147e   :  { %v2724_v5 = vmul.f32 %v2722_v48, %v4654_v54  ;;  %v2725_v0 = vmul.f32 %v2722_v48, %v4659_v56  ;;  %v2726_v26 = vmul.f32 %v2722_v48, %v4661_v57 }
0x147f   :  { %v6126_v12 = vadd.f32 %v2713_v35, %v2712_v4 }
0x1480   :  { %v2728_v15 = vadd.f32 %v2724_v5, %v4664_v60  ;;  %v2729_v17 = vadd.f32 %v2725_v0, %v4667_v62  ;;  %v2730_v55 = vadd.f32 %v2726_v26, %v4670_v27 }
0x1481   :  { %4116 = vtanh.f32 %v6126_v12 }
0x148b   :  { %v4117_v11 = vpop.eup %4116 }
0x148c   :  { %v2716_v43 = vmul.f32 %v4117_v11, %v2711_v20  ;;  %v2727_v20 = vmul.f32 %v2722_v48, %v4675_v40 }
0x148e   :  { %v2732_v36 = vpack.c.bf16 %v2716_v43, %v2716_v43  ;;  %v2731_v11 = vadd.f32 %v2727_v20, %v4678_v52 }
0x1490   :  { %2766 = vmatmul.mubr.bf16.vlgmr.msra.gmra.mrb[84].mxu0 %v2732_v36  ;;  %2807 = vmatmul.mubr.bf16.vlgmr.msra.gmra.mrb[84].mxu1 %v2732_v36 }
0x1491   :  { %2851 = vmatpush1.bf16.msra.mxu0 %v5890_v14  ;;  %2892 = vmatpush1.bf16.msra.mxu1 %v5896_v25 }
0x1492   :  { %2852 = vmatprep.subr.bf16.mxu0 %v5902_v23  ;;  %2893 = vmatprep.subr.bf16.mxu1 %v5908_v49 }
0x1493   :  { %2882 = vmatprep.mubr.bf16.mxu0 %v4336_v1  ;;  %2923 = vmatprep.mubr.bf16.mxu1 %v4336_v1 }
0x1495   :  { %2853 = vmatpush1.bf16.msra.mxu0 %v5916_v13  ;;  %2894 = vmatpush1.bf16.msra.mxu1 %v5922_v24 }
0x1496   :  { %2854 = vmatprep.subr.bf16.mxu0 %v5928_v45  ;;  %2895 = vmatprep.subr.bf16.mxu1 %v5934_v58 }
0x1499   :  { %2855 = vmatpush1.bf16.msra.mxu0 %v5940_v53  ;;  %2896 = vmatpush1.bf16.msra.mxu1 %v5946_v28 }
0x149a   :  { %2856 = vmatprep.subr.bf16.mxu0 %v5952_v31  ;;  %2897 = vmatprep.subr.bf16.mxu1 %v5958_v37 }
0x149d   :  { %2857 = vmatpush1.bf16.msra.mxu0 %v5964_v21  ;;  %2898 = vmatpush1.bf16.msra.mxu1 %v5970_v32 }
0x149e   :  { %2858 = vmatprep.subr.bf16.mxu0 %v5976_v29  ;;  %2899 = vmatprep.subr.bf16.mxu1 %v5982_v38 }
0x14a1   :  { %2859 = vmatpush1.bf16.msra.mxu0 %v5988_v3  ;;  %2900 = vmatpush1.bf16.msra.mxu1 %v5994_v41 }
0x14a2   :  { %2860 = vmatprep.subr.bf16.mxu0 %v6000_v50  ;;  %2901 = vmatprep.subr.bf16.mxu1 %v6006_v59 }
0x14a5   :  { %2861 = vmatpush1.bf16.msra.mxu0 %v6012_v47  ;;  %2902 = vmatpush1.bf16.msra.mxu1 %v6018_v61 }
0x14a6   :  { %2862 = vmatprep.subr.bf16.mxu0 %v6024_v63  ;;  %2903 = vmatprep.subr.bf16.mxu1 %v6030_v33 }
0x14a9   :  { %2863 = vmatpush1.bf16.msra.mxu0 %v6082_v19  ;;  %2904 = vmatpush1.bf16.msra.mxu1 %v6088_v18 }
0x14aa   :  { %2864 = vmatprep.subr.bf16.mxu0 %v6094_v7  ;;  %2905 = vmatprep.subr.bf16.mxu1 %v6100_v8 }
0x14ad   :  { %2865 = vmatpush1.bf16.msra.mxu0 %v6106_v9  ;;  %2906 = vmatpush1.bf16.msra.mxu1 %v6112_v10 }
0x14ae   :  { %2967 = vmatprep.subr.bf16.mxu0 %v5866_v22  ;;  %3008 = vmatprep.subr.bf16.mxu1 %v5872_v34 }
0x1563   :  { %v2767_v6 = vpop.f32.mrb[84].mxu0  ;;  %v2808_v16 = vpop.f32.mrb[84].mxu1 }
0x1564   :  { %v2815_v51 = vadd.f32 %v2767_v6, %v2728_v15  ;;  %v2769_v30 = vpop.f32.mrb[85].mxu0  ;;  %v2810_v39 = vpop.f32.mrb[85].mxu1  ;;  %v2817_v4 = vadd.f32 %v2808_v16, %v2730_v55 }
0x1565   :  { %v2816_v44 = vadd.f32 %v2769_v30, %v2729_v17  ;;  %v2771_v42 = vpop.f32.mrb[86].mxu0  ;;  %v2812_v35 = vpop.f32.mrb[86].mxu1  ;;  %v2818_v43 = vadd.f32 %v2810_v39, %v2731_v11 }
0x1566   :  { %4118 = vtanh.f32 %v2815_v51  ;;  %v2772_v2 = vpop.f32.mrb[87].mxu0  ;;  %v2813_v46 = vpop.f32.mrb[87].mxu1 }
0x1567   :  { %4120 = vtanh.f32 %v2816_v44 }
0x1568   :  { %4122 = vtanh.f32 %v2817_v4 }
0x1569   :  { %4124 = vtanh.f32 %v2818_v43 }
0x1570   :  { %v4119_v36 = vpop.eup %4118 }
0x1571   :  { %v2823_v5 = vmul.f32 0.5, %v4119_v36  ;;  %v4121_v0 = vpop.eup %4120 }
0x1572   :  { %v2825_v15 = vmul.f32 0.5, %v4121_v0  ;;  %v4123_v6 = vpop.eup %4122 }
0x1573   :  { %v2824_v26 = vadd.f32 0.5, %v2823_v5  ;;  %v4125_v48 = vpop.eup %4124 }
0x1574   :  { %v2826_v17 = vadd.f32 0.5, %v2825_v15  ;;  %v2827_v55 = vmul.f32 0.5, %v4125_v48 }
0x1575   :  { %v2830_v30 = vmul.f32 %v4123_v6, %v2824_v26 }
0x1576   :  { %v2829_v16 = vmul.f32 %v2826_v17, %v6126_v12  ;;  %v2828_v44 = vadd.f32 0.5, %v2827_v55  ;;  %v2839_v12 = vpop.permute.xlu0 %2838 }
0x1577   :  { %v2841_v4 = vmul.f32 %v2839_v12, %v4654_v54  ;;  %v2842_v2 = vmul.f32 %v2839_v12, %v4659_v56  ;;  %v2843_v46 = vmul.f32 %v2839_v12, %v4661_v57 }
0x1578   :  { %v6172_v51 = vadd.f32 %v2830_v30, %v2829_v16 }
0x1579   :  { %v2845_v20 = vadd.f32 %v2841_v4, %v4664_v60  ;;  %v2846_v36 = vadd.f32 %v2842_v2, %v4667_v62  ;;  %v2847_v0 = vadd.f32 %v2843_v46, %v4670_v27 }
0x157a   :  { %4126 = vtanh.f32 %v6172_v51 }
0x1584   :  { %v4127_v42 = vpop.eup %4126 }
0x1585   :  { %v2833_v39 = vmul.f32 %v4127_v42, %v2828_v44  ;;  %v2844_v44 = vmul.f32 %v2839_v12, %v4675_v40 }
0x1587   :  { %v2849_v35 = vpack.c.bf16 %v2833_v39, %v2833_v39  ;;  %v2848_v42 = vadd.f32 %v2844_v44, %v4678_v52 }
0x1589   :  { %2883 = vmatmul.mubr.bf16.vlgmr.msra.gmra.mrb[88].mxu0 %v2849_v35  ;;  %2924 = vmatmul.mubr.bf16.vlgmr.msra.gmra.mrb[88].mxu1 %v2849_v35 }
0x158a   :  { %2968 = vmatpush1.bf16.msra.mxu0 %v5890_v14  ;;  %3009 = vmatpush1.bf16.msra.mxu1 %v5896_v25 }
0x158b   :  { %2969 = vmatprep.subr.bf16.mxu0 %v5902_v23  ;;  %3010 = vmatprep.subr.bf16.mxu1 %v5908_v49 }
0x158c   :  { %2999 = vmatprep.mubr.bf16.mxu0 %v4336_v1  ;;  %3040 = vmatprep.mubr.bf16.mxu1 %v4336_v1 }
0x158e   :  { %2970 = vmatpush1.bf16.msra.mxu0 %v5916_v13  ;;  %3011 = vmatpush1.bf16.msra.mxu1 %v5922_v24 }
0x158f   :  { %2971 = vmatprep.subr.bf16.mxu0 %v5928_v45  ;;  %3012 = vmatprep.subr.bf16.mxu1 %v5934_v58 }
0x1592   :  { %2972 = vmatpush1.bf16.msra.mxu0 %v5940_v53  ;;  %3013 = vmatpush1.bf16.msra.mxu1 %v5946_v28 }
0x1593   :  { %2973 = vmatprep.subr.bf16.mxu0 %v5952_v31  ;;  %3014 = vmatprep.subr.bf16.mxu1 %v5958_v37 }
0x1596   :  { %2974 = vmatpush1.bf16.msra.mxu0 %v5964_v21  ;;  %3015 = vmatpush1.bf16.msra.mxu1 %v5970_v32 }
0x1597   :  { %2975 = vmatprep.subr.bf16.mxu0 %v5976_v29  ;;  %3016 = vmatprep.subr.bf16.mxu1 %v5982_v38 }
0x159a   :  { %2976 = vmatpush1.bf16.msra.mxu0 %v5988_v3  ;;  %3017 = vmatpush1.bf16.msra.mxu1 %v5994_v41 }
0x159b   :  { %2977 = vmatprep.subr.bf16.mxu0 %v6000_v50  ;;  %3018 = vmatprep.subr.bf16.mxu1 %v6006_v59 }
0x159e   :  { %2978 = vmatpush1.bf16.msra.mxu0 %v6012_v47  ;;  %3019 = vmatpush1.bf16.msra.mxu1 %v6018_v61 }
0x159f   :  { %2979 = vmatprep.subr.bf16.mxu0 %v6024_v63  ;;  %3020 = vmatprep.subr.bf16.mxu1 %v6030_v33 }
0x15a2   :  { %2980 = vmatpush1.bf16.msra.mxu0 %v6082_v19  ;;  %3021 = vmatpush1.bf16.msra.mxu1 %v6088_v18 }
0x15a3   :  { %2981 = vmatprep.subr.bf16.mxu0 %v6094_v7  ;;  %3022 = vmatprep.subr.bf16.mxu1 %v6100_v8 }
0x15a6   :  { %2982 = vmatpush1.bf16.msra.mxu0 %v6106_v9  ;;  %3023 = vmatpush1.bf16.msra.mxu1 %v6112_v10 }
0x15a7   :  { %3084 = vmatprep.subr.bf16.mxu0 %v5866_v22  ;;  %3125 = vmatprep.subr.bf16.mxu1 %v5872_v34 }
0x165c   :  { %v2884_v11 = vpop.f32.mrb[88].mxu0  ;;  %v2925_v43 = vpop.f32.mrb[88].mxu1 }
0x165d   :  { %v2932_v5 = vadd.f32 %v2884_v11, %v2845_v20  ;;  %v2886_v26 = vpop.f32.mrb[89].mxu0  ;;  %v2927_v15 = vpop.f32.mrb[89].mxu1  ;;  %v2934_v16 = vadd.f32 %v2925_v43, %v2847_v0 }
0x165e   :  { %v2933_v6 = vadd.f32 %v2886_v26, %v2846_v36  ;;  %v2888_v17 = vpop.f32.mrb[90].mxu0  ;;  %v2929_v30 = vpop.f32.mrb[90].mxu1  ;;  %v2935_v39 = vadd.f32 %v2927_v15, %v2848_v42 }
0x165f   :  { %4128 = vtanh.f32 %v2932_v5  ;;  %v2889_v48 = vpop.f32.mrb[91].mxu0  ;;  %v2930_v55 = vpop.f32.mrb[91].mxu1 }
0x1660   :  { %4130 = vtanh.f32 %v2933_v6 }
0x1661   :  { %4132 = vtanh.f32 %v2934_v16 }
0x1662   :  { %4134 = vtanh.f32 %v2935_v39 }
0x1669   :  { %v4129_v35 = vpop.eup %4128 }
0x166a   :  { %v2940_v4 = vmul.f32 0.5, %v4129_v35  ;;  %v4131_v2 = vpop.eup %4130 }
0x166b   :  { %v2942_v20 = vmul.f32 0.5, %v4131_v2  ;;  %v4133_v11 = vpop.eup %4132 }
0x166c   :  { %v2941_v46 = vadd.f32 0.5, %v2940_v4  ;;  %v4135_v12 = vpop.eup %4134 }
0x166d   :  { %v2943_v36 = vadd.f32 0.5, %v2942_v20  ;;  %v2944_v0 = vmul.f32 0.5, %v4135_v12 }
0x166e   :  { %v2947_v26 = vmul.f32 %v4133_v11, %v2941_v46 }
0x166f   :  { %v2946_v43 = vmul.f32 %v2943_v36, %v6172_v51  ;;  %v2945_v6 = vadd.f32 0.5, %v2944_v0  ;;  %v2956_v51 = vpop.permute.xlu1 %2955 }
0x1670   :  { %v2958_v16 = vmul.f32 %v2956_v51, %v4654_v54  ;;  %v2959_v48 = vmul.f32 %v2956_v51, %v4659_v56  ;;  %v2960_v55 = vmul.f32 %v2956_v51, %v4661_v57 }
0x1671   :  { %v6218_v5 = vadd.f32 %v2947_v26, %v2946_v43 }
0x1672   :  { %v2962_v44 = vadd.f32 %v2958_v16, %v4664_v60  ;;  %v2963_v35 = vadd.f32 %v2959_v48, %v4667_v62  ;;  %v2964_v2 = vadd.f32 %v2960_v55, %v4670_v27 }
0x1673   :  { %4136 = vtanh.f32 %v6218_v5 }
0x167d   :  { %v4137_v17 = vpop.eup %4136 }
0x167e   :  { %v2950_v15 = vmul.f32 %v4137_v17, %v2945_v6  ;;  %v2961_v6 = vmul.f32 %v2956_v51, %v4675_v40 }
0x1680   :  { %v2966_v30 = vpack.c.bf16 %v2950_v15, %v2950_v15  ;;  %v2965_v17 = vadd.f32 %v2961_v6, %v4678_v52 }
0x1682   :  { %3000 = vmatmul.mubr.bf16.vlgmr.msra.gmra.mrb[92].mxu0 %v2966_v30  ;;  %3041 = vmatmul.mubr.bf16.vlgmr.msra.gmra.mrb[92].mxu1 %v2966_v30 }
0x1683   :  { %3085 = vmatpush1.bf16.msra.mxu0 %v5890_v14  ;;  %3126 = vmatpush1.bf16.msra.mxu1 %v5896_v25 }
0x1684   :  { %3086 = vmatprep.subr.bf16.mxu0 %v5902_v23  ;;  %3127 = vmatprep.subr.bf16.mxu1 %v5908_v49 }
0x1685   :  { %3116 = vmatprep.mubr.bf16.mxu0 %v4336_v1  ;;  %3157 = vmatprep.mubr.bf16.mxu1 %v4336_v1 }
0x1687   :  { %3087 = vmatpush1.bf16.msra.mxu0 %v5916_v13  ;;  %3128 = vmatpush1.bf16.msra.mxu1 %v5922_v24 }
0x1688   :  { %3088 = vmatprep.subr.bf16.mxu0 %v5928_v45  ;;  %3129 = vmatprep.subr.bf16.mxu1 %v5934_v58 }
0x168b   :  { %3089 = vmatpush1.bf16.msra.mxu0 %v5940_v53  ;;  %3130 = vmatpush1.bf16.msra.mxu1 %v5946_v28 }
0x168c   :  { %3090 = vmatprep.subr.bf16.mxu0 %v5952_v31  ;;  %3131 = vmatprep.subr.bf16.mxu1 %v5958_v37 }
0x168f   :  { %3091 = vmatpush1.bf16.msra.mxu0 %v5964_v21  ;;  %3132 = vmatpush1.bf16.msra.mxu1 %v5970_v32 }
0x1690   :  { %3092 = vmatprep.subr.bf16.mxu0 %v5976_v29  ;;  %3133 = vmatprep.subr.bf16.mxu1 %v5982_v38 }
0x1693   :  { %3093 = vmatpush1.bf16.msra.mxu0 %v5988_v3  ;;  %3134 = vmatpush1.bf16.msra.mxu1 %v5994_v41 }
0x1694   :  { %3094 = vmatprep.subr.bf16.mxu0 %v6000_v50  ;;  %3135 = vmatprep.subr.bf16.mxu1 %v6006_v59 }
0x1697   :  { %3095 = vmatpush1.bf16.msra.mxu0 %v6012_v47  ;;  %3136 = vmatpush1.bf16.msra.mxu1 %v6018_v61 }
0x1698   :  { %3096 = vmatprep.subr.bf16.mxu0 %v6024_v63  ;;  %3137 = vmatprep.subr.bf16.mxu1 %v6030_v33 }
0x169b   :  { %3097 = vmatpush1.bf16.msra.mxu0 %v6082_v19  ;;  %3138 = vmatpush1.bf16.msra.mxu1 %v6088_v18 }
0x169c   :  { %3098 = vmatprep.subr.bf16.mxu0 %v6094_v7  ;;  %3139 = vmatprep.subr.bf16.mxu1 %v6100_v8 }
0x169f   :  { %3099 = vmatpush1.bf16.msra.mxu0 %v6106_v9  ;;  %3140 = vmatpush1.bf16.msra.mxu1 %v6112_v10 }
0x16a0   :  { %3201 = vmatprep.subr.bf16.mxu0 %v5866_v22  ;;  %3242 = vmatprep.subr.bf16.mxu1 %v5872_v34 }
0x1755   :  { %v3001_v42 = vpop.f32.mrb[92].mxu0  ;;  %v3042_v39 = vpop.f32.mrb[92].mxu1 }
0x1756   :  { %v3049_v4 = vadd.f32 %v3001_v42, %v2962_v44  ;;  %v3003_v46 = vpop.f32.mrb[93].mxu0  ;;  %v3044_v20 = vpop.f32.mrb[93].mxu1  ;;  %v3051_v43 = vadd.f32 %v3042_v39, %v2964_v2 }
0x1757   :  { %v3050_v11 = vadd.f32 %v3003_v46, %v2963_v35  ;;  %v3005_v36 = vpop.f32.mrb[94].mxu0  ;;  %v3046_v26 = vpop.f32.mrb[94].mxu1  ;;  %v3052_v15 = vadd.f32 %v3044_v20, %v2965_v17 }
0x1758   :  { %4138 = vtanh.f32 %v3049_v4  ;;  %v3006_v12 = vpop.f32.mrb[95].mxu0  ;;  %v3047_v0 = vpop.f32.mrb[95].mxu1 }
0x1759   :  { %4140 = vtanh.f32 %v3050_v11 }
0x175a   :  { %4142 = vtanh.f32 %v3051_v43 }
0x175b   :  { %4144 = vtanh.f32 %v3052_v15 }
0x1762   :  { %v4139_v30 = vpop.eup %4138 }
0x1763   :  { %v3057_v16 = vmul.f32 0.5, %v4139_v30  ;;  %v4141_v48 = vpop.eup %4140 }
0x1764   :  { %v3059_v44 = vmul.f32 0.5, %v4141_v48  ;;  %v4143_v42 = vpop.eup %4142 }
0x1765   :  { %v3058_v55 = vadd.f32 0.5, %v3057_v16  ;;  %v4145_v51 = vpop.eup %4144 }
0x1766   :  { %v3060_v35 = vadd.f32 0.5, %v3059_v44  ;;  %v3061_v2 = vmul.f32 0.5, %v4145_v51 }
0x1767   :  { %v3064_v46 = vmul.f32 %v4143_v42, %v3058_v55 }
0x1768   :  { %v3063_v39 = vmul.f32 %v3060_v35, %v6218_v5  ;;  %v3062_v11 = vadd.f32 0.5, %v3061_v2  ;;  %v3073_v5 = vpop.permute.xlu0 %3072 }
0x1769   :  { %v3075_v43 = vmul.f32 %v3073_v5, %v4654_v54  ;;  %v3076_v12 = vmul.f32 %v3073_v5, %v4659_v56  ;;  %v3077_v0 = vmul.f32 %v3073_v5, %v4661_v57  ;;  %v3078_v51 = vmul.f32 %v3073_v5, %v4675_v40 }
0x176a   :  { %v6264_v4 = vadd.f32 %v3064_v46, %v3063_v39 }
0x176b   :  { %v3079_v6 = vadd.f32 %v3075_v43, %v4664_v60  ;;  %v3080_v30 = vadd.f32 %v3076_v12, %v4667_v62  ;;  %v3081_v48 = vadd.f32 %v3077_v0, %v4670_v27  ;;  %v3082_v2 = vadd.f32 %v3078_v51, %v4678_v52 }
0x176c   :  { %4146 = vtanh.f32 %v6264_v4 }
0x1776   :  { %v4147_v36 = vpop.eup %4146 }
0x1777   :  { %v3067_v20 = vmul.f32 %v4147_v36, %v3062_v11 }
0x1779   :  { %v3083_v26 = vpack.c.bf16 %v3067_v20, %v3067_v20 }
0x177b   :  { %3117 = vmatmul.mubr.bf16.vlgmr.msra.gmra.mrb[96].mxu0 %v3083_v26  ;;  %3158 = vmatmul.mubr.bf16.vlgmr.msra.gmra.mrb[96].mxu1 %v3083_v26 }
0x177c   :  { %3202 = vmatpush1.bf16.msra.mxu0 %v5890_v14  ;;  %3243 = vmatpush1.bf16.msra.mxu1 %v5896_v25 }
0x177d   :  { %3203 = vmatprep.subr.bf16.mxu0 %v5902_v23  ;;  %3244 = vmatprep.subr.bf16.mxu1 %v5908_v49 }
0x177e   :  { %3233 = vmatprep.mubr.bf16.mxu0 %v4336_v1  ;;  %3274 = vmatprep.mubr.bf16.mxu1 %v4336_v1 }
0x1780   :  { %3204 = vmatpush1.bf16.msra.mxu0 %v5916_v13  ;;  %3245 = vmatpush1.bf16.msra.mxu1 %v5922_v24 }
0x1781   :  { %3205 = vmatprep.subr.bf16.mxu0 %v5928_v45  ;;  %3246 = vmatprep.subr.bf16.mxu1 %v5934_v58 }
0x1784   :  { %3206 = vmatpush1.bf16.msra.mxu0 %v5940_v53  ;;  %3247 = vmatpush1.bf16.msra.mxu1 %v5946_v28 }
0x1785   :  { %3207 = vmatprep.subr.bf16.mxu0 %v5952_v31  ;;  %3248 = vmatprep.subr.bf16.mxu1 %v5958_v37 }
0x1788   :  { %3208 = vmatpush1.bf16.msra.mxu0 %v5964_v21  ;;  %3249 = vmatpush1.bf16.msra.mxu1 %v5970_v32 }
0x1789   :  { %3209 = vmatprep.subr.bf16.mxu0 %v5976_v29  ;;  %3250 = vmatprep.subr.bf16.mxu1 %v5982_v38 }
0x178c   :  { %3210 = vmatpush1.bf16.msra.mxu0 %v5988_v3  ;;  %3251 = vmatpush1.bf16.msra.mxu1 %v5994_v41 }
0x178d   :  { %3211 = vmatprep.subr.bf16.mxu0 %v6000_v50  ;;  %3252 = vmatprep.subr.bf16.mxu1 %v6006_v59 }
0x1790   :  { %3212 = vmatpush1.bf16.msra.mxu0 %v6012_v47  ;;  %3253 = vmatpush1.bf16.msra.mxu1 %v6018_v61 }
0x1791   :  { %3213 = vmatprep.subr.bf16.mxu0 %v6024_v63  ;;  %3254 = vmatprep.subr.bf16.mxu1 %v6030_v33 }
0x1794   :  { %3214 = vmatpush1.bf16.msra.mxu0 %v6082_v19  ;;  %3255 = vmatpush1.bf16.msra.mxu1 %v6088_v18 }
0x1795   :  { %3215 = vmatprep.subr.bf16.mxu0 %v6094_v7  ;;  %3256 = vmatprep.subr.bf16.mxu1 %v6100_v8 }
0x1798   :  { %3216 = vmatpush1.bf16.msra.mxu0 %v6106_v9  ;;  %3257 = vmatpush1.bf16.msra.mxu1 %v6112_v10 }
0x1799   :  { %3318 = vmatprep.subr.bf16.mxu0 %v5866_v22  ;;  %3359 = vmatprep.subr.bf16.mxu1 %v5872_v34 }
0x184e   :  { %v3118_v17 = vpop.f32.mrb[96].mxu0  ;;  %v3159_v15 = vpop.f32.mrb[96].mxu1 }
0x184f   :  { %v3166_v16 = vadd.f32 %v3118_v17, %v3079_v6  ;;  %v3120_v55 = vpop.f32.mrb[97].mxu0  ;;  %v3161_v22 = vpop.f32.mrb[97].mxu1  ;;  %v3168_v35 = vadd.f32 %v3159_v15, %v3081_v48 }
0x1850   :  { %v3167_v44 = vadd.f32 %v3120_v55, %v3080_v30  ;;  %v3122_v34 = vpop.f32.mrb[98].mxu0  ;;  %v3163_v42 = vpop.f32.mrb[98].mxu1  ;;  %v3169_v11 = vadd.f32 %v3161_v22, %v3082_v2 }
0x1851   :  { %4148 = vtanh.f32 %v3166_v16  ;;  %v3123_v46 = vpop.f32.mrb[99].mxu0  ;;  %v3164_v39 = vpop.f32.mrb[99].mxu1 }
0x1852   :  { %4150 = vtanh.f32 %v3167_v44 }
0x1853   :  { %4152 = vtanh.f32 %v3168_v35 }
0x1854   :  { %4154 = vtanh.f32 %v3169_v11 }
0x185b   :  { %v4149_v36 = vpop.eup %4148 }
0x185c   :  { %v3174_v20 = vmul.f32 0.5, %v4149_v36  ;;  %v4151_v26 = vpop.eup %4150 }
0x185d   :  { %v3176_v12 = vmul.f32 0.5, %v4151_v26  ;;  %v4153_v0 = vpop.eup %4152 }
0x185e   :  { %v3175_v43 = vadd.f32 0.5, %v3174_v20  ;;  %v4155_v5 = vpop.eup %4154 }
0x185f   :  { %v3177_v6 = vadd.f32 0.5, %v3176_v12  ;;  %v3178_v16 = vmul.f32 0.5, %v4155_v5  ;;  %v6398_v5 = vld [vmem:[%s6669_s2 + $0x20] ss:$16 sps:$4 sm:$0xff]  }
0x1860   :  { %v3181_v17 = vmul.f32 %v4153_v0, %v3175_v43 }
0x1861   :  { %v3180_v15 = vmul.f32 %v3177_v6, %v6264_v4  ;;  %v3179_v48 = vadd.f32 0.5, %v3178_v16  ;;  %v6372_v6 = vld [vmem:[%s6669_s2] ss:$16 sps:$4 sm:$0xff]   ;;  %v6404_v16 = vld [vmem:[%s6669_s2 + $0x28] ss:$16 sps:$4 sm:$0xff]  }
0x1863   :  { %v6310_v30 = vadd.f32 %v3181_v17, %v3180_v15  ;;  %v6378_v17 = vld [vmem:[%s6669_s2 + $0x8] ss:$16 sps:$4 sm:$0xff]   ;;  %v6384_v15 = vld [vmem:[%s6669_s2 + $0x24] ss:$16 sps:$4 sm:$0xff]  }
0x1865   :  { %4156 = vtanh.f32 %v6310_v30 }
0x186f   :  { %v4157_v55 = vpop.eup %4156 }
0x1870   :  { %v3184_v22 = vmul.f32 %v4157_v55, %v3179_v48  ;;  %v6410_v48 = vld [vmem:[%s6669_s2 + $0x44] ss:$16 sps:$4 sm:$0xff]   ;;  %v6416_v55 = vld [vmem:[%s6669_s2 + $0x4c] ss:$16 sps:$4 sm:$0xff]  }
0x1872   :  { %v3200_v44 = vpack.c.bf16 %v3184_v22, %v3184_v22  ;;  %v6422_v22 = vld [vmem:[%s6669_s2 + $0x40] ss:$16 sps:$4 sm:$0xff]  }
0x1874   :  { %3234 = vmatmul.mubr.bf16.vlgmr.msra.gmra.mrb[100].mxu0 %v3200_v44  ;;  %3275 = vmatmul.mubr.bf16.vlgmr.msra.gmra.mrb[100].mxu1 %v3200_v44  ;;  %v6428_v44 = vld [vmem:[%s6669_s2 + $0x48] ss:$16 sps:$4 sm:$0xff]  }
0x1875   :  { %3319 = vmatpush1.bf16.msra.mxu0 %v5890_v14  ;;  %3360 = vmatpush1.bf16.msra.mxu1 %v5896_v25  ;;  %v6348_v14 = vld [vmem:[%s6669_s2 + $0x4] ss:$16 sps:$4 sm:$0xff]   ;;  %v6354_v25 = vld [vmem:[%s6669_s2 + $0xc] ss:$16 sps:$4 sm:$0xff]  }
0x1876   :  { %3320 = vmatprep.subr.bf16.mxu0 %v5902_v23  ;;  %3361 = vmatprep.subr.bf16.mxu1 %v5908_v49  ;;  %v3190_v23 = vpop.permute.xlu1 %3189 }
0x1877   :  { %3350 = vmatprep.mubr.bf16.mxu0 %v4336_v1  ;;  %3391 = vmatprep.mubr.bf16.mxu1 %v4336_v1  ;;  %v3192_v49 = vmul.f32 %v3190_v23, %v4654_v54 }
0x1879   :  { %3321 = vmatpush1.bf16.msra.mxu0 %v5916_v13  ;;  %3362 = vmatpush1.bf16.msra.mxu1 %v5922_v24  ;;  %v3193_v13 = vmul.f32 %v3190_v23, %v4659_v56  ;;  %v3194_v24 = vmul.f32 %v3190_v23, %v4661_v57 }
0x187a   :  { %3322 = vmatprep.subr.bf16.mxu0 %v5928_v45  ;;  %3363 = vmatprep.subr.bf16.mxu1 %v5934_v58  ;;  %v3196_v45 = vadd.f32 %v3192_v49, %v4664_v60  ;;  %v6440_v49 = vld [vmem:[%s6669_s2 + $0x6c] ss:$16 sps:$4 sm:$0xff]  }
0x187d   :  { %3323 = vmatpush1.bf16.msra.mxu0 %v5940_v53  ;;  %3364 = vmatpush1.bf16.msra.mxu1 %v5946_v28  ;;  %v3197_v28 = vadd.f32 %v3193_v13, %v4667_v62  ;;  %v6446_v13 = vld [vmem:[%s6669_s2 + $0x60] ss:$16 sps:$4 sm:$0xff]  }
0x187e   :  { %3324 = vmatprep.subr.bf16.mxu0 %v5952_v31  ;;  %3365 = vmatprep.subr.bf16.mxu1 %v5958_v37  ;;  %v3198_v37 = vadd.f32 %v3194_v24, %v4670_v27  ;;  %v6452_v24 = vld [vmem:[%s6669_s2 + $0x68] ss:$16 sps:$4 sm:$0xff]  }
0x1881   :  { %3325 = vmatpush1.bf16.msra.mxu0 %v5964_v21  ;;  %3366 = vmatpush1.bf16.msra.mxu1 %v5970_v32 }
0x1882   :  { %3326 = vmatprep.subr.bf16.mxu0 %v5976_v29  ;;  %3367 = vmatprep.subr.bf16.mxu1 %v5982_v38 }
0x1885   :  { %3327 = vmatpush1.bf16.msra.mxu0 %v5988_v3  ;;  %3368 = vmatpush1.bf16.msra.mxu1 %v5994_v41 }
0x1886   :  { %3328 = vmatprep.subr.bf16.mxu0 %v6000_v50  ;;  %3369 = vmatprep.subr.bf16.mxu1 %v6006_v59 }
0x1889   :  { %3329 = vmatpush1.bf16.msra.mxu0 %v6012_v47  ;;  %3370 = vmatpush1.bf16.msra.mxu1 %v6018_v61  ;;  %v3195_v47 = vmul.f32 %v3190_v23, %v4675_v40  ;;  %v6434_v23 = vld [vmem:[%s6669_s2 + $0x64] ss:$16 sps:$4 sm:$0xff]  }
0x188a   :  { %3330 = vmatprep.subr.bf16.mxu0 %v6024_v63  ;;  %3371 = vmatprep.subr.bf16.mxu1 %v6030_v33 }
0x188b   :  { %v3199_v61 = vadd.f32 %v3195_v47, %v4678_v52 }
0x188d   :  { %3331 = vmatpush1.bf16.msra.mxu0 %v6082_v19  ;;  %3372 = vmatpush1.bf16.msra.mxu1 %v6088_v18 }
0x188e   :  { %3332 = vmatprep.subr.bf16.mxu0 %v6094_v7  ;;  %3373 = vmatprep.subr.bf16.mxu1 %v6100_v8 }
0x1891   :  { %3333 = vmatpush1.bf16.msra.mxu0 %v6106_v9  ;;  %3374 = vmatpush1.bf16.msra.mxu1 %v6112_v10 }
0x1892   :  { %3435 = vmatprep.subr.bf16.mxu0 %v6348_v14  ;;  %3476 = vmatprep.subr.bf16.mxu1 %v6354_v25 }
0x1947   :  { %v3235_v58 = vpop.f32.mrb[100].mxu0  ;;  %v3276_v53 = vpop.f32.mrb[100].mxu1 }
0x1948   :  { %v3283_v31 = vadd.f32 %v3235_v58, %v3196_v45  ;;  %v3237_v21 = vpop.f32.mrb[101].mxu0  ;;  %v3278_v32 = vpop.f32.mrb[101].mxu1  ;;  %v3285_v41 = vadd.f32 %v3276_v53, %v3198_v37  ;;  %v6458_v45 = vld [vmem:[%s6669_s2 + $0x84] ss:$16 sps:$4 sm:$0xff]   ;;  %v6464_v58 = vld [vmem:[%s6669_s2 + $0x8c] ss:$16 sps:$4 sm:$0xff]  }
0x1949   :  { %v3284_v29 = vadd.f32 %v3237_v21, %v3197_v28  ;;  %v3239_v38 = vpop.f32.mrb[102].mxu0  ;;  %v3280_v3 = vpop.f32.mrb[102].mxu1  ;;  %v3286_v63 = vadd.f32 %v3278_v32, %v3199_v61  ;;  %v6470_v53 = vld [vmem:[%s6669_s2 + $0x80] ss:$16 sps:$4 sm:$0xff]   ;;  %v6476_v28 = vld [vmem:[%s6669_s2 + $0x88] ss:$16 sps:$4 sm:$0xff]  }
0x194a   :  { %4158 = vtanh.f32 %v3283_v31  ;;  %v3240_v50 = vpop.f32.mrb[103].mxu0  ;;  %v3281_v59 = vpop.f32.mrb[103].mxu1  ;;  %v6482_v31 = vld [vmem:[%s6669_s2 + $0xa4] ss:$16 sps:$4 sm:$0xff]   ;;  %v6488_v37 = vld [vmem:[%s6669_s2 + $0xac] ss:$16 sps:$4 sm:$0xff]  }
0x194b   :  { %4160 = vtanh.f32 %v3284_v29  ;;  %v6494_v21 = vld [vmem:[%s6669_s2 + $0xa0] ss:$16 sps:$4 sm:$0xff]   ;;  %v6500_v32 = vld [vmem:[%s6669_s2 + $0xa8] ss:$16 sps:$4 sm:$0xff]   ;;  %v6506_v29 = vld [vmem:[%s6669_s2 + $0xc4] ss:$16 sps:$4 sm:$0xff]   ;;  %v3307_v3 = vpop.permute.xlu0 %3306 }
0x194c   :  { %4162 = vtanh.f32 %v3285_v41  ;;  %v6512_v38 = vld [vmem:[%s6669_s2 + $0xcc] ss:$16 sps:$4 sm:$0xff]   ;;  %v3309_v41 = vmul.f32 %v3307_v3, %v4654_v54  ;;  %v3310_v50 = vmul.f32 %v3307_v3, %v4659_v56 }
0x194d   :  { %4164 = vtanh.f32 %v3286_v63 }
0x1954   :  { %v4159_v33 = vpop.eup %4158 }
0x1955   :  { %v3291_v4 = vmul.f32 0.5, %v4159_v33  ;;  %v4161_v34 = vpop.eup %4160 }
0x1956   :  { %v3293_v35 = vmul.f32 0.5, %v4161_v34  ;;  %v4163_v46 = vpop.eup %4162 }
0x1957   :  { %v3292_v42 = vadd.f32 0.5, %v3291_v4  ;;  %v4165_v36 = vpop.eup %4164 }
0x1958   :  { %v3294_v39 = vadd.f32 0.5, %v3293_v35  ;;  %v3295_v20 = vmul.f32 0.5, %v4165_v36 }
0x1959   :  { %v3298_v51 = vmul.f32 %v4163_v46, %v3292_v42  ;;  %v3312_v46 = vmul.f32 %v3307_v3, %v4675_v40 }
0x195a   :  { %v3297_v2 = vmul.f32 %v3294_v39, %v6310_v30  ;;  %v3296_v26 = vadd.f32 0.5, %v3295_v20  ;;  %v6390_v30 = vld [vmem:[%s6669_s2 + $0x2c] ss:$16 sps:$4 sm:$0xff]  }
0x195b   :  { %v3316_v39 = vadd.f32 %v3312_v46, %v4678_v52 }
0x195c   :  { %v6366_v11 = vadd.f32 %v3298_v51, %v3297_v2 }
0x195e   :  { %4166 = vtanh.f32 %v6366_v11 }
0x1968   :  { %v4167_v43 = vpop.eup %4166 }
0x1969   :  { %v3301_v12 = vmul.f32 %v4167_v43, %v3296_v26 }
0x196b   :  { %v3317_v0 = vpack.c.bf16 %v3301_v12, %v3301_v12 }
0x196d   :  { %3351 = vmatmul.mubr.bf16.vlgmr.msra.gmra.mrb[104].mxu0 %v3317_v0  ;;  %3392 = vmatmul.mubr.bf16.vlgmr.msra.gmra.mrb[104].mxu1 %v3317_v0 }
0x196e   :  { %3436 = vmatpush1.bf16.msra.mxu0 %v6372_v6  ;;  %3477 = vmatpush1.bf16.msra.mxu1 %v6378_v17 }
0x196f   :  { %3437 = vmatprep.subr.bf16.mxu0 %v6384_v15  ;;  %3478 = vmatprep.subr.bf16.mxu1 %v6390_v30 }
0x1970   :  { %3467 = vmatprep.mubr.bf16.mxu0 %v4336_v1  ;;  %3508 = vmatprep.mubr.bf16.mxu1 %v4336_v1 }
0x1972   :  { %3438 = vmatpush1.bf16.msra.mxu0 %v6398_v5  ;;  %3479 = vmatpush1.bf16.msra.mxu1 %v6404_v16 }
0x1973   :  { %3439 = vmatprep.subr.bf16.mxu0 %v6410_v48  ;;  %3480 = vmatprep.subr.bf16.mxu1 %v6416_v55 }
0x1976   :  { %3440 = vmatpush1.bf16.msra.mxu0 %v6422_v22  ;;  %3481 = vmatpush1.bf16.msra.mxu1 %v6428_v44 }
0x1977   :  { %3441 = vmatprep.subr.bf16.mxu0 %v6434_v23  ;;  %3482 = vmatprep.subr.bf16.mxu1 %v6440_v49 }
0x197a   :  { %3442 = vmatpush1.bf16.msra.mxu0 %v6446_v13  ;;  %3483 = vmatpush1.bf16.msra.mxu1 %v6452_v24 }
0x197b   :  { %3443 = vmatprep.subr.bf16.mxu0 %v6458_v45  ;;  %3484 = vmatprep.subr.bf16.mxu1 %v6464_v58 }
0x197e   :  { %3444 = vmatpush1.bf16.msra.mxu0 %v6470_v53  ;;  %3485 = vmatpush1.bf16.msra.mxu1 %v6476_v28 }
0x197f   :  { %3445 = vmatprep.subr.bf16.mxu0 %v6482_v31  ;;  %3486 = vmatprep.subr.bf16.mxu1 %v6488_v37 }
0x1982   :  { %3446 = vmatpush1.bf16.msra.mxu0 %v6494_v21  ;;  %3487 = vmatpush1.bf16.msra.mxu1 %v6500_v32 }
0x1983   :  { %3447 = vmatprep.subr.bf16.mxu0 %v6506_v29  ;;  %3488 = vmatprep.subr.bf16.mxu1 %v6512_v38 }
0x1986   :  { %3448 = vmatpush1.bf16.msra.mxu0 %v6082_v19  ;;  %3489 = vmatpush1.bf16.msra.mxu1 %v6088_v18  ;;  %v3311_v19 = vmul.f32 %v3307_v3, %v4661_v57  ;;  %v3313_v18 = vadd.f32 %v3309_v41, %v4664_v60 }
0x1987   :  { %3449 = vmatprep.subr.bf16.mxu0 %v6094_v7  ;;  %3490 = vmatprep.subr.bf16.mxu1 %v6100_v8  ;;  %v3314_v8 = vadd.f32 %v3310_v50, %v4667_v62 }
0x198a   :  { %3450 = vmatpush1.bf16.msra.mxu0 %v6106_v9  ;;  %3491 = vmatpush1.bf16.msra.mxu1 %v6112_v10  ;;  %v3315_v10 = vadd.f32 %v3311_v19, %v4670_v27 }
0x198b   :  { %3552 = vmatprep.subr.bf16.mxu0 %v6348_v14  ;;  %3593 = vmatprep.subr.bf16.mxu1 %v6354_v25 }
0x1a40   :  { %v3352_v7 = vpop.f32.mrb[104].mxu0  ;;  %v3393_v59 = vpop.f32.mrb[104].mxu1 }
0x1a41   :  { %v3400_v9 = vadd.f32 %v3352_v7, %v3313_v18  ;;  %v3354_v47 = vpop.f32.mrb[105].mxu0  ;;  %v3395_v61 = vpop.f32.mrb[105].mxu1  ;;  %v3402_v34 = vadd.f32 %v3393_v59, %v3315_v10  ;;  %v6570_v10 = vld [vmem:[%s6669_s2 + $0xc8] ss:$16 sps:$4 sm:$0xff]  }
0x1a42   :  { %v3401_v63 = vadd.f32 %v3354_v47, %v3314_v8  ;;  %v3356_v33 = vpop.f32.mrb[106].mxu0  ;;  %v3397_v4 = vpop.f32.mrb[106].mxu1  ;;  %v3403_v51 = vadd.f32 %v3395_v61, %v3316_v39  ;;  %v6576_v47 = vld [vmem:[%s6669_s2 + $0xe4] ss:$16 sps:$4 sm:$0xff]   ;;  %v6582_v61 = vld [vmem:[%s6669_s2 + $0xec] ss:$16 sps:$4 sm:$0xff]  }
0x1a43   :  { %4168 = vtanh.f32 %v3400_v9  ;;  %v3357_v42 = vpop.f32.mrb[107].mxu0  ;;  %v3398_v35 = vpop.f32.mrb[107].mxu1  ;;  %v6594_v33 = vld [vmem:[%s6669_s2 + $0xe8] ss:$16 sps:$4 sm:$0xff]  }
0x1a44   :  { %4170 = vtanh.f32 %v3401_v63  ;;  %v6588_v63 = vld [vmem:[%s6669_s2 + $0xe0] ss:$16 sps:$4 sm:$0xff]   ;;  %v3424_v4 = vpop.permute.xlu1 %3423 }
0x1a45   :  { %4172 = vtanh.f32 %v3402_v34  ;;  %v3426_v34 = vmul.f32 %v3424_v4, %v4654_v54  ;;  %v3427_v42 = vmul.f32 %v3424_v4, %v4659_v56  ;;  %v3428_v35 = vmul.f32 %v3424_v4, %v4661_v57 }
0x1a46   :  { %4174 = vtanh.f32 %v3403_v51 }
0x1a47   :  { %v3430_v46 = vadd.f32 %v3426_v34, %v4664_v60 }
0x1a4d   :  { %v4169_v2 = vpop.eup %4168 }
0x1a4e   :  { %v3408_v36 = vmul.f32 0.5, %v4169_v2  ;;  %v4171_v20 = vpop.eup %4170  ;;  %v3431_v2 = vadd.f32 %v3427_v42, %v4667_v62 }
0x1a4f   :  { %v3410_v43 = vmul.f32 0.5, %v4171_v20  ;;  %v4173_v12 = vpop.eup %4172  ;;  %v3432_v20 = vadd.f32 %v3428_v35, %v4670_v27 }
0x1a50   :  { %v3409_v26 = vadd.f32 0.5, %v3408_v36  ;;  %v4175_v3 = vpop.eup %4174 }
0x1a51   :  { %v3411_v0 = vadd.f32 0.5, %v3410_v43  ;;  %v3412_v18 = vmul.f32 0.5, %v4175_v3  ;;  %v3429_v3 = vmul.f32 %v3424_v4, %v4675_v40 }
0x1a52   :  { %v3415_v41 = vmul.f32 %v4173_v12, %v3409_v26 }
0x1a53   :  { %v3414_v50 = vmul.f32 %v3411_v0, %v6366_v11  ;;  %v3413_v7 = vadd.f32 0.5, %v3412_v18  ;;  %v6564_v11 = vld [vmem:[%s6669_s2 + $0xc0] ss:$16 sps:$4 sm:$0xff]   ;;  %v3433_v18 = vadd.f32 %v3429_v3, %v4678_v52  ;;  %v11_v3 = vstv %s6673_s5 }
0x1a54   :  { %12 = vst [vmem:[#allocation2] sm:$0x1] %v11_v3 }
0x1a55   :  { %v6532_v19 = vadd.f32 %v3415_v41, %v3414_v50 }
0x1a57   :  { %4176 = vtanh.f32 %v6532_v19 }
0x1a61   :  { %v4177_v59 = vpop.eup %4176 }
0x1a62   :  { %v3418_v8 = vmul.f32 %v4177_v59, %v3413_v7 }
0x1a64   :  { %v3434_v9 = vpack.c.bf16 %v3418_v8, %v3418_v8 }
0x1a66   :  { %3468 = vmatmul.mubr.bf16.vlgmr.msra.gmra.mrb[108].mxu0 %v3434_v9  ;;  %3509 = vmatmul.mubr.bf16.vlgmr.msra.gmra.mrb[108].mxu1 %v3434_v9 }
0x1a67   :  { %3553 = vmatpush1.bf16.msra.mxu0 %v6372_v6  ;;  %3594 = vmatpush1.bf16.msra.mxu1 %v6378_v17 }
0x1a68   :  { %3554 = vmatprep.subr.bf16.mxu0 %v6384_v15  ;;  %3595 = vmatprep.subr.bf16.mxu1 %v6390_v30 }
0x1a69   :  { %3584 = vmatprep.mubr.bf16.mxu0 %v4336_v1  ;;  %3625 = vmatprep.mubr.bf16.mxu1 %v4336_v1 }
0x1a6b   :  { %3555 = vmatpush1.bf16.msra.mxu0 %v6398_v5  ;;  %3596 = vmatpush1.bf16.msra.mxu1 %v6404_v16 }
0x1a6c   :  { %3556 = vmatprep.subr.bf16.mxu0 %v6410_v48  ;;  %3597 = vmatprep.subr.bf16.mxu1 %v6416_v55 }
0x1a6f   :  { %3557 = vmatpush1.bf16.msra.mxu0 %v6422_v22  ;;  %3598 = vmatpush1.bf16.msra.mxu1 %v6428_v44 }
0x1a70   :  { %3558 = vmatprep.subr.bf16.mxu0 %v6434_v23  ;;  %3599 = vmatprep.subr.bf16.mxu1 %v6440_v49 }
0x1a73   :  { %3559 = vmatpush1.bf16.msra.mxu0 %v6446_v13  ;;  %3600 = vmatpush1.bf16.msra.mxu1 %v6452_v24 }
0x1a74   :  { %3560 = vmatprep.subr.bf16.mxu0 %v6458_v45  ;;  %3601 = vmatprep.subr.bf16.mxu1 %v6464_v58 }
0x1a77   :  { %3561 = vmatpush1.bf16.msra.mxu0 %v6470_v53  ;;  %3602 = vmatpush1.bf16.msra.mxu1 %v6476_v28 }
0x1a78   :  { %3562 = vmatprep.subr.bf16.mxu0 %v6482_v31  ;;  %3603 = vmatprep.subr.bf16.mxu1 %v6488_v37 }
0x1a7b   :  { %3563 = vmatpush1.bf16.msra.mxu0 %v6494_v21  ;;  %3604 = vmatpush1.bf16.msra.mxu1 %v6500_v32 }
0x1a7c   :  { %3564 = vmatprep.subr.bf16.mxu0 %v6506_v29  ;;  %3605 = vmatprep.subr.bf16.mxu1 %v6512_v38 }
0x1a7f   :  { %3565 = vmatpush1.bf16.msra.mxu0 %v6564_v11  ;;  %3606 = vmatpush1.bf16.msra.mxu1 %v6570_v10 }
0x1a80   :  { %3566 = vmatprep.subr.bf16.mxu0 %v6576_v47  ;;  %3607 = vmatprep.subr.bf16.mxu1 %v6582_v61 }
0x1a83   :  { %3567 = vmatpush1.bf16.msra.mxu0 %v6588_v63  ;;  %3608 = vmatpush1.bf16.msra.mxu1 %v6594_v33 }
0x1a84   :  { %3669 = vmatprep.subr.bf16.mxu0 %v6348_v14  ;;  %3710 = vmatprep.subr.bf16.mxu1 %v6354_v25 }
0x1b39   :  { %v3469_v39 = vpop.f32.mrb[108].mxu0  ;;  %v3510_v51 = vpop.f32.mrb[108].mxu1 }
0x1b3a   :  { %v3517_v36 = vadd.f32 %v3469_v39, %v3430_v46  ;;  %v3471_v26 = vpop.f32.mrb[109].mxu0  ;;  %v3512_v14 = vpop.f32.mrb[109].mxu1  ;;  %v3519_v0 = vadd.f32 %v3510_v51, %v3432_v20 }
0x1b3b   :  { %v3518_v43 = vadd.f32 %v3471_v26, %v3431_v2  ;;  %v3473_v25 = vpop.f32.mrb[110].mxu0  ;;  %v3514_v12 = vpop.f32.mrb[110].mxu1  ;;  %v3520_v7 = vadd.f32 %v3512_v14, %v3433_v18 }
0x1b3c   :  { %4178 = vtanh.f32 %v3517_v36  ;;  %v3474_v41 = vpop.f32.mrb[111].mxu0  ;;  %v3515_v50 = vpop.f32.mrb[111].mxu1 }
0x1b3d   :  { %4180 = vtanh.f32 %v3518_v43  ;;  %v3658_v18 = vpop.permute.xlu1 %3657 }
0x1b3e   :  { %4182 = vtanh.f32 %v3519_v0 }
0x1b3f   :  { %4184 = vtanh.f32 %v3520_v7  ;;  %v3660_v7 = vmul.f32 %v3658_v18, %v4654_v54 }
0x1b46   :  { %v4179_v59 = vpop.eup %4178 }
0x1b47   :  { %v3525_v8 = vmul.f32 0.5, %v4179_v59  ;;  %v4181_v9 = vpop.eup %4180  ;;  %v3661_v59 = vmul.f32 %v3658_v18, %v4659_v56 }
0x1b48   :  { %v3527_v42 = vmul.f32 0.5, %v4181_v9  ;;  %v4183_v35 = vpop.eup %4182  ;;  %v3664_v9 = vadd.f32 %v3660_v7, %v4664_v60 }
0x1b49   :  { %v3526_v34 = vadd.f32 0.5, %v3525_v8  ;;  %v4185_v4 = vpop.eup %4184  ;;  %v3662_v8 = vmul.f32 %v3658_v18, %v4661_v57 }
0x1b4a   :  { %v3528_v46 = vadd.f32 0.5, %v3527_v42  ;;  %v3529_v36 = vmul.f32 0.5, %v4185_v4 }
0x1b4b   :  { %v3532_v39 = vmul.f32 %v4183_v35, %v3526_v34  ;;  %v3665_v35 = vadd.f32 %v3661_v59, %v4667_v62 }
0x1b4c   :  { %v3531_v51 = vmul.f32 %v3528_v46, %v6532_v19  ;;  %v3530_v20 = vadd.f32 0.5, %v3529_v36 }
0x1b4e   :  { %v6608_v2 = vadd.f32 %v3532_v39, %v3531_v51  ;;  %v3666_v39 = vadd.f32 %v3662_v8, %v4670_v27 }
0x1b50   :  { %4186 = vtanh.f32 %v6608_v2 }
0x1b5a   :  { %v4187_v26 = vpop.eup %4186 }
0x1b5b   :  { %v3535_v14 = vmul.f32 %v4187_v26, %v3530_v20 }
0x1b5d   :  { %v3551_v43 = vpack.c.bf16 %v3535_v14, %v3535_v14 }
0x1b5f   :  { %3585 = vmatmul.mubr.bf16.vlgmr.msra.gmra.mrb[112].mxu0 %v3551_v43  ;;  %3626 = vmatmul.mubr.bf16.vlgmr.msra.gmra.mrb[112].mxu1 %v3551_v43 }
0x1b60   :  { %3670 = vmatpush1.bf16.msra.mxu0 %v6372_v6  ;;  %3711 = vmatpush1.bf16.msra.mxu1 %v6378_v17 }
0x1b61   :  { %3671 = vmatprep.subr.bf16.mxu0 %v6384_v15  ;;  %3712 = vmatprep.subr.bf16.mxu1 %v6390_v30 }
0x1b62   :  { %3701 = vmatprep.mubr.bf16.mxu0 %v4336_v1  ;;  %3742 = vmatprep.mubr.bf16.mxu1 %v4336_v1  ;;  %v3541_v1 = vpop.permute.xlu0 %3540 }
0x1b63   :  { %v3543_v6 = vmul.f32 %v3541_v1, %v4654_v54  ;;  %v3544_v17 = vmul.f32 %v3541_v1, %v4659_v56  ;;  %v3545_v15 = vmul.f32 %v3541_v1, %v4661_v57  ;;  %v3663_v57 = vmul.f32 %v3658_v18, %v4675_v40 }
0x1b64   :  { %3672 = vmatpush1.bf16.msra.mxu0 %v6398_v5  ;;  %3713 = vmatpush1.bf16.msra.mxu1 %v6404_v16 }
0x1b65   :  { %3673 = vmatprep.subr.bf16.mxu0 %v6410_v48  ;;  %3714 = vmatprep.subr.bf16.mxu1 %v6416_v55  ;;  %v3547_v30 = vadd.f32 %v3543_v6, %v4664_v60  ;;  %v3548_v48 = vadd.f32 %v3544_v17, %v4667_v62  ;;  %v3667_v60 = vadd.f32 %v3663_v57, %v4678_v52 }
0x1b68   :  { %3674 = vmatpush1.bf16.msra.mxu0 %v6422_v22  ;;  %3715 = vmatpush1.bf16.msra.mxu1 %v6428_v44  ;;  %v3549_v22 = vadd.f32 %v3545_v15, %v4670_v27 }
0x1b69   :  { %3675 = vmatprep.subr.bf16.mxu0 %v6434_v23  ;;  %3716 = vmatprep.subr.bf16.mxu1 %v6440_v49 }
0x1b6c   :  { %3676 = vmatpush1.bf16.msra.mxu0 %v6446_v13  ;;  %3717 = vmatpush1.bf16.msra.mxu1 %v6452_v24 }
0x1b6d   :  { %3677 = vmatprep.subr.bf16.mxu0 %v6458_v45  ;;  %3718 = vmatprep.subr.bf16.mxu1 %v6464_v58 }
0x1b70   :  { %3678 = vmatpush1.bf16.msra.mxu0 %v6470_v53  ;;  %3719 = vmatpush1.bf16.msra.mxu1 %v6476_v28  ;;  %v3546_v28 = vmul.f32 %v3541_v1, %v4675_v40 }
0x1b71   :  { %3679 = vmatprep.subr.bf16.mxu0 %v6482_v31  ;;  %3720 = vmatprep.subr.bf16.mxu1 %v6488_v37 }
0x1b72   :  { %v3550_v31 = vadd.f32 %v3546_v28, %v4678_v52  ;;  %v3855_v52 = vld [vmem:[%s6674_s4] ss:$0 sm:$0xff] }
0x1b74   :  { %3680 = vmatpush1.bf16.msra.mxu0 %v6494_v21  ;;  %3721 = vmatpush1.bf16.msra.mxu1 %v6500_v32 }
0x1b75   :  { %3681 = vmatprep.subr.bf16.mxu0 %v6506_v29  ;;  %3722 = vmatprep.subr.bf16.mxu1 %v6512_v38 }
0x1b78   :  { %3682 = vmatpush1.bf16.msra.mxu0 %v6564_v11  ;;  %3723 = vmatpush1.bf16.msra.mxu1 %v6570_v10 }
0x1b79   :  { %3683 = vmatprep.subr.bf16.mxu0 %v6576_v47  ;;  %3724 = vmatprep.subr.bf16.mxu1 %v6582_v61 }
0x1b7c   :  { %3684 = vmatpush1.bf16.msra.mxu0 %v6588_v63  ;;  %3725 = vmatpush1.bf16.msra.mxu1 %v6594_v33 }
0x1c32   :  { %v3586_v5 = vpop.f32.mrb[112].mxu0  ;;  %v3627_v16 = vpop.f32.mrb[112].mxu1 }
0x1c33   :  { %v3634_v55 = vadd.f32 %v3586_v5, %v3547_v30  ;;  %v3588_v44 = vpop.f32.mrb[113].mxu0  ;;  %v3629_v23 = vpop.f32.mrb[113].mxu1  ;;  %v3636_v45 = vadd.f32 %v3627_v16, %v3549_v22 }
0x1c34   :  { %v3635_v49 = vadd.f32 %v3588_v44, %v3548_v48  ;;  %v3590_v13 = vpop.f32.mrb[114].mxu0  ;;  %v3631_v24 = vpop.f32.mrb[114].mxu1  ;;  %v3637_v37 = vadd.f32 %v3629_v23, %v3550_v31 }
0x1c35   :  { %4188 = vtanh.f32 %v3634_v55  ;;  %v3591_v58 = vpop.f32.mrb[115].mxu0  ;;  %v3632_v53 = vpop.f32.mrb[115].mxu1 }
0x1c36   :  { %4190 = vtanh.f32 %v3635_v49  ;;  %v3856_v49 = vld [vmem:[#allocation2] ss:$0 sm:$0xff] }
0x1c37   :  { %4192 = vtanh.f32 %v3636_v45 }
0x1c38   :  { %4194 = vtanh.f32 %v3637_v37 }
0x1c3f   :  { %v4189_v21 = vpop.eup %4188 }
0x1c40   :  { %v3642_v32 = vmul.f32 0.5, %v4189_v21  ;;  %v4191_v29 = vpop.eup %4190 }
0x1c41   :  { %v3644_v19 = vmul.f32 0.5, %v4191_v29  ;;  %v4193_v11 = vpop.eup %4192 }
0x1c42   :  { %v3643_v38 = vadd.f32 0.5, %v3642_v32  ;;  %v4195_v33 = vpop.eup %4194 }
0x1c43   :  { %v3645_v10 = vadd.f32 0.5, %v3644_v19  ;;  %v3646_v25 = vmul.f32 0.5, %v4195_v33 }
0x1c44   :  { %v3649_v47 = vmul.f32 %v4193_v11, %v3643_v38 }
0x1c45   :  { %v3648_v61 = vmul.f32 %v3645_v10, %v6608_v2  ;;  %v3647_v12 = vadd.f32 0.5, %v3646_v25 }
0x1c47   :  { %v3650_v63 = vadd.f32 %v3649_v47, %v3648_v61 }
0x1c49   :  { %4196 = vtanh.f32 %v3650_v63 }
0x1c53   :  { %v4197_v0 = vpop.eup %4196 }
0x1c54   :  { %v3652_v41 = vmul.f32 %v4197_v0, %v3647_v12 }
0x1c56   :  { %v3668_v50 = vpack.c.bf16 %v3652_v41, %v3652_v41 }
0x1c58   :  { %3702 = vmatmul.mubr.bf16.vlgmr.msra.gmra.mrb[116].mxu0 %v3668_v50  ;;  %3743 = vmatmul.mubr.bf16.vlgmr.msra.gmra.mrb[116].mxu1 %v3668_v50 }
0x1d2b   :  { %v3703_v34 = vpop.f32.mrb[116].mxu0  ;;  %v3744_v42 = vpop.f32.mrb[116].mxu1 }
0x1d2c   :  { %v3751_v46 = vadd.f32 %v3703_v34, %v3664_v9  ;;  %v3705_v51 = vpop.f32.mrb[117].mxu0  ;;  %v3746_v2 = vpop.f32.mrb[117].mxu1  ;;  %v3753_v54 = vadd.f32 %v3744_v42, %v3666_v39 }
0x1d2d   :  { %v3752_v4 = vadd.f32 %v3705_v51, %v3665_v35  ;;  %v3707_v36 = vpop.f32.mrb[118].mxu0  ;;  %v3748_v20 = vpop.f32.mrb[118].mxu1  ;;  %v3754_v14 = vadd.f32 %v3746_v2, %v3667_v60 }
0x1d2e   :  { %4198 = vtanh.f32 %v3751_v46  ;;  %v3708_v26 = vpop.f32.mrb[119].mxu0  ;;  %v3749_v56 = vpop.f32.mrb[119].mxu1 }
0x1d2f   :  { %4200 = vtanh.f32 %v3752_v4 }
0x1d30   :  { %4202 = vtanh.f32 %v3753_v54 }
0x1d31   :  { %4204 = vtanh.f32 %v3754_v14 }
0x1d38   :  { %v4199_v62 = vpop.eup %4198 }
0x1d39   :  { %v3759_v43 = vmul.f32 0.5, %v4199_v62  ;;  %v4201_v1 = vpop.eup %4200 }
0x1d3a   :  { %v3761_v6 = vmul.f32 0.5, %v4201_v1  ;;  %v4203_v17 = vpop.eup %4202 }
0x1d3b   :  { %v3760_v27 = vadd.f32 0.5, %v3759_v43  ;;  %v4205_v48 = vpop.eup %4204 }
0x1d3c   :  { %v3762_v15 = vadd.f32 0.5, %v3761_v6  ;;  %v3763_v55 = vmul.f32 0.5, %v4205_v48 }
0x1d3d   :  { %v3766_v30 = vmul.f32 %v4203_v17, %v3760_v27 }
0x1d3e   :  { %v3765_v5 = vmul.f32 %v3762_v15, %v3650_v63  ;;  %v3764_v22 = vadd.f32 0.5, %v3763_v55 }
0x1d40   :  { %v3767_v16 = vadd.f32 %v3766_v30, %v3765_v5 }
0x1d42   :  { %4206 = vtanh.f32 %v3767_v16 }
0x1d4c   :  { %v4207_v40 = vpop.eup %4206 }
0x1d4d   :  { %v3769_v44 = vmul.f32 %v4207_v40, %v3764_v22 }
0x1d4f   :  { %v3777_v23 = vmul.f32 %v3855_v52, %v3769_v44 }
0x1d51   :  { %3778 = vadd.xlane.f32.xlu0 %v3777_v23 }
0x1dde   :  { %v3779_v13 = vpop.xlane.xlu0 %3778 }
0x1ddf   :  { %v3787_v24 = vadd.f32 %v3856_v49, %v3779_v13 }
0x1de1   :  { %3789 = vst.msk [vmem:[%s6675_s6] sm:$0xff] %vm3788_vm0, %v3787_v24 }

</bundles_post_ra>
